<compile_context>
chip_gen: v6e
topology: v6e:2x2x1
jax: 0.10.0
libtpu: 0.0.40
codegen_flags: <defaults>
</compile_context>

<pallas_src>
import jax
import jax.numpy as jnp
from jax.experimental import pallas as pl
from jax.experimental.pallas import tpu as pltpu

# ---------------- module configuration ----------------
EMBED       = 64                          # embed_size (see NOTE above)
TABLES      = 10
TYPES       = 50
JOINS       = 40
N_FILTERS   = 10
FILTER_IN   = 1000                        # per-filter feature width
SAMPLE_DIM  = 1000
FILTER_DIM  = EMBED + EMBED // 8 + 1      # 73
OUT_DIM     = 4 * EMBED + EMBED // 8 + 1  # 265 (== project's in/out features)
EMB_ROWS    = TYPES + JOINS + TABLES      # 100 rows of the fused embedding table
FEATURE_DIM = 1 + 1 + FILTER_IN * N_FILTERS + N_FILTERS + (1 + SAMPLE_DIM)  # 11013
NEG_SLOPE   = 0.01                        # F.leaky_relu default
MAX_BATCH_TILE = 128                      # fits default scoped VMEM on v5e/v6e/v7x


def _leaky(x):
    # leaky_relu with slope < 1  ==  max(x, slope * x)  (single VPU max)
    return jnp.maximum(x, NEG_SLOPE * x)


def _round_up(x, m):
    return ((x + m - 1) // m) * m


# ---------------- Pallas kernel ----------------
def feature_embed_kernel(
    ids_ref,        # (TB, 3)        int32 : [typeId, joinId+50, tableId+90]
    filt_ref,       # (10, TB, 1000) bf16  : filter-major filterExpand
    mask_ref,       # (TB, 10)       f32   : filtersMask
    sample_ref,     # (TB, 1000)     bf16
    w_f1_ref, b_f1_ref,   # (1000, 73) bf16, (1, 73) f32
    w_f2_ref, b_f2_ref,   # (73, 73)   bf16, (1, 73) f32
    w_s_ref,  b_s_ref,    # (1000, 64) bf16, (1, 64) f32
    wp_emb_ref,     # (100, 265) f32  : (type|join|table) tables folded into w_p rows
    wp_filt_ref,    # (73, 265)  bf16 : w_p rows 64:137
    wp_tab_ref,     # (64, 265)  bf16 : w_p rows 201:265
    b_p_ref,        # (1, 265)   f32
    out_ref,        # (TB, 265)  f32
):
    f32, bf16 = jnp.float32, jnp.bfloat16
    TB = ids_ref.shape[0]

    mask = mask_ref[...]                                  # (TB, 10)
    w_f1, b_f1 = w_f1_ref[...], b_f1_ref[...]
    w_f2, b_f2 = w_f2_ref[...], b_f2_ref[...]

    # --- filter branch: two Linear + leaky per filter, masked 10-term sum ---
    total = jnp.zeros((TB, FILTER_DIM), f32)
    for f in range(N_FILTERS):                            # static unroll (10)
        xf = filt_ref[f]                                  # (TB, 1000) bf16
        h1 = _leaky(jnp.dot(xf, w_f1, preferred_element_type=f32) + b_f1)
        h2 = _leaky(jnp.dot(h1.astype(bf16), w_f2,
                            preferred_element_type=f32) + b_f2)
        # concat[~filtersMask.bool()] = 0  : drop masked filter rows.
        total = total + jnp.where(mask[:, f:f + 1] != 0.0, h2, 0.0)
    num_filters = jnp.sum(mask, axis=1, keepdims=True)            # (TB, 1)
    filt_avg = total * pl.reciprocal(num_filters, approx=True)    # (TB, 73)

    # --- fused type/join/table embedding lookup, folded through w_p ---
    iota = jax.lax.broadcasted_iota(jnp.int32, (TB, EMB_ROWS), 1)
    sel = ((iota == ids_ref[:, 0:1]) | (iota == ids_ref[:, 1:2])
           | (iota == ids_ref[:, 2:3]))
    onehot = sel.astype(f32)                              # exact 0/1 rows
    acc = jnp.dot(onehot, wp_emb_ref[...], preferred_element_type=f32)  # (TB,265)

    # --- tableEmb += linearSample(sample); project through its w_p rows ---
    t_emb = (jnp.dot(sample_ref[...], w_s_ref[...],
                     preferred_element_type=f32) + b_s_ref[...])        # (TB, 64)
    acc = acc + jnp.dot(t_emb.astype(bf16), wp_tab_ref[...],
                        preferred_element_type=f32)

    # --- filter average through its w_p rows ---
    acc = acc + jnp.dot(filt_avg.astype(bf16), wp_filt_ref[...],
                        preferred_element_type=f32)

    out_ref[...] = _leaky(acc + b_p_ref[...])


# ---------------- wrapper ----------------
def feature_embed_forward(feature, params):
    B = feature.shape[0]
    f32, bf16 = jnp.float32, jnp.bfloat16
    hp = jax.lax.Precision.HIGHEST

    TB = min(MAX_BATCH_TILE, _round_up(B, 8))
    Bp = _round_up(B, TB)
    pad = Bp - B

    # torch.split(feature, (1, 1, 10000, 10, 1001), dim=-1), ids offset for the
    # fused embedding table [type | join(+50) | table(+90)].
    type_id  = feature[:, 0].astype(jnp.int32)
    join_id  = feature[:, 1].astype(jnp.int32) + TYPES
    table_id = feature[:, 10012].astype(jnp.int32) + TYPES + JOINS
    ids = jnp.stack([type_id, join_id, table_id], axis=1)            # (B, 3)

    filt = (feature[:, 2:10002].astype(bf16)
            .reshape(B, FILTER_IN, N_FILTERS)
            .transpose(2, 0, 1))                                     # (10, B, 1000)
    mask = feature[:, 10002:10012]                                   # (B, 10) f32
    sample = feature[:, 10013:10013 + SAMPLE_DIM].astype(bf16)       # (B, 1000)

    if pad:
        ids = jnp.pad(ids, ((0, pad), (0, 0)))
        filt = jnp.pad(filt, ((0, 0), (0, pad), (0, 0)))
        # pad rows get a full mask so the filter-average stays finite (rows are
        # sliced off below, so this does not affect real outputs).
        mask = jnp.pad(mask, ((0, pad), (0, 0)), constant_values=1.0)
        sample = jnp.pad(sample, ((0, pad), (0, 0)))

    # Fold the three embedding tables through their w_p row-blocks (f32, exact).
    w_p = params["w_p"]
    wp_type = w_p[0:EMBED]                                    # rows   0:64
    wp_filt = w_p[EMBED:EMBED + FILTER_DIM]                   # rows  64:137
    wp_join = w_p[EMBED + FILTER_DIM:2 * EMBED + FILTER_DIM]  # rows 137:201
    wp_tab  = w_p[2 * EMBED + FILTER_DIM:]                    # rows 201:265
    wp_emb = jnp.concatenate([
        jnp.dot(params["type_emb"],  wp_type, precision=hp),  # ids  0..49
        jnp.dot(params["join_emb"],  wp_join, precision=hp),  # ids 50..89
        jnp.dot(params["table_emb"], wp_tab,  precision=hp),  # ids 90..99
    ], axis=0)                                                # (100, 265) f32

    row2 = lambda i: (i, 0)
    const2 = lambda i: (0, 0)

    out = pl.pallas_call(
        feature_embed_kernel,
        out_shape=jax.ShapeDtypeStruct((Bp, OUT_DIM), f32),
        grid=(Bp // TB,),
        in_specs=[
            pl.BlockSpec((TB, 3), row2),                               # ids
            pl.BlockSpec((N_FILTERS, TB, FILTER_IN), lambda i: (0, i, 0)),
            pl.BlockSpec((TB, N_FILTERS), row2),                       # mask
            pl.BlockSpec((TB, SAMPLE_DIM), row2),                      # sample
            pl.BlockSpec((FILTER_IN, FILTER_DIM), const2),             # w_f1
            pl.BlockSpec((1, FILTER_DIM), const2),                     # b_f1
            pl.BlockSpec((FILTER_DIM, FILTER_DIM), const2),            # w_f2
            pl.BlockSpec((1, FILTER_DIM), const2),                     # b_f2
            pl.BlockSpec((SAMPLE_DIM, EMBED), const2),                 # w_s
            pl.BlockSpec((1, EMBED), const2),                          # b_s
            pl.BlockSpec((EMB_ROWS, OUT_DIM), const2),                 # wp_emb
            pl.BlockSpec((FILTER_DIM, OUT_DIM), const2),               # wp_filt
            pl.BlockSpec((EMBED, OUT_DIM), const2),                    # wp_tab
            pl.BlockSpec((1, OUT_DIM), const2),                        # b_p
        ],
        out_specs=pl.BlockSpec((TB, OUT_DIM), row2),
        compiler_params=pltpu.CompilerParams(
            dimension_semantics=("parallel",),
            vmem_limit_bytes=32 * 1024 * 1024),
    )(ids, filt, mask, sample,
      params["w_f1"].astype(bf16), params["b_f1"],
      params["w_f2"].astype(bf16), params["b_f2"],
      params["w_s"].astype(bf16), params["b_s"],
      wp_emb, wp_filt.astype(bf16), wp_tab.astype(bf16), params["b_p"])
    return out[:B]


# ---------------- deterministic parameter init ----------------
def init_params(key):
    ks = jax.random.split(key, 11)
    n = lambda k, shape, s: jax.random.normal(k, shape, jnp.float32) * s
    return {
        "type_emb":  n(ks[0], (TYPES, EMBED), 1.0),
        "join_emb":  n(ks[1], (JOINS, EMBED), 1.0),
        "table_emb": n(ks[2], (TABLES, EMBED), 1.0),
        "w_f1": n(ks[3], (FILTER_IN, FILTER_DIM), FILTER_IN ** -0.5),
        "b_f1": n(ks[4], (1, FILTER_DIM), 0.01),
        "w_f2": n(ks[5], (FILTER_DIM, FILTER_DIM), FILTER_DIM ** -0.5),
        "b_f2": n(ks[6], (1, FILTER_DIM), 0.01),
        "w_s":  n(ks[7], (SAMPLE_DIM, EMBED), SAMPLE_DIM ** -0.5),
        "b_s":  n(ks[8], (1, EMBED), 0.01),
        "w_p":  n(ks[9], (OUT_DIM, OUT_DIM), OUT_DIM ** -0.5),
        "b_p":  n(ks[10], (1, OUT_DIM), 0.01),
    }


# ---------------- pure-JAX reference (mirrors the PyTorch forward) ----------------
def feature_embed_ref(feature, params):
    B = feature.shape[0]
    hp = jax.lax.Precision.HIGHEST
    typeId  = feature[:, 0].astype(jnp.int32)
    joinId  = feature[:, 1].astype(jnp.int32)
    filters = feature[:, 2:10002]
    mask    = feature[:, 10002:10012]
    tableId = feature[:, 10012].astype(jnp.int32)
    sample  = feature[:, 10013:]

    type_emb  = params["type_emb"][typeId]
    join_emb  = params["join_emb"][joinId]
    table_emb = (params["table_emb"][tableId]
                 + jnp.dot(sample, params["w_s"], precision=hp) + params["b_s"])

    def leaky(x):
        return jnp.where(x >= 0, x, NEG_SLOPE * x)

    fe = filters.reshape(B, FILTER_IN, N_FILTERS).transpose(0, 2, 1)  # (B,10,1000)
    h1 = leaky(jnp.einsum("bfi,io->bfo", fe, params["w_f1"], precision=hp)
               + params["b_f1"])
    h2 = leaky(jnp.einsum("bfi,io->bfo", h1, params["w_f2"], precision=hp)
               + params["b_f2"])
    h2 = jnp.where((mask != 0)[..., None], h2, 0.0)
    favg = h2.sum(axis=1) / mask.sum(axis=1, keepdims=True)

    final = jnp.concatenate([type_emb, favg, join_emb, table_emb], axis=1)
    return leaky(jnp.dot(final, params["w_p"], precision=hp) + params["b_p"])


if __name__ == "__main__":
    key = jax.random.PRNGKey(0)
    kp, kf, kt, kj, kb, km, ksamp = jax.random.split(key, 7)
    B = 8

    params = init_params(kp)

    # Flat feature tensor exactly as the module expects: (B, 11013)
    typeId  = jax.random.randint(kt, (B, 1), 0, TYPES).astype(jnp.float32)
    joinId  = jax.random.randint(kj, (B, 1), 0, JOINS).astype(jnp.float32)
    filters = jax.random.normal(kf, (B, FILTER_IN * N_FILTERS), jnp.float32)
    mask    = jax.random.bernoulli(km, 0.5, (B, N_FILTERS)).astype(jnp.float32)
    mask    = mask.at[:, 0].set(1.0)   # at least one active filter (avoid div-by-0)
    tableId = jax.random.randint(kb, (B, 1), 0, TABLES).astype(jnp.float32)
    sample  = jax.random.normal(ksamp, (B, SAMPLE_DIM), jnp.float32)
    feature = jnp.concatenate([typeId, joinId, filters, mask, tableId, sample],
                              axis=1)
    assert feature.shape == (B, FEATURE_DIM)

    out = jax.block_until_ready(feature_embed_forward(feature, params))
    ref = jax.block_until_ready(feature_embed_ref(feature, params))

    assert out.shape == (B, OUT_DIM)
    assert bool(jnp.all(jnp.isfinite(out)))
    max_err = float(jnp.max(jnp.abs(out - ref)))
    assert max_err < 5e-2, f"mismatch vs reference: max abs err = {max_err}"
    print("KERNEL_OK")
</pallas_src>

<mosaic_0001>
module attributes {stable_mosaic.version = 11 : i64} {
  func.func @feature_embed_kernel(%arg0: i32, %arg1: memref<8x3xi32, #tpu.memory_space<vmem>>, %arg2: memref<10x8x1000xbf16, #tpu.memory_space<vmem>>, %arg3: memref<8x10xf32, #tpu.memory_space<vmem>>, %arg4: memref<8x1000xbf16, #tpu.memory_space<vmem>>, %arg5: memref<1000x73xbf16, #tpu.memory_space<vmem>>, %arg6: memref<1x73xf32, #tpu.memory_space<vmem>>, %arg7: memref<73x73xbf16, #tpu.memory_space<vmem>>, %arg8: memref<1x73xf32, #tpu.memory_space<vmem>>, %arg9: memref<1000x64xbf16, #tpu.memory_space<vmem>>, %arg10: memref<1x64xf32, #tpu.memory_space<vmem>>, %arg11: memref<100x265xf32, #tpu.memory_space<vmem>>, %arg12: memref<73x265xbf16, #tpu.memory_space<vmem>>, %arg13: memref<64x265xbf16, #tpu.memory_space<vmem>>, %arg14: memref<1x265xf32, #tpu.memory_space<vmem>>, %arg15: memref<8x265xf32, #tpu.memory_space<vmem>>) attributes {dimension_semantics = [#tpu.dimension_semantics<parallel>], iteration_bounds = array<i64: 1>, scalar_prefetch = 0 : i64, scratch_operands = 0 : i64, tpu.core_type = #tpu.core_type<tc>, window_params = [{transform_indices = @transform_0, window_bounds = array<i64: 8, 3>}, {transform_indices = @transform_1, window_bounds = array<i64: 10, 8, 1000>}, {transform_indices = @transform_2, window_bounds = array<i64: 8, 10>}, {transform_indices = @transform_3, window_bounds = array<i64: 8, 1000>}, {pipeline_mode = #tpu.pipeline_mode<synchronous>, transform_indices = @transform_4, window_bounds = array<i64: 1000, 73>}, {pipeline_mode = #tpu.pipeline_mode<synchronous>, transform_indices = @transform_5, window_bounds = array<i64: 1, 73>}, {pipeline_mode = #tpu.pipeline_mode<synchronous>, transform_indices = @transform_6, window_bounds = array<i64: 73, 73>}, {pipeline_mode = #tpu.pipeline_mode<synchronous>, transform_indices = @transform_7, window_bounds = array<i64: 1, 73>}, {pipeline_mode = #tpu.pipeline_mode<synchronous>, transform_indices = @transform_8, window_bounds = array<i64: 1000, 64>}, {pipeline_mode = #tpu.pipeline_mode<synchronous>, transform_indices = @transform_9, window_bounds = array<i64: 1, 64>}, {pipeline_mode = #tpu.pipeline_mode<synchronous>, transform_indices = @transform_10, window_bounds = array<i64: 100, 265>}, {pipeline_mode = #tpu.pipeline_mode<synchronous>, transform_indices = @transform_11, window_bounds = array<i64: 73, 265>}, {pipeline_mode = #tpu.pipeline_mode<synchronous>, transform_indices = @transform_12, window_bounds = array<i64: 64, 265>}, {pipeline_mode = #tpu.pipeline_mode<synchronous>, transform_indices = @transform_13, window_bounds = array<i64: 1, 265>}, {transform_indices = @transform_14, window_bounds = array<i64: 8, 265>}]} {
    %c0 = arith.constant 0 : index
    %c0_0 = arith.constant 0 : index
    %0 = vector.load %arg3[%c0, %c0_0] : memref<8x10xf32, #tpu.memory_space<vmem>>, vector<8x10xf32>
    %c0_1 = arith.constant 0 : index
    %c0_2 = arith.constant 0 : index
    %1 = vector.load %arg5[%c0_1, %c0_2] : memref<1000x73xbf16, #tpu.memory_space<vmem>>, vector<1000x73xbf16>
    %c0_3 = arith.constant 0 : index
    %c0_4 = arith.constant 0 : index
    %2 = vector.load %arg6[%c0_3, %c0_4] : memref<1x73xf32, #tpu.memory_space<vmem>>, vector<1x73xf32>
    %c0_5 = arith.constant 0 : index
    %c0_6 = arith.constant 0 : index
    %3 = vector.load %arg7[%c0_5, %c0_6] : memref<73x73xbf16, #tpu.memory_space<vmem>>, vector<73x73xbf16>
    %c0_7 = arith.constant 0 : index
    %c0_8 = arith.constant 0 : index
    %4 = vector.load %arg8[%c0_7, %c0_8] : memref<1x73xf32, #tpu.memory_space<vmem>>, vector<1x73xf32>
    %cst = arith.constant 0.000000e+00 : f32
    %5 = vector.broadcast %cst : f32 to vector<8x73xf32>
    %c0_9 = arith.constant 0 : index
    %c0_10 = arith.constant 0 : index
    %c0_11 = arith.constant 0 : index
    %6 = vector.load %arg2[%c0_9, %c0_10, %c0_11] : memref<10x8x1000xbf16, #tpu.memory_space<vmem>>, vector<1x8x1000xbf16>
    %7 = vector.shape_cast %6 : vector<1x8x1000xbf16> to vector<8x1000xbf16>
    %cst_12 = arith.constant dense<0.000000e+00> : vector<8x73xf32>
    %8 = tpu.matmul %7, %1, %cst_12 {dimension_numbers = #tpu.dot_dimension_numbers<[1], [0], [0], [1], [0, 0, 1, 1], [], []>} : vector<8x1000xbf16>, vector<1000x73xbf16>, vector<8x73xf32> -> vector<8x73xf32>
    %9 = vector.broadcast %2 : vector<1x73xf32> to vector<8x73xf32>
    %10 = arith.addf %8, %9 : vector<8x73xf32>
    %cst_13 = arith.constant 0.00999999977 : f32
    %11 = vector.broadcast %cst_13 : f32 to vector<8x73xf32>
    %12 = arith.mulf %11, %10 : vector<8x73xf32>
    %13 = arith.maximumf %10, %12 : vector<8x73xf32>
    %14 = arith.truncf %13 : vector<8x73xf32> to vector<8x73xbf16>
    %cst_14 = arith.constant dense<0.000000e+00> : vector<8x73xf32>
    %15 = tpu.matmul %14, %3, %cst_14 {dimension_numbers = #tpu.dot_dimension_numbers<[1], [0], [0], [1], [0, 0, 1, 1], [], []>} : vector<8x73xbf16>, vector<73x73xbf16>, vector<8x73xf32> -> vector<8x73xf32>
    %16 = vector.broadcast %4 : vector<1x73xf32> to vector<8x73xf32>
    %17 = arith.addf %15, %16 : vector<8x73xf32>
    %cst_15 = arith.constant 0.00999999977 : f32
    %18 = vector.broadcast %cst_15 : f32 to vector<8x73xf32>
    %19 = arith.mulf %18, %17 : vector<8x73xf32>
    %20 = arith.maximumf %17, %19 : vector<8x73xf32>
    %21 = vector.extract_strided_slice %0 {offsets = [0, 0], sizes = [8, 1], strides = [1, 1]} : vector<8x10xf32> to vector<8x1xf32>
    %cst_16 = arith.constant 0.000000e+00 : f32
    %22 = vector.broadcast %cst_16 : f32 to vector<8x1xf32>
    %23 = arith.cmpf one, %21, %22 : vector<8x1xf32>
    %cst_17 = arith.constant 0.000000e+00 : f32
    %24 = vector.shape_cast %23 : vector<8x1xi1> to vector<8x1xi1>
    %25 = vector.broadcast %24 : vector<8x1xi1> to vector<8x73xi1>
    %26 = vector.broadcast %cst_17 : f32 to vector<8x73xf32>
    %27 = arith.select %25, %20, %26 : vector<8x73xi1>, vector<8x73xf32>
    %28 = arith.addf %5, %27 : vector<8x73xf32>
    %c1 = arith.constant 1 : index
    %c0_18 = arith.constant 0 : index
    %c0_19 = arith.constant 0 : index
    %29 = vector.load %arg2[%c1, %c0_18, %c0_19] : memref<10x8x1000xbf16, #tpu.memory_space<vmem>>, vector<1x8x1000xbf16>
    %30 = vector.shape_cast %29 : vector<1x8x1000xbf16> to vector<8x1000xbf16>
    %cst_20 = arith.constant dense<0.000000e+00> : vector<8x73xf32>
    %31 = tpu.matmul %30, %1, %cst_20 {dimension_numbers = #tpu.dot_dimension_numbers<[1], [0], [0], [1], [0, 0, 1, 1], [], []>} : vector<8x1000xbf16>, vector<1000x73xbf16>, vector<8x73xf32> -> vector<8x73xf32>
    %32 = vector.broadcast %2 : vector<1x73xf32> to vector<8x73xf32>
    %33 = arith.addf %31, %32 : vector<8x73xf32>
    %cst_21 = arith.constant 0.00999999977 : f32
    %34 = vector.broadcast %cst_21 : f32 to vector<8x73xf32>
    %35 = arith.mulf %34, %33 : vector<8x73xf32>
    %36 = arith.maximumf %33, %35 : vector<8x73xf32>
    %37 = arith.truncf %36 : vector<8x73xf32> to vector<8x73xbf16>
    %cst_22 = arith.constant dense<0.000000e+00> : vector<8x73xf32>
    %38 = tpu.matmul %37, %3, %cst_22 {dimension_numbers = #tpu.dot_dimension_numbers<[1], [0], [0], [1], [0, 0, 1, 1], [], []>} : vector<8x73xbf16>, vector<73x73xbf16>, vector<8x73xf32> -> vector<8x73xf32>
    %39 = vector.broadcast %4 : vector<1x73xf32> to vector<8x73xf32>
    %40 = arith.addf %38, %39 : vector<8x73xf32>
    %cst_23 = arith.constant 0.00999999977 : f32
    %41 = vector.broadcast %cst_23 : f32 to vector<8x73xf32>
    %42 = arith.mulf %41, %40 : vector<8x73xf32>
    %43 = arith.maximumf %40, %42 : vector<8x73xf32>
    %44 = vector.extract_strided_slice %0 {offsets = [0, 1], sizes = [8, 1], strides = [1, 1]} : vector<8x10xf32> to vector<8x1xf32>
    %cst_24 = arith.constant 0.000000e+00 : f32
    %45 = vector.broadcast %cst_24 : f32 to vector<8x1xf32>
    %46 = arith.cmpf one, %44, %45 : vector<8x1xf32>
    %cst_25 = arith.constant 0.000000e+00 : f32
    %47 = vector.shape_cast %46 : vector<8x1xi1> to vector<8x1xi1>
    %48 = vector.broadcast %47 : vector<8x1xi1> to vector<8x73xi1>
    %49 = vector.broadcast %cst_25 : f32 to vector<8x73xf32>
    %50 = arith.select %48, %43, %49 : vector<8x73xi1>, vector<8x73xf32>
    %51 = arith.addf %28, %50 : vector<8x73xf32>
    %c2 = arith.constant 2 : index
    %c0_26 = arith.constant 0 : index
    %c0_27 = arith.constant 0 : index
    %52 = vector.load %arg2[%c2, %c0_26, %c0_27] : memref<10x8x1000xbf16, #tpu.memory_space<vmem>>, vector<1x8x1000xbf16>
    %53 = vector.shape_cast %52 : vector<1x8x1000xbf16> to vector<8x1000xbf16>
    %cst_28 = arith.constant dense<0.000000e+00> : vector<8x73xf32>
    %54 = tpu.matmul %53, %1, %cst_28 {dimension_numbers = #tpu.dot_dimension_numbers<[1], [0], [0], [1], [0, 0, 1, 1], [], []>} : vector<8x1000xbf16>, vector<1000x73xbf16>, vector<8x73xf32> -> vector<8x73xf32>
    %55 = vector.broadcast %2 : vector<1x73xf32> to vector<8x73xf32>
    %56 = arith.addf %54, %55 : vector<8x73xf32>
    %cst_29 = arith.constant 0.00999999977 : f32
    %57 = vector.broadcast %cst_29 : f32 to vector<8x73xf32>
    %58 = arith.mulf %57, %56 : vector<8x73xf32>
    %59 = arith.maximumf %56, %58 : vector<8x73xf32>
    %60 = arith.truncf %59 : vector<8x73xf32> to vector<8x73xbf16>
    %cst_30 = arith.constant dense<0.000000e+00> : vector<8x73xf32>
    %61 = tpu.matmul %60, %3, %cst_30 {dimension_numbers = #tpu.dot_dimension_numbers<[1], [0], [0], [1], [0, 0, 1, 1], [], []>} : vector<8x73xbf16>, vector<73x73xbf16>, vector<8x73xf32> -> vector<8x73xf32>
    %62 = vector.broadcast %4 : vector<1x73xf32> to vector<8x73xf32>
    %63 = arith.addf %61, %62 : vector<8x73xf32>
    %cst_31 = arith.constant 0.00999999977 : f32
    %64 = vector.broadcast %cst_31 : f32 to vector<8x73xf32>
    %65 = arith.mulf %64, %63 : vector<8x73xf32>
    %66 = arith.maximumf %63, %65 : vector<8x73xf32>
    %67 = vector.extract_strided_slice %0 {offsets = [0, 2], sizes = [8, 1], strides = [1, 1]} : vector<8x10xf32> to vector<8x1xf32>
    %cst_32 = arith.constant 0.000000e+00 : f32
    %68 = vector.broadcast %cst_32 : f32 to vector<8x1xf32>
    %69 = arith.cmpf one, %67, %68 : vector<8x1xf32>
    %cst_33 = arith.constant 0.000000e+00 : f32
    %70 = vector.shape_cast %69 : vector<8x1xi1> to vector<8x1xi1>
    %71 = vector.broadcast %70 : vector<8x1xi1> to vector<8x73xi1>
    %72 = vector.broadcast %cst_33 : f32 to vector<8x73xf32>
    %73 = arith.select %71, %66, %72 : vector<8x73xi1>, vector<8x73xf32>
    %74 = arith.addf %51, %73 : vector<8x73xf32>
    %c3 = arith.constant 3 : index
    %c0_34 = arith.constant 0 : index
    %c0_35 = arith.constant 0 : index
    %75 = vector.load %arg2[%c3, %c0_34, %c0_35] : memref<10x8x1000xbf16, #tpu.memory_space<vmem>>, vector<1x8x1000xbf16>
    %76 = vector.shape_cast %75 : vector<1x8x1000xbf16> to vector<8x1000xbf16>
    %cst_36 = arith.constant dense<0.000000e+00> : vector<8x73xf32>
    %77 = tpu.matmul %76, %1, %cst_36 {dimension_numbers = #tpu.dot_dimension_numbers<[1], [0], [0], [1], [0, 0, 1, 1], [], []>} : vector<8x1000xbf16>, vector<1000x73xbf16>, vector<8x73xf32> -> vector<8x73xf32>
    %78 = vector.broadcast %2 : vector<1x73xf32> to vector<8x73xf32>
    %79 = arith.addf %77, %78 : vector<8x73xf32>
    %cst_37 = arith.constant 0.00999999977 : f32
    %80 = vector.broadcast %cst_37 : f32 to vector<8x73xf32>
    %81 = arith.mulf %80, %79 : vector<8x73xf32>
    %82 = arith.maximumf %79, %81 : vector<8x73xf32>
    %83 = arith.truncf %82 : vector<8x73xf32> to vector<8x73xbf16>
    %cst_38 = arith.constant dense<0.000000e+00> : vector<8x73xf32>
    %84 = tpu.matmul %83, %3, %cst_38 {dimension_numbers = #tpu.dot_dimension_numbers<[1], [0], [0], [1], [0, 0, 1, 1], [], []>} : vector<8x73xbf16>, vector<73x73xbf16>, vector<8x73xf32> -> vector<8x73xf32>
    %85 = vector.broadcast %4 : vector<1x73xf32> to vector<8x73xf32>
    %86 = arith.addf %84, %85 : vector<8x73xf32>
    %cst_39 = arith.constant 0.00999999977 : f32
    %87 = vector.broadcast %cst_39 : f32 to vector<8x73xf32>
    %88 = arith.mulf %87, %86 : vector<8x73xf32>
    %89 = arith.maximumf %86, %88 : vector<8x73xf32>
    %90 = vector.extract_strided_slice %0 {offsets = [0, 3], sizes = [8, 1], strides = [1, 1]} : vector<8x10xf32> to vector<8x1xf32>
    %cst_40 = arith.constant 0.000000e+00 : f32
    %91 = vector.broadcast %cst_40 : f32 to vector<8x1xf32>
    %92 = arith.cmpf one, %90, %91 : vector<8x1xf32>
    %cst_41 = arith.constant 0.000000e+00 : f32
    %93 = vector.shape_cast %92 : vector<8x1xi1> to vector<8x1xi1>
    %94 = vector.broadcast %93 : vector<8x1xi1> to vector<8x73xi1>
    %95 = vector.broadcast %cst_41 : f32 to vector<8x73xf32>
    %96 = arith.select %94, %89, %95 : vector<8x73xi1>, vector<8x73xf32>
    %97 = arith.addf %74, %96 : vector<8x73xf32>
    %c4 = arith.constant 4 : index
    %c0_42 = arith.constant 0 : index
    %c0_43 = arith.constant 0 : index
    %98 = vector.load %arg2[%c4, %c0_42, %c0_43] : memref<10x8x1000xbf16, #tpu.memory_space<vmem>>, vector<1x8x1000xbf16>
    %99 = vector.shape_cast %98 : vector<1x8x1000xbf16> to vector<8x1000xbf16>
    %cst_44 = arith.constant dense<0.000000e+00> : vector<8x73xf32>
    %100 = tpu.matmul %99, %1, %cst_44 {dimension_numbers = #tpu.dot_dimension_numbers<[1], [0], [0], [1], [0, 0, 1, 1], [], []>} : vector<8x1000xbf16>, vector<1000x73xbf16>, vector<8x73xf32> -> vector<8x73xf32>
    %101 = vector.broadcast %2 : vector<1x73xf32> to vector<8x73xf32>
    %102 = arith.addf %100, %101 : vector<8x73xf32>
    %cst_45 = arith.constant 0.00999999977 : f32
    %103 = vector.broadcast %cst_45 : f32 to vector<8x73xf32>
    %104 = arith.mulf %103, %102 : vector<8x73xf32>
    %105 = arith.maximumf %102, %104 : vector<8x73xf32>
    %106 = arith.truncf %105 : vector<8x73xf32> to vector<8x73xbf16>
    %cst_46 = arith.constant dense<0.000000e+00> : vector<8x73xf32>
    %107 = tpu.matmul %106, %3, %cst_46 {dimension_numbers = #tpu.dot_dimension_numbers<[1], [0], [0], [1], [0, 0, 1, 1], [], []>} : vector<8x73xbf16>, vector<73x73xbf16>, vector<8x73xf32> -> vector<8x73xf32>
    %108 = vector.broadcast %4 : vector<1x73xf32> to vector<8x73xf32>
    %109 = arith.addf %107, %108 : vector<8x73xf32>
    %cst_47 = arith.constant 0.00999999977 : f32
    %110 = vector.broadcast %cst_47 : f32 to vector<8x73xf32>
    %111 = arith.mulf %110, %109 : vector<8x73xf32>
    %112 = arith.maximumf %109, %111 : vector<8x73xf32>
    %113 = vector.extract_strided_slice %0 {offsets = [0, 4], sizes = [8, 1], strides = [1, 1]} : vector<8x10xf32> to vector<8x1xf32>
    %cst_48 = arith.constant 0.000000e+00 : f32
    %114 = vector.broadcast %cst_48 : f32 to vector<8x1xf32>
    %115 = arith.cmpf one, %113, %114 : vector<8x1xf32>
    %cst_49 = arith.constant 0.000000e+00 : f32
    %116 = vector.shape_cast %115 : vector<8x1xi1> to vector<8x1xi1>
    %117 = vector.broadcast %116 : vector<8x1xi1> to vector<8x73xi1>
    %118 = vector.broadcast %cst_49 : f32 to vector<8x73xf32>
    %119 = arith.select %117, %112, %118 : vector<8x73xi1>, vector<8x73xf32>
    %120 = arith.addf %97, %119 : vector<8x73xf32>
    %c5 = arith.constant 5 : index
    %c0_50 = arith.constant 0 : index
    %c0_51 = arith.constant 0 : index
    %121 = vector.load %arg2[%c5, %c0_50, %c0_51] : memref<10x8x1000xbf16, #tpu.memory_space<vmem>>, vector<1x8x1000xbf16>
    %122 = vector.shape_cast %121 : vector<1x8x1000xbf16> to vector<8x1000xbf16>
    %cst_52 = arith.constant dense<0.000000e+00> : vector<8x73xf32>
    %123 = tpu.matmul %122, %1, %cst_52 {dimension_numbers = #tpu.dot_dimension_numbers<[1], [0], [0], [1], [0, 0, 1, 1], [], []>} : vector<8x1000xbf16>, vector<1000x73xbf16>, vector<8x73xf32> -> vector<8x73xf32>
    %124 = vector.broadcast %2 : vector<1x73xf32> to vector<8x73xf32>
    %125 = arith.addf %123, %124 : vector<8x73xf32>
    %cst_53 = arith.constant 0.00999999977 : f32
    %126 = vector.broadcast %cst_53 : f32 to vector<8x73xf32>
    %127 = arith.mulf %126, %125 : vector<8x73xf32>
    %128 = arith.maximumf %125, %127 : vector<8x73xf32>
    %129 = arith.truncf %128 : vector<8x73xf32> to vector<8x73xbf16>
    %cst_54 = arith.constant dense<0.000000e+00> : vector<8x73xf32>
    %130 = tpu.matmul %129, %3, %cst_54 {dimension_numbers = #tpu.dot_dimension_numbers<[1], [0], [0], [1], [0, 0, 1, 1], [], []>} : vector<8x73xbf16>, vector<73x73xbf16>, vector<8x73xf32> -> vector<8x73xf32>
    %131 = vector.broadcast %4 : vector<1x73xf32> to vector<8x73xf32>
    %132 = arith.addf %130, %131 : vector<8x73xf32>
    %cst_55 = arith.constant 0.00999999977 : f32
    %133 = vector.broadcast %cst_55 : f32 to vector<8x73xf32>
    %134 = arith.mulf %133, %132 : vector<8x73xf32>
    %135 = arith.maximumf %132, %134 : vector<8x73xf32>
    %136 = vector.extract_strided_slice %0 {offsets = [0, 5], sizes = [8, 1], strides = [1, 1]} : vector<8x10xf32> to vector<8x1xf32>
    %cst_56 = arith.constant 0.000000e+00 : f32
    %137 = vector.broadcast %cst_56 : f32 to vector<8x1xf32>
    %138 = arith.cmpf one, %136, %137 : vector<8x1xf32>
    %cst_57 = arith.constant 0.000000e+00 : f32
    %139 = vector.shape_cast %138 : vector<8x1xi1> to vector<8x1xi1>
    %140 = vector.broadcast %139 : vector<8x1xi1> to vector<8x73xi1>
    %141 = vector.broadcast %cst_57 : f32 to vector<8x73xf32>
    %142 = arith.select %140, %135, %141 : vector<8x73xi1>, vector<8x73xf32>
    %143 = arith.addf %120, %142 : vector<8x73xf32>
    %c6 = arith.constant 6 : index
    %c0_58 = arith.constant 0 : index
    %c0_59 = arith.constant 0 : index
    %144 = vector.load %arg2[%c6, %c0_58, %c0_59] : memref<10x8x1000xbf16, #tpu.memory_space<vmem>>, vector<1x8x1000xbf16>
    %145 = vector.shape_cast %144 : vector<1x8x1000xbf16> to vector<8x1000xbf16>
    %cst_60 = arith.constant dense<0.000000e+00> : vector<8x73xf32>
    %146 = tpu.matmul %145, %1, %cst_60 {dimension_numbers = #tpu.dot_dimension_numbers<[1], [0], [0], [1], [0, 0, 1, 1], [], []>} : vector<8x1000xbf16>, vector<1000x73xbf16>, vector<8x73xf32> -> vector<8x73xf32>
    %147 = vector.broadcast %2 : vector<1x73xf32> to vector<8x73xf32>
    %148 = arith.addf %146, %147 : vector<8x73xf32>
    %cst_61 = arith.constant 0.00999999977 : f32
    %149 = vector.broadcast %cst_61 : f32 to vector<8x73xf32>
    %150 = arith.mulf %149, %148 : vector<8x73xf32>
    %151 = arith.maximumf %148, %150 : vector<8x73xf32>
    %152 = arith.truncf %151 : vector<8x73xf32> to vector<8x73xbf16>
    %cst_62 = arith.constant dense<0.000000e+00> : vector<8x73xf32>
    %153 = tpu.matmul %152, %3, %cst_62 {dimension_numbers = #tpu.dot_dimension_numbers<[1], [0], [0], [1], [0, 0, 1, 1], [], []>} : vector<8x73xbf16>, vector<73x73xbf16>, vector<8x73xf32> -> vector<8x73xf32>
    %154 = vector.broadcast %4 : vector<1x73xf32> to vector<8x73xf32>
    %155 = arith.addf %153, %154 : vector<8x73xf32>
    %cst_63 = arith.constant 0.00999999977 : f32
    %156 = vector.broadcast %cst_63 : f32 to vector<8x73xf32>
    %157 = arith.mulf %156, %155 : vector<8x73xf32>
    %158 = arith.maximumf %155, %157 : vector<8x73xf32>
    %159 = vector.extract_strided_slice %0 {offsets = [0, 6], sizes = [8, 1], strides = [1, 1]} : vector<8x10xf32> to vector<8x1xf32>
    %cst_64 = arith.constant 0.000000e+00 : f32
    %160 = vector.broadcast %cst_64 : f32 to vector<8x1xf32>
    %161 = arith.cmpf one, %159, %160 : vector<8x1xf32>
    %cst_65 = arith.constant 0.000000e+00 : f32
    %162 = vector.shape_cast %161 : vector<8x1xi1> to vector<8x1xi1>
    %163 = vector.broadcast %162 : vector<8x1xi1> to vector<8x73xi1>
    %164 = vector.broadcast %cst_65 : f32 to vector<8x73xf32>
    %165 = arith.select %163, %158, %164 : vector<8x73xi1>, vector<8x73xf32>
    %166 = arith.addf %143, %165 : vector<8x73xf32>
    %c7 = arith.constant 7 : index
    %c0_66 = arith.constant 0 : index
    %c0_67 = arith.constant 0 : index
    %167 = vector.load %arg2[%c7, %c0_66, %c0_67] : memref<10x8x1000xbf16, #tpu.memory_space<vmem>>, vector<1x8x1000xbf16>
    %168 = vector.shape_cast %167 : vector<1x8x1000xbf16> to vector<8x1000xbf16>
    %cst_68 = arith.constant dense<0.000000e+00> : vector<8x73xf32>
    %169 = tpu.matmul %168, %1, %cst_68 {dimension_numbers = #tpu.dot_dimension_numbers<[1], [0], [0], [1], [0, 0, 1, 1], [], []>} : vector<8x1000xbf16>, vector<1000x73xbf16>, vector<8x73xf32> -> vector<8x73xf32>
    %170 = vector.broadcast %2 : vector<1x73xf32> to vector<8x73xf32>
    %171 = arith.addf %169, %170 : vector<8x73xf32>
    %cst_69 = arith.constant 0.00999999977 : f32
    %172 = vector.broadcast %cst_69 : f32 to vector<8x73xf32>
    %173 = arith.mulf %172, %171 : vector<8x73xf32>
    %174 = arith.maximumf %171, %173 : vector<8x73xf32>
    %175 = arith.truncf %174 : vector<8x73xf32> to vector<8x73xbf16>
    %cst_70 = arith.constant dense<0.000000e+00> : vector<8x73xf32>
    %176 = tpu.matmul %175, %3, %cst_70 {dimension_numbers = #tpu.dot_dimension_numbers<[1], [0], [0], [1], [0, 0, 1, 1], [], []>} : vector<8x73xbf16>, vector<73x73xbf16>, vector<8x73xf32> -> vector<8x73xf32>
    %177 = vector.broadcast %4 : vector<1x73xf32> to vector<8x73xf32>
    %178 = arith.addf %176, %177 : vector<8x73xf32>
    %cst_71 = arith.constant 0.00999999977 : f32
    %179 = vector.broadcast %cst_71 : f32 to vector<8x73xf32>
    %180 = arith.mulf %179, %178 : vector<8x73xf32>
    %181 = arith.maximumf %178, %180 : vector<8x73xf32>
    %182 = vector.extract_strided_slice %0 {offsets = [0, 7], sizes = [8, 1], strides = [1, 1]} : vector<8x10xf32> to vector<8x1xf32>
    %cst_72 = arith.constant 0.000000e+00 : f32
    %183 = vector.broadcast %cst_72 : f32 to vector<8x1xf32>
    %184 = arith.cmpf one, %182, %183 : vector<8x1xf32>
    %cst_73 = arith.constant 0.000000e+00 : f32
    %185 = vector.shape_cast %184 : vector<8x1xi1> to vector<8x1xi1>
    %186 = vector.broadcast %185 : vector<8x1xi1> to vector<8x73xi1>
    %187 = vector.broadcast %cst_73 : f32 to vector<8x73xf32>
    %188 = arith.select %186, %181, %187 : vector<8x73xi1>, vector<8x73xf32>
    %189 = arith.addf %166, %188 : vector<8x73xf32>
    %c8 = arith.constant 8 : index
    %c0_74 = arith.constant 0 : index
    %c0_75 = arith.constant 0 : index
    %190 = vector.load %arg2[%c8, %c0_74, %c0_75] : memref<10x8x1000xbf16, #tpu.memory_space<vmem>>, vector<1x8x1000xbf16>
    %191 = vector.shape_cast %190 : vector<1x8x1000xbf16> to vector<8x1000xbf16>
    %cst_76 = arith.constant dense<0.000000e+00> : vector<8x73xf32>
    %192 = tpu.matmul %191, %1, %cst_76 {dimension_numbers = #tpu.dot_dimension_numbers<[1], [0], [0], [1], [0, 0, 1, 1], [], []>} : vector<8x1000xbf16>, vector<1000x73xbf16>, vector<8x73xf32> -> vector<8x73xf32>
    %193 = vector.broadcast %2 : vector<1x73xf32> to vector<8x73xf32>
    %194 = arith.addf %192, %193 : vector<8x73xf32>
    %cst_77 = arith.constant 0.00999999977 : f32
    %195 = vector.broadcast %cst_77 : f32 to vector<8x73xf32>
    %196 = arith.mulf %195, %194 : vector<8x73xf32>
    %197 = arith.maximumf %194, %196 : vector<8x73xf32>
    %198 = arith.truncf %197 : vector<8x73xf32> to vector<8x73xbf16>
    %cst_78 = arith.constant dense<0.000000e+00> : vector<8x73xf32>
    %199 = tpu.matmul %198, %3, %cst_78 {dimension_numbers = #tpu.dot_dimension_numbers<[1], [0], [0], [1], [0, 0, 1, 1], [], []>} : vector<8x73xbf16>, vector<73x73xbf16>, vector<8x73xf32> -> vector<8x73xf32>
    %200 = vector.broadcast %4 : vector<1x73xf32> to vector<8x73xf32>
    %201 = arith.addf %199, %200 : vector<8x73xf32>
    %cst_79 = arith.constant 0.00999999977 : f32
    %202 = vector.broadcast %cst_79 : f32 to vector<8x73xf32>
    %203 = arith.mulf %202, %201 : vector<8x73xf32>
    %204 = arith.maximumf %201, %203 : vector<8x73xf32>
    %205 = vector.extract_strided_slice %0 {offsets = [0, 8], sizes = [8, 1], strides = [1, 1]} : vector<8x10xf32> to vector<8x1xf32>
    %cst_80 = arith.constant 0.000000e+00 : f32
    %206 = vector.broadcast %cst_80 : f32 to vector<8x1xf32>
    %207 = arith.cmpf one, %205, %206 : vector<8x1xf32>
    %cst_81 = arith.constant 0.000000e+00 : f32
    %208 = vector.shape_cast %207 : vector<8x1xi1> to vector<8x1xi1>
    %209 = vector.broadcast %208 : vector<8x1xi1> to vector<8x73xi1>
    %210 = vector.broadcast %cst_81 : f32 to vector<8x73xf32>
    %211 = arith.select %209, %204, %210 : vector<8x73xi1>, vector<8x73xf32>
    %212 = arith.addf %189, %211 : vector<8x73xf32>
    %c9 = arith.constant 9 : index
    %c0_82 = arith.constant 0 : index
    %c0_83 = arith.constant 0 : index
    %213 = vector.load %arg2[%c9, %c0_82, %c0_83] : memref<10x8x1000xbf16, #tpu.memory_space<vmem>>, vector<1x8x1000xbf16>
    %214 = vector.shape_cast %213 : vector<1x8x1000xbf16> to vector<8x1000xbf16>
    %cst_84 = arith.constant dense<0.000000e+00> : vector<8x73xf32>
    %215 = tpu.matmul %214, %1, %cst_84 {dimension_numbers = #tpu.dot_dimension_numbers<[1], [0], [0], [1], [0, 0, 1, 1], [], []>} : vector<8x1000xbf16>, vector<1000x73xbf16>, vector<8x73xf32> -> vector<8x73xf32>
    %216 = vector.broadcast %2 : vector<1x73xf32> to vector<8x73xf32>
    %217 = arith.addf %215, %216 : vector<8x73xf32>
    %cst_85 = arith.constant 0.00999999977 : f32
    %218 = vector.broadcast %cst_85 : f32 to vector<8x73xf32>
    %219 = arith.mulf %218, %217 : vector<8x73xf32>
    %220 = arith.maximumf %217, %219 : vector<8x73xf32>
    %221 = arith.truncf %220 : vector<8x73xf32> to vector<8x73xbf16>
    %cst_86 = arith.constant dense<0.000000e+00> : vector<8x73xf32>
    %222 = tpu.matmul %221, %3, %cst_86 {dimension_numbers = #tpu.dot_dimension_numbers<[1], [0], [0], [1], [0, 0, 1, 1], [], []>} : vector<8x73xbf16>, vector<73x73xbf16>, vector<8x73xf32> -> vector<8x73xf32>
    %223 = vector.broadcast %4 : vector<1x73xf32> to vector<8x73xf32>
    %224 = arith.addf %222, %223 : vector<8x73xf32>
    %cst_87 = arith.constant 0.00999999977 : f32
    %225 = vector.broadcast %cst_87 : f32 to vector<8x73xf32>
    %226 = arith.mulf %225, %224 : vector<8x73xf32>
    %227 = arith.maximumf %224, %226 : vector<8x73xf32>
    %228 = vector.extract_strided_slice %0 {offsets = [0, 9], sizes = [8, 1], strides = [1, 1]} : vector<8x10xf32> to vector<8x1xf32>
    %cst_88 = arith.constant 0.000000e+00 : f32
    %229 = vector.broadcast %cst_88 : f32 to vector<8x1xf32>
    %230 = arith.cmpf one, %228, %229 : vector<8x1xf32>
    %cst_89 = arith.constant 0.000000e+00 : f32
    %231 = vector.shape_cast %230 : vector<8x1xi1> to vector<8x1xi1>
    %232 = vector.broadcast %231 : vector<8x1xi1> to vector<8x73xi1>
    %233 = vector.broadcast %cst_89 : f32 to vector<8x73xf32>
    %234 = arith.select %232, %227, %233 : vector<8x73xi1>, vector<8x73xf32>
    %235 = arith.addf %212, %234 : vector<8x73xf32>
    %cst_90 = arith.constant dense<0.000000e+00> : vector<8xf32>
    %236 = vector.multi_reduction <add>, %0, %cst_90 [1] : vector<8x10xf32> to vector<8xf32>
    %237 = vector.shape_cast %236 : vector<8xf32> to vector<8x1xf32>
    %238 = tpu.reciprocal %237 {approx = true} : vector<8x1xf32> -> vector<8x1xf32>
    %239 = vector.broadcast %238 : vector<8x1xf32> to vector<8x73xf32>
    %240 = arith.mulf %235, %239 : vector<8x73xf32>
    %241 = tpu.iota {dimensions = array<i32: 1>} : vector<8x100xi32>
    %c0_91 = arith.constant 0 : index
    %c0_92 = arith.constant 0 : index
    %242 = vector.load %arg1[%c0_91, %c0_92] : memref<8x3xi32, #tpu.memory_space<vmem>>, vector<8x1xi32>
    %243 = vector.broadcast %242 : vector<8x1xi32> to vector<8x100xi32>
    %244 = arith.cmpi eq, %241, %243 : vector<8x100xi32>
    %c0_93 = arith.constant 0 : index
    %c1_94 = arith.constant 1 : index
    %245 = vector.load %arg1[%c0_93, %c1_94] : memref<8x3xi32, #tpu.memory_space<vmem>>, vector<8x1xi32>
    %246 = vector.broadcast %245 : vector<8x1xi32> to vector<8x100xi32>
    %247 = arith.cmpi eq, %241, %246 : vector<8x100xi32>
    %248 = arith.ori %244, %247 : vector<8x100xi1>
    %c0_95 = arith.constant 0 : index
    %c2_96 = arith.constant 2 : index
    %249 = vector.load %arg1[%c0_95, %c2_96] : memref<8x3xi32, #tpu.memory_space<vmem>>, vector<8x1xi32>
    %250 = vector.broadcast %249 : vector<8x1xi32> to vector<8x100xi32>
    %251 = arith.cmpi eq, %241, %250 : vector<8x100xi32>
    %252 = arith.ori %248, %251 : vector<8x100xi1>
    %253 = arith.extui %252 : vector<8x100xi1> to vector<8x100xi32>
    %254 = arith.sitofp %253 : vector<8x100xi32> to vector<8x100xf32>
    %c0_97 = arith.constant 0 : index
    %c0_98 = arith.constant 0 : index
    %255 = vector.load %arg11[%c0_97, %c0_98] : memref<100x265xf32, #tpu.memory_space<vmem>>, vector<100x265xf32>
    %cst_99 = arith.constant dense<0.000000e+00> : vector<8x265xf32>
    %256 = tpu.matmul %254, %255, %cst_99 {dimension_numbers = #tpu.dot_dimension_numbers<[1], [0], [0], [1], [0, 0, 1, 1], [], []>} : vector<8x100xf32>, vector<100x265xf32>, vector<8x265xf32> -> vector<8x265xf32>
    %c0_100 = arith.constant 0 : index
    %c0_101 = arith.constant 0 : index
    %257 = vector.load %arg4[%c0_100, %c0_101] : memref<8x1000xbf16, #tpu.memory_space<vmem>>, vector<8x1000xbf16>
    %c0_102 = arith.constant 0 : index
    %c0_103 = arith.constant 0 : index
    %258 = vector.load %arg9[%c0_102, %c0_103] : memref<1000x64xbf16, #tpu.memory_space<vmem>>, vector<1000x64xbf16>
    %cst_104 = arith.constant dense<0.000000e+00> : vector<8x64xf32>
    %259 = tpu.matmul %257, %258, %cst_104 {dimension_numbers = #tpu.dot_dimension_numbers<[1], [0], [0], [1], [0, 0, 1, 1], [], []>} : vector<8x1000xbf16>, vector<1000x64xbf16>, vector<8x64xf32> -> vector<8x64xf32>
    %c0_105 = arith.constant 0 : index
    %c0_106 = arith.constant 0 : index
    %260 = vector.load %arg10[%c0_105, %c0_106] : memref<1x64xf32, #tpu.memory_space<vmem>>, vector<1x64xf32>
    %261 = vector.broadcast %260 : vector<1x64xf32> to vector<8x64xf32>
    %262 = arith.addf %259, %261 : vector<8x64xf32>
    %263 = arith.truncf %262 : vector<8x64xf32> to vector<8x64xbf16>
    %c0_107 = arith.constant 0 : index
    %c0_108 = arith.constant 0 : index
    %264 = vector.load %arg13[%c0_107, %c0_108] : memref<64x265xbf16, #tpu.memory_space<vmem>>, vector<64x265xbf16>
    %cst_109 = arith.constant dense<0.000000e+00> : vector<8x265xf32>
    %265 = tpu.matmul %263, %264, %cst_109 {dimension_numbers = #tpu.dot_dimension_numbers<[1], [0], [0], [1], [0, 0, 1, 1], [], []>} : vector<8x64xbf16>, vector<64x265xbf16>, vector<8x265xf32> -> vector<8x265xf32>
    %266 = arith.addf %256, %265 : vector<8x265xf32>
    %267 = arith.truncf %240 : vector<8x73xf32> to vector<8x73xbf16>
    %c0_110 = arith.constant 0 : index
    %c0_111 = arith.constant 0 : index
    %268 = vector.load %arg12[%c0_110, %c0_111] : memref<73x265xbf16, #tpu.memory_space<vmem>>, vector<73x265xbf16>
    %cst_112 = arith.constant dense<0.000000e+00> : vector<8x265xf32>
    %269 = tpu.matmul %267, %268, %cst_112 {dimension_numbers = #tpu.dot_dimension_numbers<[1], [0], [0], [1], [0, 0, 1, 1], [], []>} : vector<8x73xbf16>, vector<73x265xbf16>, vector<8x265xf32> -> vector<8x265xf32>
    %270 = arith.addf %266, %269 : vector<8x265xf32>
    %c0_113 = arith.constant 0 : index
    %c0_114 = arith.constant 0 : index
    %271 = vector.load %arg14[%c0_113, %c0_114] : memref<1x265xf32, #tpu.memory_space<vmem>>, vector<1x265xf32>
    %272 = vector.broadcast %271 : vector<1x265xf32> to vector<8x265xf32>
    %273 = arith.addf %270, %272 : vector<8x265xf32>
    %cst_115 = arith.constant 0.00999999977 : f32
    %274 = vector.broadcast %cst_115 : f32 to vector<8x265xf32>
    %275 = arith.mulf %274, %273 : vector<8x265xf32>
    %276 = arith.maximumf %273, %275 : vector<8x265xf32>
    %c0_116 = arith.constant 0 : index
    %c0_117 = arith.constant 0 : index
    %277 = vector.load %arg15[%c0_116, %c0_117] : memref<8x265xf32, #tpu.memory_space<vmem>>, vector<8x265xf32>
    tpu.vector_store %arg15[%c0_116, %c0_117], %276 {strides = array<i32>} : memref<8x265xf32, #tpu.memory_space<vmem>>, vector<8x265xf32>,
    return
  }
  func.func @transform_0(%arg0: i32) -> (i32, i32) {
    %c0_i32 = arith.constant 0 : i32
    %c0_i32_0 = arith.constant 0 : i32
    return %arg0, %c0_i32 : i32, i32
  }
  func.func @transform_1(%arg0: i32) -> (i32, i32, i32) {
    %c0_i32 = arith.constant 0 : i32
    %c0_i32_0 = arith.constant 0 : i32
    %c0_i32_1 = arith.constant 0 : i32
    return %c0_i32, %arg0, %c0_i32_0 : i32, i32, i32
  }
  func.func @transform_2(%arg0: i32) -> (i32, i32) {
    %c0_i32 = arith.constant 0 : i32
    %c0_i32_0 = arith.constant 0 : i32
    return %arg0, %c0_i32 : i32, i32
  }
  func.func @transform_3(%arg0: i32) -> (i32, i32) {
    %c0_i32 = arith.constant 0 : i32
    %c0_i32_0 = arith.constant 0 : i32
    return %arg0, %c0_i32 : i32, i32
  }
  func.func @transform_4(%arg0: i32) -> (i32, i32) {
    %c0_i32 = arith.constant 0 : i32
    %c0_i32_0 = arith.constant 0 : i32
    %c0_i32_1 = arith.constant 0 : i32
    return %c0_i32, %c0_i32_0 : i32, i32
  }
  func.func @transform_5(%arg0: i32) -> (i32, i32) {
    %c0_i32 = arith.constant 0 : i32
    %c0_i32_0 = arith.constant 0 : i32
    %c0_i32_1 = arith.constant 0 : i32
    return %c0_i32, %c0_i32_0 : i32, i32
  }
  func.func @transform_6(%arg0: i32) -> (i32, i32) {
    %c0_i32 = arith.constant 0 : i32
    %c0_i32_0 = arith.constant 0 : i32
    %c0_i32_1 = arith.constant 0 : i32
    return %c0_i32, %c0_i32_0 : i32, i32
  }
  func.func @transform_7(%arg0: i32) -> (i32, i32) {
    %c0_i32 = arith.constant 0 : i32
    %c0_i32_0 = arith.constant 0 : i32
    %c0_i32_1 = arith.constant 0 : i32
    return %c0_i32, %c0_i32_0 : i32, i32
  }
  func.func @transform_8(%arg0: i32) -> (i32, i32) {
    %c0_i32 = arith.constant 0 : i32
    %c0_i32_0 = arith.constant 0 : i32
    %c0_i32_1 = arith.constant 0 : i32
    return %c0_i32, %c0_i32_0 : i32, i32
  }
  func.func @transform_9(%arg0: i32) -> (i32, i32) {
    %c0_i32 = arith.constant 0 : i32
    %c0_i32_0 = arith.constant 0 : i32
    %c0_i32_1 = arith.constant 0 : i32
    return %c0_i32, %c0_i32_0 : i32, i32
  }
  func.func @transform_10(%arg0: i32) -> (i32, i32) {
    %c0_i32 = arith.constant 0 : i32
    %c0_i32_0 = arith.constant 0 : i32
    %c0_i32_1 = arith.constant 0 : i32
    return %c0_i32, %c0_i32_0 : i32, i32
  }
  func.func @transform_11(%arg0: i32) -> (i32, i32) {
    %c0_i32 = arith.constant 0 : i32
    %c0_i32_0 = arith.constant 0 : i32
    %c0_i32_1 = arith.constant 0 : i32
    return %c0_i32, %c0_i32_0 : i32, i32
  }
  func.func @transform_12(%arg0: i32) -> (i32, i32) {
    %c0_i32 = arith.constant 0 : i32
    %c0_i32_0 = arith.constant 0 : i32
    %c0_i32_1 = arith.constant 0 : i32
    return %c0_i32, %c0_i32_0 : i32, i32
  }
  func.func @transform_13(%arg0: i32) -> (i32, i32) {
    %c0_i32 = arith.constant 0 : i32
    %c0_i32_0 = arith.constant 0 : i32
    %c0_i32_1 = arith.constant 0 : i32
    return %c0_i32, %c0_i32_0 : i32, i32
  }
  func.func @transform_14(%arg0: i32) -> (i32, i32) {
    %c0_i32 = arith.constant 0 : i32
    %c0_i32_0 = arith.constant 0 : i32
    return %arg0, %c0_i32 : i32, i32
  }
}

</mosaic_0001>

<bundles_post_ra>
// kernel: tpu_custom_call.1
= control target key start
LH: loop header
LB: loop body
LE: loop exit
PB: predicated region body
PF: predicated region fallthrough
CT: control target
= control target key end

     0   :  { %v8955_v2 = vmov 0   ;;  %vm603_vm0 = vcmask 1043456   ;;  %vm599_vm1 = vcmask 850944   ;;  %s8938_s0 = inlined_call_operand.vmem [shape: s32[8,3], index: 0, kind: input, shape index: {}]   ;;  %s8939_s1 = inlined_call_operand.vmem [shape: bf16[10,8,1000], index: 1, kind: input, shape index: {}]   ;;  %s8940_s2 = inlined_call_operand.vmem [shape: f32[8,10], index: 2, kind: input, shape index: {}]   ;;  %s8941_s3 = inlined_call_operand.vmem [shape: bf16[8,1000], index: 3, kind: input, shape index: {}]   ;;  %s8942_s4 = inlined_call_operand.vmem [shape: bf16[1000,73], index: 4, kind: input, shape index: {}]   ;;  %s8943_s5 = inlined_call_operand.vmem [shape: f32[1,73], index: 5, kind: input, shape index: {}]   ;;  %s8944_s6 = inlined_call_operand.vmem [shape: bf16[73,73], index: 6, kind: input, shape index: {}]   ;;  %s8945_s7 = inlined_call_operand.vmem [shape: f32[1,73], index: 7, kind: input, shape index: {}]   ;;  %s8946_s8 = inlined_call_operand.vmem [shape: bf16[1000,64], index: 8, kind: input, shape index: {}]   ;;  %s8947_s9 = inlined_call_operand.vmem [shape: f32[1,64], index: 9, kind: input, shape index: {}]   ;;  %s8948_s10 = inlined_call_operand.vmem [shape: f32[100,265], index: 10, kind: input, shape index: {}]   ;;  %s8949_s11 = inlined_call_operand.vmem [shape: bf16[73,265], index: 11, kind: input, shape index: {}]   ;;  %s8950_s12 = inlined_call_operand.vmem [shape: bf16[64,265], index: 12, kind: input, shape index: {}]   ;;  %s8951_s13 = inlined_call_operand.vmem [shape: f32[1,265], index: 13, kind: input, shape index: {}]   ;;  %s8952_s14 = inlined_call_operand.hbm [shape: f32[8,265], index: 14, kind: output, shape index: {}]  }
   0x1   :  { %v6307_v0 = vld [vmem:[%s8942_s4 + $0x78] sm:$0xff]   ;;  %5768 = vset.pattern.permute.xlu0 %v8955_v2  ;;  %v5786_v5 = vld [vmem:[%s8942_s4 + $0x70] sm:$0xff]   ;;  %v5790_v9 = vld [vmem:[%s8942_s4 + $0x68] sm:$0xff]  }
   0x2   :  { %v6312_v1 = vld [vmem:[%s8942_s4 + $0xf8] sm:$0xff]   ;;  %4748 = vmatprep.subr.bf16.mxu0 %v6307_v0  ;;  %v6332_v6 = vld [vmem:[%s8942_s4 + $0xf0] sm:$0xff]   ;;  %v6350_v10 = vld [vmem:[%s8942_s4 + $0xe8] sm:$0xff]  }
   0x3   :  { %v5784_v3 = vld [vmem:[%s8942_s4 + $0x38] sm:$0xff]   ;;  %4770 = vmatprep.subr.bf16.mxu1 %v6312_v1  ;;  %v5788_v7 = vld [vmem:[%s8942_s4 + $0x30] sm:$0xff]   ;;  %v5792_v11 = vld [vmem:[%s8942_s4 + $0x28] sm:$0xff]  }
   0x4   :  { %v6323_v4 = vld [vmem:[%s8942_s4 + $0xb8] sm:$0xff]   ;;  %4749 = vmatpush3.bf16.msra.mxu0 %v5784_v3  ;;  %v6341_v8 = vld [vmem:[%s8942_s4 + $0xb0] sm:$0xff]   ;;  %v6359_v12 = vld [vmem:[%s8942_s4 + $0xa8] sm:$0xff]  }
   0x5   :  { %4771 = vmatpush3.bf16.msra.mxu1 %v6323_v4  ;;  %4750 = vmatprep.subr.bf16.mxu0 %v5786_v5  ;;  %v5794_v13 = vld [vmem:[%s8942_s4 + $0x60] sm:$0xff]   ;;  %v5798_v17 = vld [vmem:[%s8942_s4 + $0x58] sm:$0xff]   ;;  %v5802_v21 = vld [vmem:[%s8942_s4 + $0x50] sm:$0xff]  }
   0x6   :  { %4772 = vmatprep.subr.bf16.mxu1 %v6332_v6  ;;  %v6368_v14 = vld [vmem:[%s8942_s4 + $0xe0] sm:$0xff]   ;;  %v6386_v18 = vld [vmem:[%s8942_s4 + $0xd8] sm:$0xff]   ;;  %v6404_v22 = vld [vmem:[%s8942_s4 + $0xd0] sm:$0xff]  }
   0x7   :  { %v5796_v15 = vld [vmem:[%s8942_s4 + $0x20] sm:$0xff]   ;;  %v5800_v19 = vld [vmem:[%s8942_s4 + $0x18] sm:$0xff]   ;;  %v5804_v23 = vld [vmem:[%s8942_s4 + $0x10] sm:$0xff]  }
   0x8   :  { %4751 = vmatpush3.bf16.msra.mxu0 %v5788_v7  ;;  %v6377_v16 = vld [vmem:[%s8942_s4 + $0xa0] sm:$0xff]   ;;  %v6395_v20 = vld [vmem:[%s8942_s4 + $0x98] sm:$0xff]   ;;  %v6413_v24 = vld [vmem:[%s8942_s4 + $0x90] sm:$0xff]  }
   0x9   :  { %4773 = vmatpush3.bf16.msra.mxu1 %v6341_v8  ;;  %4752 = vmatprep.subr.bf16.mxu0 %v5790_v9  ;;  %v6418_v25 = vld [vmem:[%s8942_s4 + $0x48] sm:$0xff]   ;;  %v6442_v29 = vld [vmem:[%s8942_s4 + $0x40] sm:$0xff]   ;;  %v6473_v39 = vld [vmem:[%s8942_s4 + $0x178] sm:$0xff]  }
   0xa   :  { %4774 = vmatprep.subr.bf16.mxu1 %v6350_v10  ;;  %v6424_v26 = vld [vmem:[%s8942_s4 + $0xc8] sm:$0xff]   ;;  %v6448_v30 = vld [vmem:[%s8942_s4 + $0xc0] sm:$0xff]   ;;  %v6479_v40 = vld [vmem:[%s8942_s4 + $0x138] sm:$0xff]  }
   0xb   :  { %v6430_v27 = vld [vmem:[%s8942_s4 + $0x8] sm:$0xff]   ;;  %v6454_v31 = vld [vmem:[%s8942_s4] sm:$0xff]   ;;  %v6484_v41 = vld [vmem:[%s8942_s4 + $0x1b8] sm:$0xff]  }
   0xc   :  { %4753 = vmatpush3.bf16.msra.mxu0 %v5792_v11  ;;  %v6436_v28 = vld [vmem:[%s8942_s4 + $0x88] sm:$0xff]   ;;  %v6460_v32 = vld [vmem:[%s8942_s4 + $0x80] sm:$0xff]   ;;  %v6489_v42 = vld [vmem:[%s8942_s4 + $0x170] sm:$0xff]  }
   0xd   :  { %4775 = vmatpush3.bf16.msra.mxu1 %v6359_v12  ;;  %4754 = vmatprep.subr.bf16.mxu0 %v5794_v13  ;;  %v187_v33 = vld [vmem:[%s8939_s1] sm:$0xff]  ;;  %v188_v34 = vld [vmem:[%s8939_s1 + $0x8] sm:$0xff]  ;;  %v6496_v43 = vld [vmem:[%s8942_s4 + $0x130] sm:$0xff]  }
   0xe   :  { %4776 = vmatprep.subr.bf16.mxu1 %v6368_v14  ;;  %v4433_v35 = vcombine.low %v187_v33, %v187_v33  ;;  %v4434_v36 = vcombine.high %v187_v33, %v187_v33  ;;  %v4435_v37 = vcombine.low %v188_v34, %v188_v34  ;;  %v4436_v38 = vcombine.high %v188_v34, %v188_v34  ;;  %v6503_v44 = vld [vmem:[%s8942_s4 + $0x1b0] sm:$0xff]   ;;  %v6509_v45 = vld [vmem:[%s8942_s4 + $0x168] sm:$0xff]   ;;  %v6528_v48 = vld [vmem:[%s8942_s4 + $0x160] sm:$0xff]  }
   0xf   :  { %v6515_v46 = vld [vmem:[%s8942_s4 + $0x1a8] sm:$0xff]   ;;  %v6534_v49 = vld [vmem:[%s8942_s4 + $0x1a0] sm:$0xff]   ;;  %v6547_v51 = vld [vmem:[%s8942_s4 + $0x158] sm:$0xff]  }
  0x10   :  { %4755 = vmatpush3.bf16.msra.mxu0 %v5796_v15  ;;  %639 = vmatprep.mubr.bf16.mxu0 %v4434_v36  ;;  %v6522_v47 = vld [vmem:[%s8942_s4 + $0x128] sm:$0xff]   ;;  %v6541_v50 = vld [vmem:[%s8942_s4 + $0x120] sm:$0xff]   ;;  %v6553_v52 = vld [vmem:[%s8942_s4 + $0x198] sm:$0xff]  }
  0x11   :  { %4777 = vmatpush3.bf16.msra.mxu1 %v6377_v16  ;;  %4756 = vmatprep.subr.bf16.mxu0 %v5798_v17  ;;  %v6560_v53 = vld [vmem:[%s8942_s4 + $0x118] sm:$0xff]   ;;  %v6566_v54 = vld [vmem:[%s8942_s4 + $0x150] sm:$0xff]   ;;  %v6585_v57 = vld [vmem:[%s8942_s4 + $0x148] sm:$0xff]  }
  0x12   :  { %4778 = vmatprep.subr.bf16.mxu1 %v6386_v18  ;;  %679 = vmatprep.mubr.bf16.mxu1 %v4436_v38  ;;  %v6572_v55 = vld [vmem:[%s8942_s4 + $0x190] sm:$0xff]   ;;  %v6590_v58 = vld [vmem:[%s8942_s4 + $0x188] sm:$0xff]   ;;  %v6607_v62 = vld [vmem:[%s8942_s4 + $0x140] sm:$0xff]  }
  0x13   :  { %v6579_v56 = vld [vmem:[%s8942_s4 + $0x110] sm:$0xff]   ;;  %v6601_v61 = vld [vmem:[%s8942_s4 + $0x108] sm:$0xff]   ;;  %v6616_v3 = vld [vmem:[%s8942_s4 + $0x180] sm:$0xff]  }
  0x14   :  { %4757 = vmatpush3.bf16.msra.mxu0 %v5800_v19  ;;  %v189_v59 = vld [vmem:[%s8939_s1 + $0x10] sm:$0xff]  ;;  %v6623_v5 = vld [vmem:[%s8942_s4 + $0x100] sm:$0xff]   ;;  %v190_v9 = vld [vmem:[%s8939_s1 + $0x18] sm:$0xff] }
  0x15   :  { %4779 = vmatpush3.bf16.msra.mxu1 %v6395_v20  ;;  %4758 = vmatprep.subr.bf16.mxu0 %v5802_v21  ;;  %v4438_v60 = vcombine.high %v189_v59, %v189_v59  ;;  %v5844_v63 = vld [vmem:[%s8942_s4 + $0x1f0] ss:$0 sps:$4 sm:$0xff]   ;;  %v4437_v11 = vcombine.low %v189_v59, %v189_v59  ;;  %v4440_v13 = vcombine.high %v190_v9, %v190_v9  ;;  %v6638_v15 = vld [vmem:[%s8942_s4 + $0x1e8] sm:$0xff]   ;;  %v6646_v17 = vld [vmem:[%s8942_s4 + $0x1e0] sm:$0xff]  }
  0x16   :  { %4780 = vmatprep.subr.bf16.mxu1 %v6404_v22  ;;  %v6627_v7 = vsel %vm603_vm0, %v5844_v63, 0  ;;  %v6653_v19 = vld [vmem:[%s8942_s4 + $0x1d8] sm:$0xff]   ;;  %v6660_v21 = vld [vmem:[%s8942_s4 + $0x1d0] sm:$0xff]   ;;  %v6674_v33 = vld [vmem:[%s8942_s4 + $0x1c0] sm:$0xff]   ;;  %v4439_v34 = vcombine.low %v190_v9, %v190_v9 }
  0x17   :  { %9082 = vst [vmem:[#allocation5_spill] sm:$0xff] %v6627_v7 }
  0x18   :  { %4759 = vmatpush3.bf16.msra.mxu0 %v5804_v23  ;;  %v6667_v23 = vld [vmem:[%s8942_s4 + $0x1c8] sm:$0xff]  }
  0x19   :  { %4781 = vmatpush3.bf16.msra.mxu1 %v6413_v24  ;;  %4760 = vmatprep.subr.bf16.mxu0 %v6418_v25 }
  0x1a   :  { %4782 = vmatprep.subr.bf16.mxu1 %v6424_v26 }
  0x1c   :  { %4761 = vmatpush3.bf16.msra.mxu0 %v6430_v27 }
  0x1d   :  { %4783 = vmatpush3.bf16.msra.mxu1 %v6436_v28  ;;  %4762 = vmatprep.subr.bf16.mxu0 %v6442_v29 }
  0x1e   :  { %4784 = vmatprep.subr.bf16.mxu1 %v6448_v30 }
  0x20   :  { %4763 = vmatpush3.bf16.msra.mxu0 %v6454_v31 }
  0x21   :  { %4785 = vmatpush3.bf16.msra.mxu1 %v6460_v32  ;;  %4792 = vmatprep.subr.bf16.mxu0 %v6473_v39 }
  0x22   :  { %727 = vmatprep.subr.bf16.mxu1 %v8955_v2 }
  0x23   :  { %640 = vmatmul.mubr.bf16.vlgmr.msra.gmra.mxu0 %v4433_v35 }
  0x24   :  { %680 = vmatmul.mubr.bf16.vlgmr.msra.gmra.mxu1 %v4435_v37  ;;  %4793 = vmatpush3.bf16.msra.mxu0 %v6479_v40 }
  0x25   :  { %728 = vmatpush1.bf16.msra.mxu1 %v6484_v41  ;;  %4794 = vmatprep.subr.bf16.mxu0 %v6489_v42 }
  0x26   :  { %729 = vmatprep.subr.bf16.mxu1 %v8955_v2  ;;  %719 = vmatprep.mubr.bf16.mxu0 %v4438_v60 }
  0x27   :  { %4504 = vmatprep.mubr.msk.bf16.mxu1 %vm599_vm1, %v4440_v13 }
  0x28   :  { %4795 = vmatpush3.bf16.msra.mxu0 %v6496_v43 }
  0x29   :  { %730 = vmatpush1.bf16.msra.mxu1 %v6503_v44  ;;  %4796 = vmatprep.subr.bf16.mxu0 %v6509_v45 }
  0x2a   :  { %731 = vmatprep.subr.bf16.mxu1 %v8955_v2 }
  0x2c   :  { %4797 = vmatpush3.bf16.msra.mxu0 %v6522_v47 }
  0x2d   :  { %732 = vmatpush1.bf16.msra.mxu1 %v6515_v46  ;;  %4798 = vmatprep.subr.bf16.mxu0 %v6528_v48 }
  0x2e   :  { %733 = vmatprep.subr.bf16.mxu1 %v8955_v2 }
  0x30   :  { %4799 = vmatpush3.bf16.msra.mxu0 %v6541_v50 }
  0x31   :  { %734 = vmatpush1.bf16.msra.mxu1 %v6534_v49  ;;  %4800 = vmatprep.subr.bf16.mxu0 %v6547_v51 }
  0x32   :  { %735 = vmatprep.subr.bf16.mxu1 %v8955_v2 }
  0x34   :  { %4801 = vmatpush3.bf16.msra.mxu0 %v6560_v53 }
  0x35   :  { %736 = vmatpush1.bf16.msra.mxu1 %v6553_v52  ;;  %4802 = vmatprep.subr.bf16.mxu0 %v6566_v54 }
  0x36   :  { %737 = vmatprep.subr.bf16.mxu1 %v8955_v2 }
  0x38   :  { %4803 = vmatpush3.bf16.msra.mxu0 %v6579_v56 }
  0x39   :  { %738 = vmatpush1.bf16.msra.mxu1 %v6572_v55  ;;  %4804 = vmatprep.subr.bf16.mxu0 %v6585_v57 }
  0x3a   :  { %739 = vmatprep.subr.bf16.mxu1 %v8955_v2 }
  0x3c   :  { %4805 = vmatpush3.bf16.msra.mxu0 %v6601_v61 }
  0x3d   :  { %740 = vmatpush1.bf16.msra.mxu1 %v6590_v58  ;;  %4806 = vmatprep.subr.bf16.mxu0 %v6607_v62 }
  0x3e   :  { %741 = vmatprep.subr.bf16.mxu1 %v8955_v2 }
  0x40   :  { %4807 = vmatpush3.bf16.msra.mxu0 %v6623_v5 }
  0x41   :  { %742 = vmatpush1.bf16.msra.mxu1 %v6616_v3 }
  0x42   :  { %745 = vmatprep.subr.bf16.mxu1 %v8955_v2 }
  0x43   :  { %720 = vmatmul.mubr.bf16.vlgmr.msra.gmra.mxu0 %v4437_v11 }
  0x45   :  { %746 = vmatpush2.bf16.msra.mxu1 %v6627_v7 }
  0x46   :  { %747 = vmatprep.subr.bf16.mxu1 %v8955_v2 }
  0x49   :  { %748 = vmatpush2.bf16.msra.mxu1 %v6638_v15 }
  0x4a   :  { %749 = vmatprep.subr.bf16.mxu1 %v8955_v2 }
  0x4d   :  { %750 = vmatpush2.bf16.msra.mxu1 %v6646_v17 }
  0x4e   :  { %751 = vmatprep.subr.bf16.mxu1 %v8955_v2 }
  0x51   :  { %752 = vmatpush2.bf16.msra.mxu1 %v6653_v19 }
  0x52   :  { %753 = vmatprep.subr.bf16.mxu1 %v8955_v2 }
  0x55   :  { %754 = vmatpush2.bf16.msra.mxu1 %v6660_v21 }
  0x56   :  { %755 = vmatprep.subr.bf16.mxu1 %v8955_v2 }
  0x59   :  { %756 = vmatpush2.bf16.msra.mxu1 %v6667_v23 }
  0x5a   :  { %757 = vmatprep.subr.bf16.mxu1 %v8955_v2 }
  0x5d   :  { %758 = vmatpush2.bf16.msra.mxu1 %v6674_v33 }
  0x5e   :  { %4842 = vmatprep.subr.bf16.mxu1 %v6312_v1 }
  0x60   :  { %760 = vmatmul.mubr.bf16.vlgmr.msra.gmra.mxu1 %v4439_v34 }
  0x61   :  { %4843 = vmatpush3.bf16.msra.mxu1 %v6323_v4 }
  0x62   :  { %4844 = vmatprep.subr.bf16.mxu1 %v6332_v6 }
  0x65   :  { %4845 = vmatpush3.bf16.msra.mxu1 %v6341_v8 }
  0x66   :  { %4846 = vmatprep.subr.bf16.mxu1 %v6350_v10 }
  0x69   :  { %4847 = vmatpush3.bf16.msra.mxu1 %v6359_v12 }
  0x6a   :  { %4848 = vmatprep.subr.bf16.mxu1 %v6368_v14 }
  0x6d   :  { %4849 = vmatpush3.bf16.msra.mxu1 %v6377_v16 }
  0x6e   :  { %4850 = vmatprep.subr.bf16.mxu1 %v6386_v18 }
  0x71   :  { %4851 = vmatpush3.bf16.msra.mxu1 %v6395_v20 }
  0x72   :  { %4852 = vmatprep.subr.bf16.mxu1 %v6404_v22 }
  0x75   :  { %4853 = vmatpush3.bf16.msra.mxu1 %v6413_v24 }
  0x76   :  { %4854 = vmatprep.subr.bf16.mxu1 %v6424_v26 }
  0x79   :  { %4855 = vmatpush3.bf16.msra.mxu1 %v6436_v28 }
  0x7a   :  { %19 = vsyncpa [#allocation3], 0  ;;  %4856 = vmatprep.subr.bf16.mxu1 %v6448_v30  ;;  %vm809_vm2 = vcmask 1044480   ;;  %v6216_v1 = vmov 65535   ;;  %v5845_v6 = vld [vmem:[%s8944_s6 + $0x20] sm:$0x1f]  }
  0x7b   :  { %v810_v4 = vsel %vm603_vm0, 4294967295, %v6216_v1  ;;  %v8953_v12 = vmov 0.0   ;;  %v6710_v35 = vld [vmem:[%s8944_s6 + $0x18] sm:$0xff]   ;;  %v6717_v36 = vld [vmem:[%s8944_s6 + $0x10] sm:$0xff]   ;;  %v6725_v37 = vld [vmem:[%s8944_s6 + $0x8] sm:$0xff]   ;;  %vm6218_vm3 = vmmov 0  }
  0x7c   :  { %v6700_v8 = vsel %vm809_vm2, %v810_v4, 0  ;;  %5559 = vmatprep.subr.bf16.mxu0 %v8953_v12  ;;  %v6732_v38 = vld [vmem:[%s8944_s6] sm:$0xff]   ;;  %5569 = vmatprep.mubr.msk.bf16.mxu0 %vm6218_vm3, %v8953_v12  ;;  %v4513_v59 = vld [vmem:[%s8939_s1 + $0x28] sm:$0xff]  ;;  %vm3106_vm4 = vcmask 80896   ;;  %v4515_v13 = vld [vmem:[%s8939_s1 + $0x38] sm:$0xff]  ;;  %vm805_vm6 = vcmask 596992  }
  0x7d   :  { %4857 = vmatpush3.bf16.msra.mxu1 %v6460_v32  ;;  %9083 = vst [vmem:[#allocation6_spill] sm:$0xff] %v6700_v8  ;;  %v6703_v10 = vand.u32 %v5845_v6, %v6700_v8  ;;  %v4518_v60 = vcombine.low %v4513_v59, %v4513_v59  ;;  %v4519_v63 = vcombine.high %v4513_v59, %v4513_v59 }
  0x7e   :  { %1020 = vmatprep.subr.bf16.mxu1 %v8955_v2  ;;  %v4523_v4 = vcombine.high %v4515_v13, %v4515_v13  ;;  %v4522_v6 = vcombine.low %v4515_v13, %v4515_v13  ;;  %v6792_v13 = vld [vmem:[%s8942_s4 + $0xf0] sm:$0xff]  }
  0x7f   :  { %5560 = vmatpush3.bf16.msra.mxu0 %v6703_v10  ;;  %972 = vmatprep.mubr.bf16.mxu1 %v4519_v63  ;;  %v6780_v63 = vld [vmem:[%s8942_s4 + $0xf8] sm:$0xff]   ;;  %9084 = vst [vmem:[#allocation7_spill] sm:$0xff] %v6792_v13 }
  0x80   :  { %5561 = vmatprep.subr.bf16.mxu0 %v8953_v12  ;;  %973 = vmatmul.mubr.bf16.vlgmr.msra.gmra.mxu1 %v4518_v60 }
  0x81   :  { %1021 = vmatpush1.bf16.msra.mxu1 %v6484_v41  ;;  %4524 = vmatprep.mubr.msk.bf16.mxu1 %vm599_vm1, %v4523_v4  ;;  %v6804_v4 = vld [vmem:[%s8942_s4 + $0xe8] sm:$0xff]  }
  0x82   :  { %1022 = vmatprep.subr.bf16.mxu1 %v8955_v2  ;;  %9086 = vst [vmem:[#allocation9_spill] sm:$0xff] %v6804_v4 }
  0x83   :  { %5562 = vmatpush3.bf16.msra.mxu0 %v6710_v35 }
  0x84   :  { %5563 = vmatprep.subr.bf16.mxu0 %v8953_v12 }
  0x85   :  { %1023 = vmatpush1.bf16.msra.mxu1 %v6503_v44 }
  0x86   :  { %1024 = vmatprep.subr.bf16.mxu1 %v8955_v2 }
  0x87   :  { %5564 = vmatpush3.bf16.msra.mxu0 %v6717_v36 }
  0x88   :  { %5565 = vmatprep.subr.bf16.mxu0 %v8953_v12 }
  0x89   :  { %1025 = vmatpush1.bf16.msra.mxu1 %v6515_v46 }
  0x8a   :  { %1026 = vmatprep.subr.bf16.mxu1 %v8955_v2 }
  0x8b   :  { %5566 = vmatpush3.bf16.msra.mxu0 %v6725_v37 }
  0x8c   :  { %5567 = vmatprep.subr.bf16.mxu0 %v8953_v12 }
  0x8d   :  { %1027 = vmatpush1.bf16.msra.mxu1 %v6534_v49 }
  0x8e   :  { %1028 = vmatprep.subr.bf16.mxu1 %v8955_v2 }
  0x8f   :  { %5568 = vmatpush3.bf16.msra.mxu0 %v6732_v38 }
  0x90   :  { %4820 = vmatprep.subr.bf16.mxu0 %v6307_v0  ;;  %v49_v0 = vld [vmem:[%s8940_s2] sm:$0xff] }
  0x91   :  { %1029 = vmatpush1.bf16.msra.mxu1 %v6553_v52  ;;  %v3107_v41 = vsel %vm3106_vm4, %v49_v0, 0.0  ;;  %vm857_vm5 = vcmp.ne.f32.partialorder %v49_v0, 0.0  ;;  %v6813_v0 = vld [vmem:[%s8942_s4 + $0xa8] sm:$0xff]  }
  0x92   :  { %1030 = vmatprep.subr.bf16.mxu1 %v8955_v2  ;;  %3108 = vadd.xlane.f32.xlu0 %v3107_v41  ;;  %9088 = vst [vmem:[#allocation10_spill] sm:$0xff] %v6813_v0 }
  0x95   :  { %1031 = vmatpush1.bf16.msra.mxu1 %v6572_v55 }
  0x96   :  { %1032 = vmatprep.subr.bf16.mxu1 %v8955_v2 }
  0x99   :  { %1033 = vmatpush1.bf16.msra.mxu1 %v6590_v58 }
  0x9a   :  { %1034 = vmatprep.subr.bf16.mxu1 %v8955_v2 }
  0x9d   :  { %1035 = vmatpush1.bf16.msra.mxu1 %v6616_v3 }
  0x9e   :  { %1038 = vmatprep.subr.bf16.mxu1 %v8955_v2 }
  0xa1   :  { %1039 = vmatpush2.bf16.msra.mxu1 %v6627_v7 }
  0xa2   :  { %1040 = vmatprep.subr.bf16.mxu1 %v8955_v2 }
  0xa5   :  { %1041 = vmatpush2.bf16.msra.mxu1 %v6638_v15 }
  0xa6   :  { %1042 = vmatprep.subr.bf16.mxu1 %v8955_v2 }
  0xa9   :  { %1043 = vmatpush2.bf16.msra.mxu1 %v6646_v17 }
  0xaa   :  { %1044 = vmatprep.subr.bf16.mxu1 %v8955_v2 }
  0xad   :  { %1045 = vmatpush2.bf16.msra.mxu1 %v6653_v19 }
  0xae   :  { %1046 = vmatprep.subr.bf16.mxu1 %v8955_v2 }
  0xb1   :  { %1047 = vmatpush2.bf16.msra.mxu1 %v6660_v21 }
  0xb2   :  { %1048 = vmatprep.subr.bf16.mxu1 %v8955_v2 }
  0xb5   :  { %1049 = vmatpush2.bf16.msra.mxu1 %v6667_v23 }
  0xb6   :  { %1050 = vmatprep.subr.bf16.mxu1 %v8955_v2  ;;  %v6786_v2 = vld [vmem:[%s8942_s4 + $0xb8] sm:$0xff]  }
  0xb9   :  { %1051 = vmatpush2.bf16.msra.mxu1 %v6674_v33 }
  0xba   :  { %4914 = vmatprep.subr.bf16.mxu1 %v6780_v63 }
  0xbc   :  { %1053 = vmatmul.mubr.bf16.vlgmr.msra.gmra.mxu1 %v4522_v6  ;;  %v9087_v6 = vmov 0  }
  0xbd   :  { %4915 = vmatpush3.bf16.msra.mxu1 %v6786_v2 }
  0xbe   :  { %4916 = vmatprep.subr.bf16.mxu1 %v6792_v13 }
  0xe3   :  { %v4764_v9 = vpop.f32.mrf.mxu0 }
  0xe4   :  { %v4786_v11 = vpop.f32.mrf.mxu1 }
  0xe5   :  { %v4765_v34 = vpop.f32.mrf.mxu0 }
  0xe6   :  { %v4787_v1 = vpop.f32.mrf.mxu1 }
  0xe7   :  { %v4767_v60 = vpop.f32.mrf.mxu0 }
  0xe8   :  { %v4789_v59 = vpop.f32.mrf.mxu1 }
  0xe9   :  { %v4768_v12 = vpop.f32.mrf.mxu0  ;;  %v6808_v59 = vsel %vm857_vm5, 1, %v9087_v6 }
  0xea   :  { %v4790_v41 = vpop.f32.mrf.mxu1  ;;  %v6798_v12 = vld [vmem:[%s8942_s4 + $0xb0] sm:$0xff]   ;;  %860 = vperm.xlu0 %5768, %v6808_v59  }
  0xeb   :  { %9085 = vst [vmem:[#allocation8_spill] sm:$0xff] %v6798_v12  ;;  %4917 = vmatpush3.bf16.msra.mxu1 %v6798_v12 }
  0xec   :  { %4918 = vmatprep.subr.bf16.mxu1 %v6804_v4 }
  0xef   :  { %4919 = vmatpush3.bf16.msra.mxu1 %v6813_v0 }
  0xf0   :  { %4920 = vmatprep.subr.bf16.mxu1 %v6368_v14 }
  0xf3   :  { %4921 = vmatpush3.bf16.msra.mxu1 %v6377_v16 }
  0xf4   :  { %4922 = vmatprep.subr.bf16.mxu1 %v6386_v18  ;;  %v4766_v18 = vadd.f32 %v4765_v34, %v4764_v9 }
  0xf7   :  { %4923 = vmatpush3.bf16.msra.mxu1 %v6395_v20  ;;  %v6831_v20 = vld [vmem:[%s8943_s5] ss:$0 sm:$0xff] }
  0xf8   :  { %4924 = vmatprep.subr.bf16.mxu1 %v6404_v22  ;;  %v642_v22 = vadd.f32 %v4766_v18, %v6831_v20  ;;  %v6895_v18 = vld [vmem:[%s8942_s4 + $0x50] sm:$0xff]  }
  0xfb   :  { %4925 = vmatpush3.bf16.msra.mxu1 %v6413_v24  ;;  %v4788_v24 = vadd.f32 %v4787_v1, %v4786_v11  ;;  %v6841_v11 = vld [vmem:[%s8942_s4 + $0x38] sm:$0xff]   ;;  %v6853_v1 = vld [vmem:[%s8942_s4 + $0x30] sm:$0xff]  }
  0xfc   :  { %4926 = vmatprep.subr.bf16.mxu1 %v6424_v26 }
  0xff   :  { %4927 = vmatpush3.bf16.msra.mxu1 %v6436_v28  ;;  %v682_v28 = vadd.f32 %v4788_v24, %v642_v22  ;;  %v6901_v22 = vld [vmem:[%s8942_s4 + $0x10] sm:$0xff]  }
 0x100   :  { %4928 = vmatprep.subr.bf16.mxu1 %v6448_v30  ;;  %v4514_v24 = vld [vmem:[%s8939_s1 + $0x30] sm:$0xff] }
 0x103   :  { %v4808_v60 = vpop.f32.mrf.mxu0  ;;  %4929 = vmatpush3.bf16.msra.mxu1 %v6460_v32 }
 0x104   :  { %1269 = vmatprep.subr.bf16.mxu1 %v9087_v6 }
 0x105   :  { %v4809_v41 = vpop.f32.mrf.mxu0 }
 0x106   :  { %v4810_v26 = vadd.f32 %v4809_v41, %v4808_v60  ;;  %v6883_v60 = vld [vmem:[%s8942_s4 + $0x58] sm:$0xff]  }
 0x107   :  { %v4811_v14 = vpop.f32.mrf.mxu0  ;;  %v6889_v41 = vld [vmem:[%s8942_s4 + $0x18] sm:$0xff]  }
 0x108   :  { %v722_v30 = vadd.f32 %v4810_v26, %v682_v28  ;;  %v4512_v14 = vld [vmem:[%s8939_s1 + $0x20] sm:$0xff]  ;;  %v4521_v28 = vcombine.high %v4514_v24, %v4514_v24 }
 0x109   :  { %v4812_v16 = vpop.f32.mrf.mxu0  ;;  %v4517_v12 = vcombine.high %v4512_v14, %v4512_v14  ;;  %v4516_v26 = vcombine.low %v4512_v14, %v4512_v14  ;;  %v7027_v14 = vld [vmem:[%s8942_s4 + $0xd0] sm:$0xff]  }
 0x10a   :  { %9099 = vst [vmem:[#allocation14_spill] sm:$0xff] %v7027_v14 }
 0x120   :  { %v761_v8 = vpop.f32.mrf.mxu1 }
 0x121   :  { %v762_v0 = vadd.f32 %v761_v8, %v722_v30  ;;  %v6847_v8 = vld [vmem:[%s8942_s4 + $0x70] sm:$0xff]   ;;  %v7021_v30 = vld [vmem:[%s8942_s4 + $0x98] sm:$0xff]  }
 0x122   :  { %v763_v4 = vpop.f32.mrf.mxu1  ;;  %9098 = vst [vmem:[#allocation13_spill] sm:$0xff] %v7021_v30 }
 0x123   :  { %v767_v32 = vmul.f32 0.01, %v762_v0  ;;  %v6871_v4 = vld [vmem:[%s8942_s4 + $0x60] sm:$0xff]  }
 0x124   :  { %v764_v9 = vpop.f32.mrf.mxu1 }
 0x125   :  { %v768_v34 = vmax.f32 %v762_v0, %v767_v32  ;;  %v6877_v0 = vld [vmem:[%s8942_s4 + $0x20] sm:$0xff]  }
 0x126   :  { %v765_v16 = vpop.f32.mrf.mxu1 }
 0x127   :  { %v769_v13 = vpack.c.bf16 %v768_v34, %v768_v34  ;;  %v7033_v34 = vld [vmem:[%s8942_s4 + $0x90] sm:$0xff]  }
 0x128   :  { %9100 = vst [vmem:[#allocation15_spill] sm:$0xff] %v7033_v34 }
 0x129   :  { %5570 = vmatmul.mubr.msk.bf16.vlgmr.msra.gmra.mxu0 %vm805_vm6, %v769_v13  ;;  %v6859_v13 = vld [vmem:[%s8942_s4 + $0x68] sm:$0xff]  }
 0x12a   :  { %4821 = vmatpush3.bf16.msra.mxu0 %v6841_v11  ;;  %932 = vmatprep.mubr.bf16.mxu0 %v4517_v12  ;;  %v6865_v12 = vld [vmem:[%s8942_s4 + $0x28] sm:$0xff]  }
 0x12b   :  { %4822 = vmatprep.subr.bf16.mxu0 %v6847_v8 }
 0x12e   :  { %4823 = vmatpush3.bf16.msra.mxu0 %v6853_v1 }
 0x12f   :  { %4824 = vmatprep.subr.bf16.mxu0 %v6859_v13 }
 0x132   :  { %4825 = vmatpush3.bf16.msra.mxu0 %v6865_v12 }
 0x133   :  { %4826 = vmatprep.subr.bf16.mxu0 %v6871_v4 }
 0x136   :  { %4827 = vmatpush3.bf16.msra.mxu0 %v6877_v0 }
 0x137   :  { %4828 = vmatprep.subr.bf16.mxu0 %v6883_v60 }
 0x13a   :  { %4829 = vmatpush3.bf16.msra.mxu0 %v6889_v41 }
 0x13b   :  { %4830 = vmatprep.subr.bf16.mxu0 %v6895_v18 }
 0x13e   :  { %4831 = vmatpush3.bf16.msra.mxu0 %v6901_v22 }
 0x13f   :  { %4832 = vmatprep.subr.bf16.mxu0 %v6418_v25  ;;  %v4520_v25 = vcombine.low %v4514_v24, %v4514_v24  ;;  %v7039_v24 = vld [vmem:[%s8942_s4 + $0xc8] sm:$0xff]  }
 0x140   :  { %9101 = vst [vmem:[#allocation16_spill] sm:$0xff] %v7039_v24 }
 0x142   :  { %4833 = vmatpush3.bf16.msra.mxu0 %v6430_v27  ;;  %v9089_v27 = vmov 0.0  }
 0x143   :  { %4834 = vmatprep.subr.bf16.mxu0 %v6442_v29  ;;  %v4858_v29 = vpop.f32.mrf.mxu1 }
 0x146   :  { %4835 = vmatpush3.bf16.msra.mxu0 %v6454_v31  ;;  %v4859_v31 = vpop.f32.mrf.mxu1 }
 0x147   :  { %4864 = vmatprep.subr.bf16.mxu0 %v6473_v39  ;;  %v6934_v39 = vadd.f32 %v4859_v31, %v4858_v29 }
 0x149   :  { %933 = vmatmul.mubr.bf16.vlgmr.msra.gmra.mxu0 %v4516_v26  ;;  %v7045_v26 = vld [vmem:[%s8942_s4 + $0x88] sm:$0xff]  }
 0x14a   :  { %4865 = vmatpush3.bf16.msra.mxu0 %v6479_v40  ;;  %1012 = vmatprep.mubr.bf16.mxu0 %v4521_v28  ;;  %v4861_v40 = vpop.f32.mrf.mxu1  ;;  %9102 = vst [vmem:[#allocation17_spill] sm:$0xff] %v7045_v26  ;;  %v7051_v28 = vld [vmem:[%s8942_s4 + $0xc0] sm:$0xff]  }
 0x14b   :  { %4866 = vmatprep.subr.bf16.mxu0 %v6489_v42  ;;  %9103 = vst [vmem:[#allocation18_spill] sm:$0xff] %v7051_v28 }
 0x14c   :  { %v4862_v42 = vpop.f32.mrf.mxu1 }
 0x14e   :  { %4867 = vmatpush3.bf16.msra.mxu0 %v6496_v43  ;;  %v6944_v43 = vld [vmem:[%s8942_s4 + $0x78] sm:$0xff]  }
 0x14f   :  { %4868 = vmatprep.subr.bf16.mxu0 %v6509_v45 }
 0x152   :  { %4869 = vmatpush3.bf16.msra.mxu0 %v6522_v47 }
 0x153   :  { %4870 = vmatprep.subr.bf16.mxu0 %v6528_v48 }
 0x156   :  { %4871 = vmatpush3.bf16.msra.mxu0 %v6541_v50 }
 0x157   :  { %4872 = vmatprep.subr.bf16.mxu0 %v6547_v51  ;;  %v4527_v51 = vld [vmem:[%s8939_s1 + $0x48] sm:$0xff] }
 0x15a   :  { %4873 = vmatpush3.bf16.msra.mxu0 %v6560_v53  ;;  %v4532_v53 = vcombine.low %v4527_v51, %v4527_v51 }
 0x15b   :  { %4874 = vmatprep.subr.bf16.mxu0 %v6566_v54  ;;  %v4533_v54 = vcombine.high %v4527_v51, %v4527_v51 }
 0x15d   :  { %1221 = vmatprep.mubr.bf16.mxu1 %v4533_v54 }
 0x15e   :  { %4875 = vmatpush3.bf16.msra.mxu0 %v6579_v56  ;;  %1222 = vmatmul.mubr.bf16.vlgmr.msra.gmra.mxu1 %v4532_v53  ;;  %v6955_v56 = vld [vmem:[%s8942_s4 + $0x1b8] sm:$0xff]  }
 0x15f   :  { %4876 = vmatprep.subr.bf16.mxu0 %v6585_v57  ;;  %9090 = vst [vmem:[#allocation11_spill] sm:$0xff] %v6955_v56  ;;  %1270 = vmatpush1.bf16.msra.mxu1 %v6955_v56 }
 0x160   :  { %1271 = vmatprep.subr.bf16.mxu1 %v9087_v6 }
 0x162   :  { %4877 = vmatpush3.bf16.msra.mxu0 %v6601_v61  ;;  %v8967_v61 = vmov 1  }
 0x163   :  { %4878 = vmatprep.subr.bf16.mxu0 %v6607_v62  ;;  %1272 = vmatpush1.bf16.msra.mxu1 %v6503_v44  ;;  %v9091_v62 = vld [vmem:[#allocation7_spill] sm:$0xff] }
 0x164   :  { %1273 = vmatprep.subr.bf16.mxu1 %v9087_v6  ;;  %5769 = vset.pattern.permute.xlu1 %v8967_v61 }
 0x165   :  { %1109 = vperm.xlu1 %5769, %v6808_v59  }
 0x166   :  { %4879 = vmatpush3.bf16.msra.mxu0 %v6623_v5  ;;  %v9093_v5 = vld [vmem:[#allocation9_spill] sm:$0xff] }
 0x167   :  { %5573 = vmatprep.subr.bf16.mxu0 %v9089_v27  ;;  %1274 = vmatpush1.bf16.msra.mxu1 %v6515_v46 }
 0x168   :  { %1275 = vmatprep.subr.bf16.mxu1 %v9087_v6 }
 0x169   :  { %1013 = vmatmul.mubr.bf16.vlgmr.msra.gmra.mxu0 %v4520_v25  ;;  %v7057_v25 = vld [vmem:[%s8942_s4 + $0x80] sm:$0xff]  }
 0x16a   :  { %5574 = vmatpush3.bf16.msra.mxu0 %v6703_v10  ;;  %5583 = vmatprep.mubr.msk.bf16.mxu0 %vm6218_vm3, %v9089_v27  ;;  %9104 = vst [vmem:[#allocation19_spill] sm:$0xff] %v7057_v25 }
 0x16b   :  { %5575 = vmatprep.subr.bf16.mxu0 %v9089_v27  ;;  %1276 = vmatpush1.bf16.msra.mxu1 %v6534_v49 }
 0x16c   :  { %1277 = vmatprep.subr.bf16.mxu1 %v9087_v6 }
 0x16e   :  { %5576 = vmatpush3.bf16.msra.mxu0 %v6710_v35 }
 0x16f   :  { %5577 = vmatprep.subr.bf16.mxu0 %v9089_v27  ;;  %1278 = vmatpush1.bf16.msra.mxu1 %v6553_v52 }
 0x170   :  { %1279 = vmatprep.subr.bf16.mxu1 %v9087_v6 }
 0x172   :  { %5578 = vmatpush3.bf16.msra.mxu0 %v6717_v36 }
 0x173   :  { %5579 = vmatprep.subr.bf16.mxu0 %v9089_v27  ;;  %1280 = vmatpush1.bf16.msra.mxu1 %v6572_v55  ;;  %v4529_v55 = vld [vmem:[%s8939_s1 + $0x58] sm:$0xff] }
 0x174   :  { %1281 = vmatprep.subr.bf16.mxu1 %v9087_v6  ;;  %v4537_v57 = vcombine.high %v4529_v55, %v4529_v55 }
 0x176   :  { %5580 = vmatpush3.bf16.msra.mxu0 %v6725_v37  ;;  %4538 = vmatprep.mubr.msk.bf16.mxu1 %vm599_vm1, %v4537_v57 }
 0x177   :  { %5581 = vmatprep.subr.bf16.mxu0 %v9089_v27  ;;  %1282 = vmatpush1.bf16.msra.mxu1 %v6590_v58  ;;  %v4536_v58 = vcombine.low %v4529_v55, %v4529_v55 }
 0x178   :  { %1283 = vmatprep.subr.bf16.mxu1 %v9087_v6 }
 0x17a   :  { %5582 = vmatpush3.bf16.msra.mxu0 %v6732_v38 }
 0x17b   :  { %4892 = vmatprep.subr.bf16.mxu0 %v6944_v43  ;;  %1284 = vmatpush1.bf16.msra.mxu1 %v6616_v3  ;;  %v9092_v3 = vld [vmem:[#allocation8_spill] sm:$0xff] }
 0x17c   :  { %v6947_v45 = vpop.f32.mrf.mxu1  ;;  %1287 = vmatprep.subr.bf16.mxu1 %v9087_v6 }
 0x17e   :  { %v1056_v47 = vpop.f32.mrf.mxu1 }
 0x17f   :  { %1288 = vmatpush2.bf16.msra.mxu1 %v6627_v7 }
 0x180   :  { %v1057_v48 = vpop.f32.mrf.mxu1  ;;  %1289 = vmatprep.subr.bf16.mxu1 %v9087_v6 }
 0x182   :  { %v1058_v50 = vpop.f32.mrf.mxu1 }
 0x183   :  { %1290 = vmatpush2.bf16.msra.mxu1 %v6638_v15  ;;  %v9094_v15 = vld [vmem:[#allocation10_spill] sm:$0xff] }
 0x184   :  { %1291 = vmatprep.subr.bf16.mxu1 %v9087_v6 }
 0x187   :  { %1292 = vmatpush2.bf16.msra.mxu1 %v6646_v17  ;;  %v7003_v17 = vld [vmem:[%s8942_s4 + $0xe0] sm:$0xff]  }
 0x188   :  { %1293 = vmatprep.subr.bf16.mxu1 %v9087_v6  ;;  %9095 = vst [vmem:[#allocation7_spill] sm:$0xff] %v7003_v17 }
 0x18b   :  { %1294 = vmatpush2.bf16.msra.mxu1 %v6653_v19  ;;  %v7009_v19 = vld [vmem:[%s8942_s4 + $0xa0] sm:$0xff]  }
 0x18c   :  { %1295 = vmatprep.subr.bf16.mxu1 %v9087_v6  ;;  %9096 = vst [vmem:[#allocation8_spill] sm:$0xff] %v7009_v19 }
 0x18f   :  { %1296 = vmatpush2.bf16.msra.mxu1 %v6660_v21  ;;  %v7015_v21 = vld [vmem:[%s8942_s4 + $0xd8] sm:$0xff]  }
 0x190   :  { %1297 = vmatprep.subr.bf16.mxu1 %v9087_v6  ;;  %9097 = vst [vmem:[#allocation12_spill] sm:$0xff] %v7015_v21 }
 0x193   :  { %1298 = vmatpush2.bf16.msra.mxu1 %v6667_v23 }
 0x194   :  { %1299 = vmatprep.subr.bf16.mxu1 %v9087_v6 }
 0x197   :  { %1300 = vmatpush2.bf16.msra.mxu1 %v6674_v33 }
 0x198   :  { %4986 = vmatprep.subr.bf16.mxu1 %v6780_v63 }
 0x19a   :  { %1302 = vmatmul.mubr.bf16.vlgmr.msra.gmra.mxu1 %v4536_v58  ;;  %v7094_v58 = vld [vmem:[%s8942_s4 + $0x40] sm:$0xff]  }
 0x19b   :  { %4987 = vmatpush3.bf16.msra.mxu1 %v6786_v2 }
 0x19c   :  { %4988 = vmatprep.subr.bf16.mxu1 %v9091_v62 }
 0x19f   :  { %4989 = vmatpush3.bf16.msra.mxu1 %v9092_v3 }
 0x1a0   :  { %4990 = vmatprep.subr.bf16.mxu1 %v9093_v5 }
 0x1a3   :  { %4991 = vmatpush3.bf16.msra.mxu1 %v9094_v15 }
 0x1a4   :  { %4992 = vmatprep.subr.bf16.mxu1 %v7003_v17 }
 0x1a7   :  { %4993 = vmatpush3.bf16.msra.mxu1 %v7009_v19 }
 0x1a8   :  { %4994 = vmatprep.subr.bf16.mxu1 %v7015_v21 }
 0x1ab   :  { %4995 = vmatpush3.bf16.msra.mxu1 %v7021_v30 }
 0x1ac   :  { %4996 = vmatprep.subr.bf16.mxu1 %v7027_v14 }
 0x1af   :  { %4997 = vmatpush3.bf16.msra.mxu1 %v7033_v34 }
 0x1b0   :  { %4998 = vmatprep.subr.bf16.mxu1 %v7039_v24 }
 0x1b3   :  { %4999 = vmatpush3.bf16.msra.mxu1 %v7045_v26 }
 0x1b4   :  { %5000 = vmatprep.subr.bf16.mxu1 %v7051_v28 }
 0x1b7   :  { %5001 = vmatpush3.bf16.msra.mxu1 %v7057_v25 }
 0x1b8   :  { %1518 = vmatprep.subr.bf16.mxu1 %v9087_v6 }
 0x1e9   :  { %v6979_v44 = vpop.f32.mrf.mxu0 }
 0x1eb   :  { %v5571_v46 = vpop.f32.mrf.mxu0 }
 0x1ed   :  { %v852_v49 = vpop.f32.mrf.mxu0 }
 0x1ee   :  { %v4526_v49 = vld [vmem:[%s8939_s1 + $0x40] sm:$0xff] }
 0x1ef   :  { %v5572_v52 = vpop.f32.mrf.mxu0  ;;  %v4531_v55 = vcombine.high %v4526_v49, %v4526_v49 }
 0x209   :  { %v4836_v23 = vpop.f32.mrf.mxu0 }
 0x20b   :  { %v4837_v32 = vpop.f32.mrf.mxu0 }
 0x20c   :  { %v4838_v29 = vadd.f32 %v4837_v32, %v4836_v23  ;;  %v4528_v23 = vld [vmem:[%s8939_s1 + $0x50] sm:$0xff]  ;;  %v4530_v32 = vcombine.low %v4526_v49, %v4526_v49 }
 0x20d   :  { %v4839_v9 = vpop.f32.mrf.mxu0  ;;  %v7175_v49 = vld [vmem:[%s8942_s4 + $0x110] sm:$0xff]  }
 0x20e   :  { %v935_v31 = vadd.f32 %v4838_v29, %v6831_v20  ;;  %v7103_v9 = vld [vmem:[%s8942_s4] sm:$0xff]   ;;  %v7109_v29 = vld [vmem:[%s8942_s4 + $0x178] sm:$0xff]   ;;  %9105 = vst [vmem:[#allocation20_spill] sm:$0xff] %v7175_v49 }
 0x20f   :  { %v4840_v16 = vpop.f32.mrf.mxu0 }
 0x210   :  { %v975_v47 = vadd.f32 %v6934_v39, %v935_v31  ;;  %v7082_v39 = vld [vmem:[%s8942_s4 + $0x48] sm:$0xff]   ;;  %v4535_v16 = vcombine.high %v4528_v23, %v4528_v23  ;;  %v7115_v31 = vld [vmem:[%s8942_s4 + $0x138] sm:$0xff]  }
 0x21e   :  { %v4930_v61 = vpop.f32.mrf.mxu1 }
 0x229   :  { %v4880_v40 = vpop.f32.mrf.mxu0 }
 0x22b   :  { %v4881_v42 = vpop.f32.mrf.mxu0 }
 0x22c   :  { %v4882_v48 = vadd.f32 %v4881_v42, %v4880_v40  ;;  %v7121_v40 = vld [vmem:[%s8942_s4 + $0x170] sm:$0xff]  }
 0x22d   :  { %v4883_v50 = vpop.f32.mrf.mxu0  ;;  %v7127_v42 = vld [vmem:[%s8942_s4 + $0x130] sm:$0xff]  }
 0x22e   :  { %v1015_v51 = vadd.f32 %v4882_v48, %v975_v47  ;;  %v7133_v47 = vld [vmem:[%s8942_s4 + $0x168] sm:$0xff]   ;;  %v7145_v50 = vld [vmem:[%s8942_s4 + $0x160] sm:$0xff]  }
 0x22f   :  { %v4884_v53 = vpop.f32.mrf.mxu0  ;;  %v7139_v48 = vld [vmem:[%s8942_s4 + $0x128] sm:$0xff]  }
 0x230   :  { %v1055_v54 = vadd.f32 %v6947_v45, %v1015_v51  ;;  %v7088_v45 = vld [vmem:[%s8942_s4 + $0x8] sm:$0xff]   ;;  %v7151_v51 = vld [vmem:[%s8942_s4 + $0x120] sm:$0xff]   ;;  %v7157_v53 = vld [vmem:[%s8942_s4 + $0x158] sm:$0xff]  }
 0x232   :  { %v1060_v46 = vmul.f32 0.01, %v1055_v54 }
 0x234   :  { %v1061_v52 = vmax.f32 %v1055_v54, %v1060_v46  ;;  %v7163_v54 = vld [vmem:[%s8942_s4 + $0x118] sm:$0xff]   ;;  %v7169_v46 = vld [vmem:[%s8942_s4 + $0x150] sm:$0xff]  }
 0x236   :  { %v1062_v57 = vpack.c.bf16 %v1061_v52, %v1061_v52  ;;  %v7181_v52 = vld [vmem:[%s8942_s4 + $0x148] sm:$0xff]  }
 0x237   :  { %9106 = vst [vmem:[#allocation21_spill] sm:$0xff] %v7181_v52 }
 0x238   :  { %5584 = vmatmul.mubr.msk.bf16.vlgmr.msra.gmra.mxu0 %vm805_vm6, %v1062_v57  ;;  %v7193_v57 = vld [vmem:[%s8942_s4 + $0x140] sm:$0xff]  }
 0x239   :  { %4893 = vmatpush3.bf16.msra.mxu0 %v6841_v11  ;;  %1181 = vmatprep.mubr.bf16.mxu0 %v4531_v55  ;;  %v7187_v55 = vld [vmem:[%s8942_s4 + $0x108] sm:$0xff]   ;;  %9108 = vst [vmem:[#allocation23_spill] sm:$0xff] %v7193_v57 }
 0x23a   :  { %4894 = vmatprep.subr.bf16.mxu0 %v6847_v8  ;;  %9107 = vst [vmem:[#allocation22_spill] sm:$0xff] %v7187_v55 }
 0x23d   :  { %4895 = vmatpush3.bf16.msra.mxu0 %v6853_v1 }
 0x23e   :  { %4896 = vmatprep.subr.bf16.mxu0 %v6859_v13 }
 0x241   :  { %4897 = vmatpush3.bf16.msra.mxu0 %v6865_v12 }
 0x242   :  { %4898 = vmatprep.subr.bf16.mxu0 %v6871_v4 }
 0x245   :  { %4899 = vmatpush3.bf16.msra.mxu0 %v6877_v0 }
 0x246   :  { %4900 = vmatprep.subr.bf16.mxu0 %v6883_v60 }
 0x249   :  { %4901 = vmatpush3.bf16.msra.mxu0 %v6889_v41 }
 0x24a   :  { %4902 = vmatprep.subr.bf16.mxu0 %v6895_v18 }
 0x24d   :  { %4903 = vmatpush3.bf16.msra.mxu0 %v6901_v22 }
 0x24e   :  { %4904 = vmatprep.subr.bf16.mxu0 %v7082_v39 }
 0x251   :  { %4905 = vmatpush3.bf16.msra.mxu0 %v7088_v45 }
 0x252   :  { %4906 = vmatprep.subr.bf16.mxu0 %v7094_v58 }
 0x255   :  { %4907 = vmatpush3.bf16.msra.mxu0 %v7103_v9 }
 0x256   :  { %4936 = vmatprep.subr.bf16.mxu0 %v7109_v29 }
 0x258   :  { %1182 = vmatmul.mubr.bf16.vlgmr.msra.gmra.mxu0 %v4530_v32  ;;  %v4534_v32 = vcombine.low %v4528_v23, %v4528_v23  ;;  %v4931_v23 = vpop.f32.mrf.mxu1 }
 0x259   :  { %4937 = vmatpush3.bf16.msra.mxu0 %v7115_v31  ;;  %1261 = vmatprep.mubr.bf16.mxu0 %v4535_v16  ;;  %v7199_v16 = vld [vmem:[%s8942_s4 + $0x100] sm:$0xff]   ;;  %v7209_v25 = vadd.f32 %v4931_v23, %v4930_v61 }
 0x25a   :  { %4938 = vmatprep.subr.bf16.mxu0 %v7121_v40  ;;  %9109 = vst [vmem:[#allocation24_spill] sm:$0xff] %v7199_v16  ;;  %v4933_v28 = vpop.f32.mrf.mxu1 }
 0x25b   :  { %v4541_v28 = vld [vmem:[%s8939_s1 + $0x68] sm:$0xff] }
 0x25c   :  { %v4546_v23 = vcombine.low %v4541_v28, %v4541_v28  ;;  %v4547_v14 = vcombine.high %v4541_v28, %v4541_v28  ;;  %v7262_v28 = vld [vmem:[%s8942_s4 + $0x188] sm:$0xff]  }
 0x25d   :  { %4939 = vmatpush3.bf16.msra.mxu0 %v7127_v42  ;;  %9115 = vst [vmem:[#allocation30_spill] sm:$0xff] %v7262_v28 }
 0x25e   :  { %4940 = vmatprep.subr.bf16.mxu0 %v7133_v47  ;;  %1470 = vmatprep.mubr.bf16.mxu1 %v4547_v14  ;;  %v7241_v14 = vld [vmem:[%s8942_s4 + $0x1a0] sm:$0xff]  }
 0x25f   :  { %1471 = vmatmul.mubr.bf16.vlgmr.msra.gmra.mxu1 %v4546_v23  ;;  %9112 = vst [vmem:[#allocation27_spill] sm:$0xff] %v7241_v14  ;;  %v7269_v23 = vld [vmem:[%s8942_s4 + $0x180] sm:$0xff]  }
 0x260   :  { %1519 = vmatpush1.bf16.msra.mxu1 %v6955_v56  ;;  %9116 = vst [vmem:[#allocation31_spill] sm:$0xff] %v7269_v23  ;;  %v1110_v56 = vpop.permute.xlu1 %1109 }
 0x261   :  { %4941 = vmatpush3.bf16.msra.mxu0 %v7139_v48  ;;  %1520 = vmatprep.subr.bf16.mxu1 %v9087_v6  ;;  %vm1111_vm8 = vcmp.eq.s32.totalorder %v1110_v56, 1  ;;  %v4543_v56 = vld [vmem:[%s8939_s1 + $0x78] sm:$0xff] }
 0x262   :  { %4942 = vmatprep.subr.bf16.mxu0 %v7145_v50 }
 0x265   :  { %4943 = vmatpush3.bf16.msra.mxu0 %v7151_v51 }
 0x266   :  { %4944 = vmatprep.subr.bf16.mxu0 %v7157_v53 }
 0x269   :  { %4945 = vmatpush3.bf16.msra.mxu0 %v7163_v54 }
 0x26a   :  { %4946 = vmatprep.subr.bf16.mxu0 %v7169_v46 }
 0x26d   :  { %4947 = vmatpush3.bf16.msra.mxu0 %v7175_v49 }
 0x26e   :  { %4948 = vmatprep.subr.bf16.mxu0 %v7181_v52 }
 0x271   :  { %4949 = vmatpush3.bf16.msra.mxu0 %v7187_v55 }
 0x272   :  { %4950 = vmatprep.subr.bf16.mxu0 %v7193_v57 }
 0x275   :  { %4951 = vmatpush3.bf16.msra.mxu0 %v7199_v16 }
 0x276   :  { %5587 = vmatprep.subr.bf16.mxu0 %v9089_v27 }
 0x278   :  { %1262 = vmatmul.mubr.bf16.vlgmr.msra.gmra.mxu0 %v4534_v32  ;;  %v4934_v32 = vpop.f32.mrf.mxu1 }
 0x279   :  { %5588 = vmatpush3.bf16.msra.mxu0 %v6703_v10  ;;  %5597 = vmatprep.mubr.msk.bf16.mxu0 %vm6218_vm3, %v9089_v27  ;;  %v7227_v32 = vld [vmem:[%s8942_s4 + $0x1b0] sm:$0xff]  }
 0x27a   :  { %5589 = vmatprep.subr.bf16.mxu0 %v9089_v27  ;;  %v7217_v26 = vpop.f32.mrf.mxu1  ;;  %9110 = vst [vmem:[#allocation25_spill] sm:$0xff] %v7227_v32  ;;  %1521 = vmatpush1.bf16.msra.mxu1 %v7227_v32 }
 0x27b   :  { %1522 = vmatprep.subr.bf16.mxu1 %v9087_v6 }
 0x27c   :  { %v1305_v24 = vpop.f32.mrf.mxu1 }
 0x27d   :  { %5590 = vmatpush3.bf16.msra.mxu0 %v6710_v35  ;;  %v7248_v24 = vld [vmem:[%s8942_s4 + $0x198] sm:$0xff]  }
 0x27e   :  { %5591 = vmatprep.subr.bf16.mxu0 %v9089_v27  ;;  %v1306_v34 = vpop.f32.mrf.mxu1  ;;  %9113 = vst [vmem:[#allocation28_spill] sm:$0xff] %v7248_v24 }
 0x27f   :  { %v7234_v34 = vld [vmem:[%s8942_s4 + $0x1a8] sm:$0xff]  }
 0x280   :  { %v1307_v61 = vpop.f32.mrf.mxu1  ;;  %9111 = vst [vmem:[#allocation26_spill] sm:$0xff] %v7234_v34  ;;  %1523 = vmatpush1.bf16.msra.mxu1 %v7234_v34 }
 0x281   :  { %5592 = vmatpush3.bf16.msra.mxu0 %v6717_v36  ;;  %1524 = vmatprep.subr.bf16.mxu1 %v9087_v6  ;;  %v7255_v61 = vld [vmem:[%s8942_s4 + $0x190] sm:$0xff]  }
 0x282   :  { %5593 = vmatprep.subr.bf16.mxu0 %v9089_v27  ;;  %9114 = vst [vmem:[#allocation29_spill] sm:$0xff] %v7255_v61 }
 0x284   :  { %1525 = vmatpush1.bf16.msra.mxu1 %v7241_v14 }
 0x285   :  { %5594 = vmatpush3.bf16.msra.mxu0 %v6725_v37  ;;  %1526 = vmatprep.subr.bf16.mxu1 %v9087_v6 }
 0x286   :  { %5595 = vmatprep.subr.bf16.mxu0 %v9089_v27 }
 0x288   :  { %1527 = vmatpush1.bf16.msra.mxu1 %v7248_v24  ;;  %v7294_v24 = vld [vmem:[%s8942_s4 + $0x1e0] sm:$0xff]  }
 0x289   :  { %5596 = vmatpush3.bf16.msra.mxu0 %v6732_v38  ;;  %1528 = vmatprep.subr.bf16.mxu1 %v9087_v6  ;;  %9119 = vst [vmem:[#allocation34_spill] sm:$0xff] %v7294_v24 }
 0x28a   :  { %4964 = vmatprep.subr.bf16.mxu0 %v6944_v43 }
 0x28c   :  { %1529 = vmatpush1.bf16.msra.mxu1 %v7255_v61  ;;  %v7278_v61 = vld [vmem:[%s8945_s7] ss:$0 sm:$0xff] }
 0x28d   :  { %1530 = vmatprep.subr.bf16.mxu1 %v9087_v6 }
 0x290   :  { %1531 = vmatpush1.bf16.msra.mxu1 %v7262_v28  ;;  %v7283_v28 = vld [vmem:[%s8942_s4 + $0x1e8] sm:$0xff]  }
 0x291   :  { %1532 = vmatprep.subr.bf16.mxu1 %v9087_v6  ;;  %9117 = vst [vmem:[#allocation32_spill] sm:$0xff] %v7283_v28 }
 0x294   :  { %1533 = vmatpush1.bf16.msra.mxu1 %v7269_v23  ;;  %v850_v23 = vadd.f32 %v7278_v61, %v6979_v44  ;;  %v7302_v44 = vld [vmem:[%s8942_s4 + $0x1d8] sm:$0xff]  }
 0x295   :  { %1536 = vmatprep.subr.bf16.mxu1 %v9087_v6  ;;  %9120 = vst [vmem:[#allocation35_spill] sm:$0xff] %v7302_v44 }
 0x296   :  { %v855_v14 = vmul.f32 0.01, %v850_v23 }
 0x298   :  { %1537 = vmatpush2.bf16.msra.mxu1 %v6627_v7  ;;  %v7289_v7 = vpop.xlane.xlu0 %3108  ;;  %v856_v30 = vmax.f32 %v850_v23, %v855_v14 }
 0x299   :  { %1538 = vmatprep.subr.bf16.mxu1 %v9087_v6  ;;  %9118 = vst [vmem:[#allocation33_spill] sm:$0xff] %v7289_v7 }
 0x29c   :  { %1539 = vmatpush2.bf16.msra.mxu1 %v7283_v28  ;;  %v861_v32 = vpop.permute.xlu0 %860 }
 0x29d   :  { %1540 = vmatprep.subr.bf16.mxu1 %v9087_v6  ;;  %vm862_vm7 = vcmp.eq.s32.totalorder %v861_v32, 1 }
 0x2a0   :  { %1541 = vmatpush2.bf16.msra.mxu1 %v7294_v24 }
 0x2a1   :  { %1542 = vmatprep.subr.bf16.mxu1 %v9087_v6 }
 0x2a4   :  { %1543 = vmatpush2.bf16.msra.mxu1 %v7302_v44  ;;  %v863_v44 = vsel %vm862_vm7, %v856_v30, 0.0  ;;  %v4550_v30 = vcombine.low %v4543_v56, %v4543_v56 }
 0x2a5   :  { %1544 = vmatprep.subr.bf16.mxu1 %v9087_v6 }
 0x2f8   :  { %v1100_v34 = vpop.f32.mrf.mxu0 }
 0x2f9   :  { %v1101_v28 = vadd.f32 %v7278_v61, %v1100_v34  ;;  %v7309_v34 = vld [vmem:[%s8942_s4 + $0x1d0] sm:$0xff]  }
 0x2fa   :  { %v5585_v7 = vpop.f32.mrf.mxu0  ;;  %9121 = vst [vmem:[#allocation36_spill] sm:$0xff] %v7309_v34  ;;  %1545 = vmatpush2.bf16.msra.mxu1 %v7309_v34  ;;  %v4540_v34 = vld [vmem:[%s8939_s1 + $0x60] sm:$0xff] }
 0x2fb   :  { %v1106_v24 = vmul.f32 0.01, %v1101_v28  ;;  %1546 = vmatprep.subr.bf16.mxu1 %v9087_v6  ;;  %v4545_v5 = vcombine.high %v4540_v34, %v4540_v34 }
 0x2fc   :  { %v1103_v21 = vpop.f32.mrf.mxu0 }
 0x2fd   :  { %v1107_v19 = vmax.f32 %v1101_v28, %v1106_v24  ;;  %v7318_v21 = vld [vmem:[%s8942_s4 + $0x1c8] sm:$0xff]  }
 0x2fe   :  { %v5586_v17 = vpop.f32.mrf.mxu0  ;;  %9122 = vst [vmem:[#allocation37_spill] sm:$0xff] %v7318_v21  ;;  %1547 = vmatpush2.bf16.msra.mxu1 %v7318_v21 }
 0x2ff   :  { %v1112_v7 = vsel %vm1111_vm8, %v1107_v19, 0.0  ;;  %1548 = vmatprep.subr.bf16.mxu1 %v9087_v6  ;;  %v4551_v17 = vcombine.high %v4543_v56, %v4543_v56  ;;  %v9011_v19 = vmov 2  }
 0x300   :  { %v7313_v15 = vadd.f32 %v1112_v7, %v863_v44  ;;  %5770 = vset.pattern.permute.xlu1 %v9011_v19  ;;  %5781 = vset.pattern.permute.xlu0 %v9011_v19 }
 0x301   :  { %4552 = vmatprep.mubr.msk.bf16.mxu1 %vm599_vm1, %v4551_v17  ;;  %1358 = vperm.xlu1 %5770, %v6808_v59  }
 0x302   :  { %1549 = vmatpush2.bf16.msra.mxu1 %v6674_v33 }
 0x303   :  { %5080 = vmatprep.subr.bf16.mxu1 %v7109_v29 }
 0x305   :  { %1551 = vmatmul.mubr.bf16.vlgmr.msra.gmra.mxu1 %v4550_v30 }
 0x306   :  { %5081 = vmatpush3.bf16.msra.mxu1 %v7115_v31 }
 0x307   :  { %5082 = vmatprep.subr.bf16.mxu1 %v7121_v40 }
 0x30a   :  { %5083 = vmatpush3.bf16.msra.mxu1 %v7127_v42 }
 0x30b   :  { %5084 = vmatprep.subr.bf16.mxu1 %v7133_v47 }
 0x30e   :  { %5085 = vmatpush3.bf16.msra.mxu1 %v7139_v48 }
 0x30f   :  { %5086 = vmatprep.subr.bf16.mxu1 %v7145_v50 }
 0x312   :  { %5087 = vmatpush3.bf16.msra.mxu1 %v7151_v51 }
 0x313   :  { %5088 = vmatprep.subr.bf16.mxu1 %v7157_v53 }
 0x316   :  { %5089 = vmatpush3.bf16.msra.mxu1 %v7163_v54 }
 0x317   :  { %5090 = vmatprep.subr.bf16.mxu1 %v7169_v46 }
 0x318   :  { %v4908_v33 = vpop.f32.mrf.mxu0 }
 0x31a   :  { %v4909_v32 = vpop.f32.mrf.mxu0  ;;  %5091 = vmatpush3.bf16.msra.mxu1 %v7175_v49 }
 0x31b   :  { %5092 = vmatprep.subr.bf16.mxu1 %v7181_v52  ;;  %v4910_v28 = vadd.f32 %v4909_v32, %v4908_v33 }
 0x31c   :  { %v4911_v14 = vpop.f32.mrf.mxu0 }
 0x31d   :  { %v1184_v23 = vadd.f32 %v4910_v28, %v6831_v20 }
 0x31e   :  { %v4912_v24 = vpop.f32.mrf.mxu0  ;;  %5093 = vmatpush3.bf16.msra.mxu1 %v7187_v55 }
 0x31f   :  { %5094 = vmatprep.subr.bf16.mxu1 %v7193_v57  ;;  %v1224_v56 = vadd.f32 %v7209_v25, %v1184_v23 }
 0x322   :  { %5095 = vmatpush3.bf16.msra.mxu1 %v7199_v16 }
 0x323   :  { %5615 = vmatprep.subr.bf16.mxu1 %v9089_v27 }
 0x338   :  { %v4952_v44 = vpop.f32.mrf.mxu0 }
 0x33a   :  { %v4953_v7 = vpop.f32.mrf.mxu0 }
 0x33b   :  { %v4954_v17 = vadd.f32 %v4953_v7, %v4952_v44 }
 0x33c   :  { %v4955_v30 = vpop.f32.mrf.mxu0 }
 0x33d   :  { %v1264_v14 = vadd.f32 %v4954_v17, %v1224_v56 }
 0x33e   :  { %v4956_v24 = vpop.f32.mrf.mxu0 }
 0x33f   :  { %v1304_v19 = vadd.f32 %v7217_v26, %v1264_v14 }
 0x341   :  { %v1309_v21 = vmul.f32 0.01, %v1304_v19 }
 0x343   :  { %v1310_v6 = vmax.f32 %v1304_v19, %v1309_v21 }
 0x345   :  { %v1311_v33 = vpack.c.bf16 %v1310_v6, %v1310_v6  ;;  %v4542_v6 = vld [vmem:[%s8939_s1 + $0x70] sm:$0xff] }
 0x346   :  { %v4549_v26 = vcombine.high %v4542_v6, %v4542_v6  ;;  %v4548_v25 = vcombine.low %v4542_v6, %v4542_v6 }
 0x347   :  { %5598 = vmatmul.mubr.msk.bf16.vlgmr.msra.gmra.mxu0 %vm805_vm6, %v1311_v33 }
 0x348   :  { %4965 = vmatpush3.bf16.msra.mxu0 %v6841_v11  ;;  %1430 = vmatprep.mubr.bf16.mxu0 %v4545_v5  ;;  %v4544_v5 = vcombine.low %v4540_v34, %v4540_v34  ;;  %v5002_v34 = vpop.f32.mrf.mxu1 }
 0x349   :  { %4966 = vmatprep.subr.bf16.mxu0 %v6847_v8 }
 0x34a   :  { %v5003_v21 = vpop.f32.mrf.mxu1 }
 0x34b   :  { %v5004_v19 = vadd.f32 %v5003_v21, %v5002_v34  ;;  %v4556_v21 = vld [vmem:[%s8939_s1 + $0x90] sm:$0xff] }
 0x34c   :  { %4967 = vmatpush3.bf16.msra.mxu0 %v6853_v1  ;;  %v5005_v32 = vpop.f32.mrf.mxu1 }
 0x34d   :  { %4968 = vmatprep.subr.bf16.mxu0 %v6859_v13  ;;  %v4563_v32 = vcombine.high %v4556_v21, %v4556_v21 }
 0x34e   :  { %v5006_v28 = vpop.f32.mrf.mxu1 }
 0x34f   :  { %v4562_v28 = vcombine.low %v4556_v21, %v4556_v21  ;;  %1759 = vmatprep.mubr.bf16.mxu1 %v4563_v32 }
 0x350   :  { %4969 = vmatpush3.bf16.msra.mxu0 %v6865_v12 }
 0x351   :  { %4970 = vmatprep.subr.bf16.mxu0 %v6871_v4  ;;  %1760 = vmatmul.mubr.bf16.vlgmr.msra.gmra.mxu1 %v4562_v28 }
 0x352   :  { %5616 = vmatpush3.bf16.msra.mxu1 %v6703_v10  ;;  %5625 = vmatprep.mubr.msk.bf16.mxu1 %vm6218_vm3, %v9089_v27 }
 0x353   :  { %5617 = vmatprep.subr.bf16.mxu1 %v9089_v27 }
 0x354   :  { %4971 = vmatpush3.bf16.msra.mxu0 %v6877_v0 }
 0x355   :  { %4972 = vmatprep.subr.bf16.mxu0 %v6883_v60 }
 0x356   :  { %5618 = vmatpush3.bf16.msra.mxu1 %v6710_v35 }
 0x357   :  { %5619 = vmatprep.subr.bf16.mxu1 %v9089_v27 }
 0x358   :  { %4973 = vmatpush3.bf16.msra.mxu0 %v6889_v41 }
 0x359   :  { %4974 = vmatprep.subr.bf16.mxu0 %v6895_v18 }
 0x35a   :  { %5620 = vmatpush3.bf16.msra.mxu1 %v6717_v36 }
 0x35b   :  { %5621 = vmatprep.subr.bf16.mxu1 %v9089_v27 }
 0x35c   :  { %4975 = vmatpush3.bf16.msra.mxu0 %v6901_v22 }
 0x35d   :  { %4976 = vmatprep.subr.bf16.mxu0 %v7082_v39 }
 0x35e   :  { %5622 = vmatpush3.bf16.msra.mxu1 %v6725_v37 }
 0x35f   :  { %5623 = vmatprep.subr.bf16.mxu1 %v9089_v27 }
 0x360   :  { %4977 = vmatpush3.bf16.msra.mxu0 %v7088_v45 }
 0x361   :  { %4978 = vmatprep.subr.bf16.mxu0 %v7094_v58 }
 0x362   :  { %5624 = vmatpush3.bf16.msra.mxu1 %v6732_v38 }
 0x363   :  { %5108 = vmatprep.subr.bf16.mxu1 %v6944_v43 }
 0x364   :  { %4979 = vmatpush3.bf16.msra.mxu0 %v7103_v9 }
 0x365   :  { %5008 = vmatprep.subr.bf16.mxu0 %v7109_v29 }
 0x367   :  { %1431 = vmatmul.mubr.bf16.vlgmr.msra.gmra.mxu0 %v4544_v5 }
 0x368   :  { %5009 = vmatpush3.bf16.msra.mxu0 %v7115_v31  ;;  %1510 = vmatprep.mubr.bf16.mxu0 %v4549_v26 }
 0x369   :  { %5010 = vmatprep.subr.bf16.mxu0 %v7121_v40 }
 0x36c   :  { %5011 = vmatpush3.bf16.msra.mxu0 %v7127_v42 }
 0x36d   :  { %5012 = vmatprep.subr.bf16.mxu0 %v7133_v47 }
 0x370   :  { %5013 = vmatpush3.bf16.msra.mxu0 %v7139_v48 }
 0x371   :  { %5014 = vmatprep.subr.bf16.mxu0 %v7145_v50 }
 0x374   :  { %5015 = vmatpush3.bf16.msra.mxu0 %v7151_v51 }
 0x375   :  { %5016 = vmatprep.subr.bf16.mxu0 %v7157_v53 }
 0x378   :  { %5017 = vmatpush3.bf16.msra.mxu0 %v7163_v54 }
 0x379   :  { %5018 = vmatprep.subr.bf16.mxu0 %v7169_v46 }
 0x37c   :  { %5019 = vmatpush3.bf16.msra.mxu0 %v7175_v49  ;;  %v1359_v14 = vpop.permute.xlu1 %1358 }
 0x37d   :  { %5020 = vmatprep.subr.bf16.mxu0 %v7181_v52  ;;  %vm1360_vm9 = vcmp.eq.s32.totalorder %v1359_v14, 1 }
 0x380   :  { %5021 = vmatpush3.bf16.msra.mxu0 %v7187_v55 }
 0x381   :  { %5022 = vmatprep.subr.bf16.mxu0 %v7193_v57 }
 0x384   :  { %5023 = vmatpush3.bf16.msra.mxu0 %v7199_v16 }
 0x385   :  { %5601 = vmatprep.subr.bf16.mxu0 %v9089_v27 }
 0x387   :  { %1511 = vmatmul.mubr.bf16.vlgmr.msra.gmra.mxu0 %v4548_v25 }
 0x388   :  { %5602 = vmatpush3.bf16.msra.mxu0 %v6703_v10  ;;  %5611 = vmatprep.mubr.msk.bf16.mxu0 %vm6218_vm3, %v9089_v27 }
 0x389   :  { %5603 = vmatprep.subr.bf16.mxu0 %v9089_v27 }
 0x38c   :  { %5604 = vmatpush3.bf16.msra.mxu0 %v6710_v35 }
 0x38d   :  { %5605 = vmatprep.subr.bf16.mxu0 %v9089_v27 }
 0x390   :  { %5606 = vmatpush3.bf16.msra.mxu0 %v6717_v36 }
 0x391   :  { %5607 = vmatprep.subr.bf16.mxu0 %v9089_v27 }
 0x394   :  { %5608 = vmatpush3.bf16.msra.mxu0 %v6725_v37 }
 0x395   :  { %5609 = vmatprep.subr.bf16.mxu0 %v9089_v27 }
 0x398   :  { %5610 = vmatpush3.bf16.msra.mxu0 %v6732_v38  ;;  %v4554_v38 = vld [vmem:[%s8939_s1 + $0x80] sm:$0xff] }
 0x399   :  { %5036 = vmatprep.subr.bf16.mxu0 %v6944_v43  ;;  %v4559_v32 = vcombine.high %v4554_v38, %v4554_v38 }
 0x3c5   :  { %v1552_v23 = vpop.f32.mrf.mxu1 }
 0x3c7   :  { %v1554_v44 = vpop.f32.mrf.mxu1 }
 0x3c9   :  { %v1555_v7 = vpop.f32.mrf.mxu1 }
 0x3cb   :  { %v1556_v56 = vpop.f32.mrf.mxu1 }
 0x407   :  { %v1349_v17 = vpop.f32.mrf.mxu0 }
 0x408   :  { %v1350_v30 = vadd.f32 %v7278_v61, %v1349_v17 }
 0x409   :  { %v5599_v24 = vpop.f32.mrf.mxu0 }
 0x40a   :  { %v1355_v33 = vmul.f32 0.01, %v1350_v30 }
 0x40b   :  { %v1352_v6 = vpop.f32.mrf.mxu0 }
 0x40c   :  { %v1356_v5 = vmax.f32 %v1350_v30, %v1355_v33 }
 0x40d   :  { %v5600_v26 = vpop.f32.mrf.mxu0 }
 0x40e   :  { %v1361_v25 = vsel %vm1360_vm9, %v1356_v5, 0.0  ;;  %vm4040_vm9 = vcmask 818176  }
 0x40f   :  { %v7403_v34 = vadd.f32 %v1361_v25, %v7313_v15  ;;  %v6221_v15 = vmov 3  }
 0x410   :  { %5771 = vset.pattern.permute.xlu1 %v6221_v15  ;;  %v9135_v15 = vmov 0  }
 0x411   :  { %1607 = vperm.xlu1 %5771, %v6808_v59  }
 0x427   :  { %v4980_v44 = vpop.f32.mrf.mxu0 }
 0x429   :  { %v4981_v7 = vpop.f32.mrf.mxu0 }
 0x42a   :  { %v4982_v17 = vadd.f32 %v4981_v7, %v4980_v44  ;;  %v9136_v44 = vld [vmem:[#allocation11_spill] sm:$0xff]  ;;  %v9137_v7 = vld [vmem:[#allocation25_spill] sm:$0xff] }
 0x42b   :  { %v4983_v35 = vpop.f32.mrf.mxu0 }
 0x42c   :  { %v1433_v30 = vadd.f32 %v4982_v17, %v6831_v20  ;;  %v4555_v20 = vld [vmem:[%s8939_s1 + $0x88] sm:$0xff]  ;;  %v9138_v35 = vld [vmem:[#allocation26_spill] sm:$0xff]  ;;  %v9140_v17 = vld [vmem:[#allocation28_spill] sm:$0xff] }
 0x42d   :  { %v4984_v56 = vpop.f32.mrf.mxu0 }
 0x42e   :  { %v1473_v36 = vadd.f32 %v5004_v19, %v1433_v30  ;;  %v9134_v19 = vld [vmem:[#allocation19_spill] sm:$0xff]  ;;  %v9141_v30 = vld [vmem:[#allocation29_spill] sm:$0xff] }
 0x42f   :  { %v9139_v56 = vld [vmem:[#allocation27_spill] sm:$0xff] }
 0x447   :  { %v5024_v14 = vpop.f32.mrf.mxu0 }
 0x449   :  { %v5025_v24 = vpop.f32.mrf.mxu0 }
 0x44a   :  { %v5026_v33 = vadd.f32 %v5025_v24, %v5024_v14  ;;  %v9142_v14 = vld [vmem:[#allocation30_spill] sm:$0xff]  ;;  %v9143_v24 = vld [vmem:[#allocation31_spill] sm:$0xff] }
 0x44b   :  { %v5027_v6 = vpop.f32.mrf.mxu0 }
 0x44c   :  { %v1513_v5 = vadd.f32 %v5026_v33, %v1473_v36  ;;  %v9144_v36 = vld [vmem:[#allocation5_spill] sm:$0xff]  ;;  %v9145_v33 = vld [vmem:[#allocation32_spill] sm:$0xff]  ;;  %v9146_v6 = vld [vmem:[#allocation34_spill] sm:$0xff] }
 0x44d   :  { %v5028_v37 = vpop.f32.mrf.mxu0 }
 0x44e   :  { %v1553_v26 = vadd.f32 %v1552_v23, %v1513_v5  ;;  %v9147_v5 = vld [vmem:[#allocation35_spill] sm:$0xff]  ;;  %v9148_v37 = vld [vmem:[#allocation36_spill] sm:$0xff] }
 0x450   :  { %v1558_v25 = vmul.f32 0.01, %v1553_v26 }
 0x452   :  { %v1559_v21 = vmax.f32 %v1553_v26, %v1558_v25  ;;  %v9149_v26 = vld [vmem:[#allocation37_spill] sm:$0xff] }
 0x454   :  { %v1560_v28 = vpack.c.bf16 %v1559_v21, %v1559_v21  ;;  %v5096_v21 = vpop.f32.mrf.mxu1 }
 0x456   :  { %5612 = vmatmul.mubr.msk.bf16.vlgmr.msra.gmra.mxu0 %vm805_vm6, %v1560_v28 }
 0x457   :  { %5037 = vmatpush3.bf16.msra.mxu0 %v6841_v11  ;;  %1679 = vmatprep.mubr.bf16.mxu0 %v4559_v32  ;;  %v4558_v11 = vcombine.low %v4554_v38, %v4554_v38  ;;  %v7496_v38 = vld [vmem:[%s8942_s4 + $0x1c0] sm:$0xff]   ;;  %v5097_v32 = vpop.f32.mrf.mxu1 }
 0x458   :  { %5038 = vmatprep.subr.bf16.mxu0 %v6847_v8  ;;  %v4561_v8 = vcombine.high %v4555_v20, %v4555_v20  ;;  %v5098_v28 = vadd.f32 %v5097_v32, %v5096_v21 }
 0x45b   :  { %5039 = vmatpush3.bf16.msra.mxu0 %v6853_v1  ;;  %v9123_v1 = vld [vmem:[#allocation9_spill] sm:$0xff] }
 0x45c   :  { %5040 = vmatprep.subr.bf16.mxu0 %v6859_v13  ;;  %v9124_v13 = vld [vmem:[#allocation10_spill] sm:$0xff]  ;;  %9150 = vst [vmem:[#allocation9_spill] sm:$0xff] %v7496_v38 }
 0x45f   :  { %5041 = vmatpush3.bf16.msra.mxu0 %v6865_v12  ;;  %v9125_v12 = vld [vmem:[#allocation7_spill] sm:$0xff] }
 0x460   :  { %5042 = vmatprep.subr.bf16.mxu0 %v6871_v4  ;;  %v9126_v4 = vld [vmem:[#allocation8_spill] sm:$0xff] }
 0x463   :  { %5043 = vmatpush3.bf16.msra.mxu0 %v6877_v0  ;;  %v9127_v0 = vld [vmem:[#allocation12_spill] sm:$0xff] }
 0x464   :  { %5044 = vmatprep.subr.bf16.mxu0 %v6883_v60  ;;  %v9128_v60 = vld [vmem:[#allocation13_spill] sm:$0xff] }
 0x467   :  { %5045 = vmatpush3.bf16.msra.mxu0 %v6889_v41  ;;  %v9131_v41 = vld [vmem:[#allocation16_spill] sm:$0xff] }
 0x468   :  { %5046 = vmatprep.subr.bf16.mxu0 %v6895_v18  ;;  %v9132_v18 = vld [vmem:[#allocation17_spill] sm:$0xff] }
 0x46b   :  { %5047 = vmatpush3.bf16.msra.mxu0 %v6901_v22  ;;  %v9133_v22 = vld [vmem:[#allocation18_spill] sm:$0xff] }
 0x46c   :  { %5048 = vmatprep.subr.bf16.mxu0 %v7082_v39 }
 0x46f   :  { %5049 = vmatpush3.bf16.msra.mxu0 %v7088_v45 }
 0x470   :  { %5050 = vmatprep.subr.bf16.mxu0 %v7094_v58 }
 0x473   :  { %5051 = vmatpush3.bf16.msra.mxu0 %v7103_v9 }
 0x474   :  { %5058 = vmatprep.subr.bf16.mxu0 %v6780_v63  ;;  %v9129_v63 = vld [vmem:[#allocation14_spill] sm:$0xff] }
 0x476   :  { %1680 = vmatmul.mubr.bf16.vlgmr.msra.gmra.mxu0 %v4558_v11 }
 0x477   :  { %5059 = vmatpush3.bf16.msra.mxu0 %v6786_v2  ;;  %1719 = vmatprep.mubr.bf16.mxu0 %v4561_v8  ;;  %v9130_v2 = vld [vmem:[#allocation15_spill] sm:$0xff] }
 0x478   :  { %5060 = vmatprep.subr.bf16.mxu0 %v9091_v62  ;;  %v4557_v62 = vld [vmem:[%s8939_s1 + $0x98] sm:$0xff] }
 0x479   :  { %v4565_v23 = vcombine.high %v4557_v62, %v4557_v62  ;;  %v4564_v25 = vcombine.low %v4557_v62, %v4557_v62 }
 0x47b   :  { %5061 = vmatpush3.bf16.msra.mxu0 %v9092_v3  ;;  %v4560_v3 = vcombine.low %v4555_v20, %v4555_v20  ;;  %v5099_v20 = vpop.f32.mrf.mxu1 }
 0x47c   :  { %5062 = vmatprep.subr.bf16.mxu0 %v9123_v1 }
 0x47d   :  { %v5100_v11 = vpop.f32.mrf.mxu1 }
 0x47f   :  { %5063 = vmatpush3.bf16.msra.mxu0 %v9124_v13 }
 0x480   :  { %5064 = vmatprep.subr.bf16.mxu0 %v9125_v12 }
 0x483   :  { %5065 = vmatpush3.bf16.msra.mxu0 %v9126_v4 }
 0x484   :  { %5066 = vmatprep.subr.bf16.mxu0 %v9127_v0 }
 0x487   :  { %5067 = vmatpush3.bf16.msra.mxu0 %v9128_v60 }
 0x488   :  { %5068 = vmatprep.subr.bf16.mxu0 %v9129_v63 }
 0x48b   :  { %5069 = vmatpush3.bf16.msra.mxu0 %v9130_v2 }
 0x48c   :  { %5070 = vmatprep.subr.bf16.mxu0 %v9131_v41  ;;  %v1608_v13 = vpop.permute.xlu1 %1607 }
 0x48d   :  { %vm1609_vm10 = vcmp.eq.s32.totalorder %v1608_v13, 1 }
 0x48f   :  { %5071 = vmatpush3.bf16.msra.mxu0 %v9132_v18 }
 0x490   :  { %5072 = vmatprep.subr.bf16.mxu0 %v9133_v22 }
 0x493   :  { %5073 = vmatpush3.bf16.msra.mxu0 %v9134_v19 }
 0x494   :  { %1767 = vmatprep.subr.bf16.mxu0 %v9135_v15 }
 0x496   :  { %1720 = vmatmul.mubr.bf16.vlgmr.msra.gmra.mxu0 %v4560_v3 }
 0x497   :  { %1768 = vmatpush1.bf16.msra.mxu0 %v9136_v44  ;;  %4566 = vmatprep.mubr.msk.bf16.mxu0 %vm599_vm1, %v4565_v23 }
 0x498   :  { %1769 = vmatprep.subr.bf16.mxu0 %v9135_v15 }
 0x49b   :  { %1770 = vmatpush1.bf16.msra.mxu0 %v9137_v7 }
 0x49c   :  { %1771 = vmatprep.subr.bf16.mxu0 %v9135_v15 }
 0x49f   :  { %1772 = vmatpush1.bf16.msra.mxu0 %v9138_v35 }
 0x4a0   :  { %1773 = vmatprep.subr.bf16.mxu0 %v9135_v15 }
 0x4a3   :  { %1774 = vmatpush1.bf16.msra.mxu0 %v9139_v56 }
 0x4a4   :  { %1775 = vmatprep.subr.bf16.mxu0 %v9135_v15 }
 0x4a7   :  { %1776 = vmatpush1.bf16.msra.mxu0 %v9140_v17 }
 0x4a8   :  { %1777 = vmatprep.subr.bf16.mxu0 %v9135_v15 }
 0x4ab   :  { %1778 = vmatpush1.bf16.msra.mxu0 %v9141_v30 }
 0x4ac   :  { %1779 = vmatprep.subr.bf16.mxu0 %v9135_v15 }
 0x4af   :  { %1780 = vmatpush1.bf16.msra.mxu0 %v9142_v14 }
 0x4b0   :  { %1781 = vmatprep.subr.bf16.mxu0 %v9135_v15 }
 0x4b3   :  { %1782 = vmatpush1.bf16.msra.mxu0 %v9143_v24 }
 0x4b4   :  { %1785 = vmatprep.subr.bf16.mxu0 %v9135_v15 }
 0x4b7   :  { %1786 = vmatpush2.bf16.msra.mxu0 %v9144_v36 }
 0x4b8   :  { %1787 = vmatprep.subr.bf16.mxu0 %v9135_v15 }
 0x4bb   :  { %1788 = vmatpush2.bf16.msra.mxu0 %v9145_v33 }
 0x4bc   :  { %1789 = vmatprep.subr.bf16.mxu0 %v9135_v15 }
 0x4bf   :  { %1790 = vmatpush2.bf16.msra.mxu0 %v9146_v6 }
 0x4c0   :  { %1791 = vmatprep.subr.bf16.mxu0 %v9135_v15 }
 0x4c3   :  { %1792 = vmatpush2.bf16.msra.mxu0 %v9147_v5 }
 0x4c4   :  { %1793 = vmatprep.subr.bf16.mxu0 %v9135_v15 }
 0x4c7   :  { %1794 = vmatpush2.bf16.msra.mxu0 %v9148_v37 }
 0x4c8   :  { %1795 = vmatprep.subr.bf16.mxu0 %v9135_v15 }
 0x4cb   :  { %1796 = vmatpush2.bf16.msra.mxu0 %v9149_v26 }
 0x4cc   :  { %1797 = vmatprep.subr.bf16.mxu0 %v9135_v15 }
 0x4cf   :  { %1798 = vmatpush2.bf16.msra.mxu0 %v7496_v38 }
 0x4d0   :  { %5152 = vmatprep.subr.bf16.mxu0 %v7109_v29 }
 0x4d2   :  { %1800 = vmatmul.mubr.bf16.vlgmr.msra.gmra.mxu0 %v4564_v25 }
 0x4d3   :  { %5153 = vmatpush3.bf16.msra.mxu0 %v7115_v31 }
 0x4d4   :  { %5154 = vmatprep.subr.bf16.mxu0 %v7121_v40 }
 0x4d7   :  { %5155 = vmatpush3.bf16.msra.mxu0 %v7127_v42 }
 0x4d8   :  { %5156 = vmatprep.subr.bf16.mxu0 %v7133_v47 }
 0x4db   :  { %5157 = vmatpush3.bf16.msra.mxu0 %v7139_v48 }
 0x4dc   :  { %5158 = vmatprep.subr.bf16.mxu0 %v7145_v50 }
 0x4df   :  { %5159 = vmatpush3.bf16.msra.mxu0 %v7151_v51 }
 0x4e0   :  { %5160 = vmatprep.subr.bf16.mxu0 %v7157_v53 }
 0x4e3   :  { %5161 = vmatpush3.bf16.msra.mxu0 %v7163_v54 }
 0x4e4   :  { %5162 = vmatprep.subr.bf16.mxu0 %v7169_v46 }
 0x4e7   :  { %5163 = vmatpush3.bf16.msra.mxu0 %v7175_v49 }
 0x4e8   :  { %5164 = vmatprep.subr.bf16.mxu0 %v7181_v52 }
 0x4eb   :  { %5165 = vmatpush3.bf16.msra.mxu0 %v7187_v55 }
 0x4ec   :  { %5166 = vmatprep.subr.bf16.mxu0 %v7193_v57 }
 0x4ef   :  { %5167 = vmatpush3.bf16.msra.mxu0 %v7199_v16 }
 0x4f0   :  { %5629 = vmatprep.subr.bf16.mxu0 %v9089_v27 }
 0x516   :  { %v1598_v8 = vpop.f32.mrf.mxu0 }
 0x517   :  { %v1599_v1 = vadd.f32 %v7278_v61, %v1598_v8  ;;  %v7523_v8 = vld [vmem:[%s8943_s5] ss:$0 sm:$0xff] }
 0x518   :  { %v5613_v62 = vpop.f32.mrf.mxu0 }
 0x519   :  { %v1604_v3 = vmul.f32 0.01, %v1599_v1 }
 0x51a   :  { %v1601_v23 = vpop.f32.mrf.mxu0 }
 0x51b   :  { %v1605_v44 = vmax.f32 %v1599_v1, %v1604_v3 }
 0x51c   :  { %v5614_v25 = vpop.f32.mrf.mxu0 }
 0x51d   :  { %v1610_v21 = vsel %vm1609_vm10, %v1605_v44, 0.0  ;;  %v7558_v25 = vld [vmem:[%s8944_s6] sm:$0xff]  }
 0x51e   :  { %v7518_v32 = vadd.f32 %v1610_v21, %v7403_v34  ;;  %v4570_v34 = vld [vmem:[%s8939_s1 + $0xb0] sm:$0xff] }
 0x51f   :  { %v4577_v3 = vcombine.high %v4570_v34, %v4570_v34  ;;  %v4576_v44 = vcombine.low %v4570_v34, %v4570_v34 }
 0x521   :  { %2008 = vmatprep.mubr.bf16.mxu0 %v4577_v3 }
 0x522   :  { %2009 = vmatmul.mubr.bf16.vlgmr.msra.gmra.mxu0 %v4576_v44 }
 0x523   :  { %5630 = vmatpush3.bf16.msra.mxu0 %v6703_v10  ;;  %5639 = vmatprep.mubr.msk.bf16.mxu0 %vm6218_vm3, %v9089_v27 }
 0x524   :  { %5631 = vmatprep.subr.bf16.mxu0 %v9089_v27 }
 0x536   :  { %v5052_v20 = vpop.f32.mrf.mxu0 }
 0x538   :  { %v5053_v11 = vpop.f32.mrf.mxu0 }
 0x539   :  { %v5054_v57 = vadd.f32 %v5053_v11, %v5052_v20 }
 0x53a   :  { %v5055_v16 = vpop.f32.mrf.mxu0 }
 0x53b   :  { %v1682_v13 = vadd.f32 %v7523_v8, %v5054_v57  ;;  %v7544_v57 = vld [vmem:[%s8944_s6 + $0x10] sm:$0xff]  }
 0x53c   :  { %v5056_v55 = vpop.f32.mrf.mxu0 }
 0x556   :  { %v5074_v52 = vpop.f32.mrf.mxu0 }
 0x558   :  { %v5075_v49 = vpop.f32.mrf.mxu0 }
 0x559   :  { %v5076_v1 = vadd.f32 %v5075_v49, %v5074_v52  ;;  %v7536_v49 = vld [vmem:[%s8944_s6 + $0x18] sm:$0xff]   ;;  %v6222_v52 = vmov 4  }
 0x55a   :  { %v5077_v62 = vpop.f32.mrf.mxu0  ;;  %5632 = vmatpush3.bf16.msra.mxu0 %v7536_v49  ;;  %5772 = vset.pattern.permute.xlu1 %v6222_v52  ;;  %v7587_v52 = vld [vmem:[%s8942_s4 + $0x68] sm:$0xff]  }
 0x55b   :  { %v1722_v23 = vadd.f32 %v5076_v1, %v1682_v13  ;;  %5633 = vmatprep.subr.bf16.mxu0 %v9089_v27  ;;  %1856 = vperm.xlu1 %5772, %v6808_v59   ;;  %v4568_v1 = vld [vmem:[%s8939_s1 + $0xa0] sm:$0xff] }
 0x55c   :  { %v5078_v16 = vpop.f32.mrf.mxu0 }
 0x55d   :  { %v1762_v55 = vadd.f32 %v5098_v28, %v1722_v23  ;;  %v7551_v28 = vld [vmem:[%s8944_s6 + $0x8] sm:$0xff]   ;;  %v4573_v23 = vcombine.high %v4568_v1, %v4568_v1  ;;  %v7569_v16 = vld [vmem:[%s8942_s4 + $0x38] sm:$0xff]  }
 0x55e   :  { %5634 = vmatpush3.bf16.msra.mxu0 %v7544_v57 }
 0x55f   :  { %5635 = vmatprep.subr.bf16.mxu0 %v9089_v27 }
 0x562   :  { %5636 = vmatpush3.bf16.msra.mxu0 %v7551_v28 }
 0x563   :  { %5637 = vmatprep.subr.bf16.mxu0 %v9089_v27 }
 0x566   :  { %5638 = vmatpush3.bf16.msra.mxu0 %v7558_v25 }
 0x567   :  { %5180 = vmatprep.subr.bf16.mxu0 %v6944_v43  ;;  %v7575_v43 = vld [vmem:[%s8942_s4 + $0x70] sm:$0xff]  }
 0x592   :  { %v1801_v21 = vpop.f32.mrf.mxu0 }
 0x593   :  { %v1802_v20 = vadd.f32 %v1801_v21, %v1762_v55  ;;  %v7581_v55 = vld [vmem:[%s8942_s4 + $0x30] sm:$0xff]   ;;  %v7593_v21 = vld [vmem:[%s8942_s4 + $0x28] sm:$0xff]  }
 0x594   :  { %v1803_v11 = vpop.f32.mrf.mxu0 }
 0x595   :  { %v1807_v13 = vmul.f32 0.01, %v1802_v20  ;;  %v7605_v11 = vld [vmem:[%s8942_s4 + $0x20] sm:$0xff]  }
 0x596   :  { %v1804_v34 = vpop.f32.mrf.mxu0 }
 0x597   :  { %v1808_v62 = vmax.f32 %v1802_v20, %v1807_v13  ;;  %v7599_v20 = vld [vmem:[%s8942_s4 + $0x60] sm:$0xff]   ;;  %v7611_v13 = vld [vmem:[%s8942_s4 + $0x58] sm:$0xff]  }
 0x598   :  { %v1805_v3 = vpop.f32.mrf.mxu0  ;;  %v7617_v34 = vld [vmem:[%s8942_s4 + $0x18] sm:$0xff]  }
 0x599   :  { %v1809_v44 = vpack.c.bf16 %v1808_v62, %v1808_v62  ;;  %9151 = vst [vmem:[#allocation10_spill] sm:$0xff] %v7617_v34  ;;  %v7623_v62 = vld [vmem:[%s8942_s4 + $0x50] sm:$0xff]  }
 0x59a   :  { %9152 = vst [vmem:[#allocation7_spill] sm:$0xff] %v7623_v62  ;;  %v7629_v3 = vld [vmem:[%s8942_s4 + $0x10] sm:$0xff]  }
 0x59b   :  { %5626 = vmatmul.mubr.msk.bf16.vlgmr.msra.gmra.mxu1 %vm805_vm6, %v1809_v44  ;;  %v4572_v44 = vcombine.low %v4568_v1, %v4568_v1  ;;  %v7672_v1 = vld [vmem:[%s8942_s4 + $0xa8] sm:$0xff]  }
 0x59c   :  { %5109 = vmatpush3.bf16.msra.mxu1 %v7569_v16  ;;  %1928 = vmatprep.mubr.bf16.mxu1 %v4573_v23  ;;  %v4569_v23 = vld [vmem:[%s8939_s1 + $0xa8] sm:$0xff] }
 0x59d   :  { %5110 = vmatprep.subr.bf16.mxu1 %v7575_v43 }
 0x5a0   :  { %5111 = vmatpush3.bf16.msra.mxu1 %v7581_v55 }
 0x5a1   :  { %5112 = vmatprep.subr.bf16.mxu1 %v7587_v52 }
 0x5a4   :  { %5113 = vmatpush3.bf16.msra.mxu1 %v7593_v21 }
 0x5a5   :  { %5114 = vmatprep.subr.bf16.mxu1 %v7599_v20 }
 0x5a8   :  { %5115 = vmatpush3.bf16.msra.mxu1 %v7605_v11 }
 0x5a9   :  { %5116 = vmatprep.subr.bf16.mxu1 %v7611_v13 }
 0x5ac   :  { %5117 = vmatpush3.bf16.msra.mxu1 %v7617_v34  ;;  %v7642_v34 = vld [vmem:[%s8942_s4 + $0xf8] sm:$0xff]  }
 0x5ad   :  { %5118 = vmatprep.subr.bf16.mxu1 %v7623_v62  ;;  %v4575_v62 = vcombine.high %v4569_v23, %v4569_v23 }
 0x5b0   :  { %5119 = vmatpush3.bf16.msra.mxu1 %v7629_v3 }
 0x5b1   :  { %5120 = vmatprep.subr.bf16.mxu1 %v7082_v39  ;;  %v7648_v39 = vld [vmem:[%s8942_s4 + $0xb8] sm:$0xff]  }
 0x5b4   :  { %5121 = vmatpush3.bf16.msra.mxu1 %v7088_v45  ;;  %v7654_v45 = vld [vmem:[%s8942_s4 + $0xf0] sm:$0xff]  }
 0x5b5   :  { %5122 = vmatprep.subr.bf16.mxu1 %v7094_v58  ;;  %v7660_v58 = vld [vmem:[%s8942_s4 + $0xb0] sm:$0xff]  }
 0x5b8   :  { %5123 = vmatpush3.bf16.msra.mxu1 %v7103_v9  ;;  %v7666_v9 = vld [vmem:[%s8942_s4 + $0xe8] sm:$0xff]  }
 0x5b9   :  { %5130 = vmatprep.subr.bf16.mxu1 %v7642_v34 }
 0x5bb   :  { %1929 = vmatmul.mubr.bf16.vlgmr.msra.gmra.mxu1 %v4572_v44 }
 0x5bc   :  { %5131 = vmatpush3.bf16.msra.mxu1 %v7648_v39  ;;  %1968 = vmatprep.mubr.bf16.mxu1 %v4575_v62  ;;  %v4574_v62 = vcombine.low %v4569_v23, %v4569_v23 }
 0x5bd   :  { %5132 = vmatprep.subr.bf16.mxu1 %v7654_v45 }
 0x5c0   :  { %5133 = vmatpush3.bf16.msra.mxu1 %v7660_v58 }
 0x5c1   :  { %5134 = vmatprep.subr.bf16.mxu1 %v7666_v9 }
 0x5c4   :  { %5135 = vmatpush3.bf16.msra.mxu1 %v7672_v1 }
 0x5c5   :  { %5136 = vmatprep.subr.bf16.mxu1 %v9125_v12  ;;  %v4571_v12 = vld [vmem:[%s8939_s1 + $0xb8] sm:$0xff] }
 0x5c8   :  { %5137 = vmatpush3.bf16.msra.mxu1 %v9126_v4  ;;  %v4579_v4 = vcombine.high %v4571_v12, %v4571_v12 }
 0x5c9   :  { %5138 = vmatprep.subr.bf16.mxu1 %v9127_v0  ;;  %v7692_v0 = vld [vmem:[%s8942_s4 + $0x1b8] sm:$0xff]  }
 0x5cc   :  { %5139 = vmatpush3.bf16.msra.mxu1 %v9128_v60  ;;  %v4578_v60 = vcombine.low %v4571_v12, %v4571_v12 }
 0x5cd   :  { %5140 = vmatprep.subr.bf16.mxu1 %v9129_v63 }
 0x5d0   :  { %5141 = vmatpush3.bf16.msra.mxu1 %v9130_v2 }
 0x5d1   :  { %5142 = vmatprep.subr.bf16.mxu1 %v9131_v41 }
 0x5d4   :  { %5143 = vmatpush3.bf16.msra.mxu1 %v9132_v18 }
 0x5d5   :  { %5144 = vmatprep.subr.bf16.mxu1 %v9133_v22 }
 0x5d8   :  { %5145 = vmatpush3.bf16.msra.mxu1 %v9134_v19 }
 0x5d9   :  { %2016 = vmatprep.subr.bf16.mxu1 %v9135_v15 }
 0x5db   :  { %1969 = vmatmul.mubr.bf16.vlgmr.msra.gmra.mxu1 %v4574_v62 }
 0x5dc   :  { %2017 = vmatpush1.bf16.msra.mxu1 %v7692_v0  ;;  %4580 = vmatprep.mubr.msk.bf16.mxu1 %vm599_vm1, %v4579_v4 }
 0x5dd   :  { %2018 = vmatprep.subr.bf16.mxu1 %v9135_v15 }
 0x5e0   :  { %2019 = vmatpush1.bf16.msra.mxu1 %v9137_v7 }
 0x5e1   :  { %2020 = vmatprep.subr.bf16.mxu1 %v9135_v15 }
 0x5e2   :  { %v5168_v63 = vpop.f32.mrf.mxu0 }
 0x5e4   :  { %2021 = vmatpush1.bf16.msra.mxu1 %v9138_v35  ;;  %v5169_v2 = vpop.f32.mrf.mxu0 }
 0x5e5   :  { %2022 = vmatprep.subr.bf16.mxu1 %v9135_v15  ;;  %v5170_v41 = vadd.f32 %v5169_v2, %v5168_v63  ;;  %v7764_v63 = vld [vmem:[%s8942_s4 + $0x78] sm:$0xff]  }
 0x5e6   :  { %v5171_v18 = vpop.f32.mrf.mxu0 }
 0x5e8   :  { %2023 = vmatpush1.bf16.msra.mxu1 %v9139_v56  ;;  %v5172_v22 = vpop.f32.mrf.mxu0 }
 0x5e9   :  { %2024 = vmatprep.subr.bf16.mxu1 %v9135_v15 }
 0x5ec   :  { %2025 = vmatpush1.bf16.msra.mxu1 %v9140_v17 }
 0x5ed   :  { %2026 = vmatprep.subr.bf16.mxu1 %v9135_v15 }
 0x5f0   :  { %2027 = vmatpush1.bf16.msra.mxu1 %v9141_v30 }
 0x5f1   :  { %2028 = vmatprep.subr.bf16.mxu1 %v9135_v15 }
 0x5f4   :  { %2029 = vmatpush1.bf16.msra.mxu1 %v9142_v14 }
 0x5f5   :  { %2030 = vmatprep.subr.bf16.mxu1 %v9135_v15 }
 0x5f8   :  { %2031 = vmatpush1.bf16.msra.mxu1 %v9143_v24 }
 0x5f9   :  { %2034 = vmatprep.subr.bf16.mxu1 %v9135_v15 }
 0x5fc   :  { %2035 = vmatpush2.bf16.msra.mxu1 %v9144_v36 }
 0x5fd   :  { %2036 = vmatprep.subr.bf16.mxu1 %v9135_v15 }
 0x600   :  { %2037 = vmatpush2.bf16.msra.mxu1 %v9145_v33 }
 0x601   :  { %2038 = vmatprep.subr.bf16.mxu1 %v9135_v15 }
 0x604   :  { %2039 = vmatpush2.bf16.msra.mxu1 %v9146_v6 }
 0x605   :  { %2040 = vmatprep.subr.bf16.mxu1 %v9135_v15 }
 0x608   :  { %2041 = vmatpush2.bf16.msra.mxu1 %v9147_v5 }
 0x609   :  { %2042 = vmatprep.subr.bf16.mxu1 %v9135_v15 }
 0x60c   :  { %2043 = vmatpush2.bf16.msra.mxu1 %v9148_v37 }
 0x60d   :  { %2044 = vmatprep.subr.bf16.mxu1 %v9135_v15 }
 0x610   :  { %2045 = vmatpush2.bf16.msra.mxu1 %v9149_v26  ;;  %v4584_v26 = vld [vmem:[%s8939_s1 + $0xd0] sm:$0xff] }
 0x611   :  { %2046 = vmatprep.subr.bf16.mxu1 %v9135_v15  ;;  %v4591_v44 = vcombine.high %v4584_v26, %v4584_v26  ;;  %v4590_v62 = vcombine.low %v4584_v26, %v4584_v26  ;;  %v7866_v26 = vld [vmem:[%s8942_s4 + $0xc0] sm:$0xff]  }
 0x614   :  { %2047 = vmatpush2.bf16.msra.mxu1 %v7496_v38 }
 0x615   :  { %5224 = vmatprep.subr.bf16.mxu1 %v7109_v29  ;;  %v9153_v29 = vld [vmem:[#allocation20_spill] sm:$0xff] }
 0x617   :  { %2049 = vmatmul.mubr.bf16.vlgmr.msra.gmra.mxu1 %v4578_v60  ;;  %v6223_v60 = vmov 5  }
 0x618   :  { %5225 = vmatpush3.bf16.msra.mxu1 %v7115_v31  ;;  %v9154_v31 = vld [vmem:[#allocation21_spill] sm:$0xff]  ;;  %2257 = vmatprep.mubr.bf16.mxu1 %v4591_v44 }
 0x619   :  { %5226 = vmatprep.subr.bf16.mxu1 %v7121_v40  ;;  %v9155_v40 = vld [vmem:[#allocation22_spill] sm:$0xff]  ;;  %5773 = vset.pattern.permute.xlu1 %v6223_v60 }
 0x61a   :  { %2105 = vperm.xlu1 %5773, %v6808_v59   ;;  %v7899_v60 = vld [vmem:[%s8942_s4 + $0x1a0] sm:$0xff]  }
 0x61b   :  { %9160 = vst [vmem:[#allocation8_spill] sm:$0xff] %v7899_v60 }
 0x61c   :  { %5227 = vmatpush3.bf16.msra.mxu1 %v7127_v42  ;;  %v9156_v42 = vld [vmem:[#allocation23_spill] sm:$0xff] }
 0x61d   :  { %5228 = vmatprep.subr.bf16.mxu1 %v7133_v47  ;;  %v9157_v47 = vld [vmem:[#allocation24_spill] sm:$0xff] }
 0x620   :  { %5229 = vmatpush3.bf16.msra.mxu1 %v7139_v48 }
 0x621   :  { %5230 = vmatprep.subr.bf16.mxu1 %v7145_v50 }
 0x624   :  { %5231 = vmatpush3.bf16.msra.mxu1 %v7151_v51  ;;  %v1857_v51 = vpop.permute.xlu1 %1856 }
 0x625   :  { %5232 = vmatprep.subr.bf16.mxu1 %v7157_v53  ;;  %vm1858_vm11 = vcmp.eq.s32.totalorder %v1857_v51, 1  ;;  %v9159_v51 = vld [vmem:[#allocation7_spill] sm:$0xff] }
 0x628   :  { %5233 = vmatpush3.bf16.msra.mxu1 %v7163_v54 }
 0x629   :  { %5234 = vmatprep.subr.bf16.mxu1 %v7169_v46 }
 0x62c   :  { %5235 = vmatpush3.bf16.msra.mxu1 %v9153_v29  ;;  %v4582_v29 = vld [vmem:[%s8939_s1 + $0xc0] sm:$0xff] }
 0x62d   :  { %5236 = vmatprep.subr.bf16.mxu1 %v9154_v31 }
 0x630   :  { %5237 = vmatpush3.bf16.msra.mxu1 %v9155_v40 }
 0x631   :  { %5238 = vmatprep.subr.bf16.mxu1 %v9156_v42 }
 0x634   :  { %5239 = vmatpush3.bf16.msra.mxu1 %v9157_v47  ;;  %v4587_v47 = vcombine.high %v4582_v29, %v4582_v29 }
 0x635   :  { %5643 = vmatprep.subr.bf16.mxu1 %v9089_v27 }
 0x637   :  { %2258 = vmatmul.mubr.bf16.vlgmr.msra.gmra.mxu1 %v4590_v62 }
 0x638   :  { %5644 = vmatpush3.bf16.msra.mxu1 %v6703_v10  ;;  %5653 = vmatprep.mubr.msk.bf16.mxu1 %vm6218_vm3, %v9089_v27 }
 0x639   :  { %5645 = vmatprep.subr.bf16.mxu1 %v9089_v27 }
 0x63c   :  { %5646 = vmatpush3.bf16.msra.mxu1 %v7536_v49 }
 0x63d   :  { %5647 = vmatprep.subr.bf16.mxu1 %v9089_v27 }
 0x640   :  { %5648 = vmatpush3.bf16.msra.mxu1 %v7544_v57 }
 0x641   :  { %5649 = vmatprep.subr.bf16.mxu1 %v9089_v27 }
 0x644   :  { %5650 = vmatpush3.bf16.msra.mxu1 %v7551_v28 }
 0x645   :  { %5651 = vmatprep.subr.bf16.mxu1 %v9089_v27 }
 0x648   :  { %5652 = vmatpush3.bf16.msra.mxu1 %v7558_v25 }
 0x649   :  { %5252 = vmatprep.subr.bf16.mxu1 %v7764_v63 }
 0x65b   :  { %v1847_v48 = vpop.f32.mrf.mxu1 }
 0x65c   :  { %v1848_v50 = vadd.f32 %v7278_v61, %v1847_v48 }
 0x65d   :  { %v5627_v53 = vpop.f32.mrf.mxu1 }
 0x65e   :  { %v1853_v54 = vmul.f32 0.01, %v1848_v50  ;;  %v7785_v53 = vld [vmem:[%s8942_s4 + $0x48] sm:$0xff]  }
 0x65f   :  { %v1850_v19 = vpop.f32.mrf.mxu1 }
 0x660   :  { %v1854_v46 = vmax.f32 %v1848_v50, %v1853_v54  ;;  %v9158_v50 = vld [vmem:[#allocation10_spill] sm:$0xff]  ;;  %v7791_v54 = vld [vmem:[%s8942_s4 + $0x8] sm:$0xff]  }
 0x661   :  { %v5628_v7 = vpop.f32.mrf.mxu1  ;;  %v7797_v19 = vld [vmem:[%s8942_s4 + $0x40] sm:$0xff]  }
 0x662   :  { %v1859_v35 = vsel %vm1858_vm11, %v1854_v46, 0.0  ;;  %v4583_v46 = vld [vmem:[%s8939_s1 + $0xc8] sm:$0xff]  ;;  %v4586_v7 = vcombine.low %v4582_v29, %v4582_v29 }
 0x663   :  { %v7743_v56 = vadd.f32 %v1859_v35, %v7518_v32  ;;  %v7806_v35 = vld [vmem:[%s8942_s4] sm:$0xff]   ;;  %v4588_v44 = vcombine.low %v4583_v46, %v4583_v46  ;;  %v7936_v29 = vld [vmem:[%s8942_s4 + $0x1e8] sm:$0xff]  }
 0x664   :  { %9165 = vst [vmem:[#allocation16_spill] sm:$0xff] %v7936_v29 }
 0x67b   :  { %v5124_v17 = vpop.f32.mrf.mxu1 }
 0x67d   :  { %v5125_v30 = vpop.f32.mrf.mxu1 }
 0x67e   :  { %v5126_v14 = vadd.f32 %v5125_v30, %v5124_v17  ;;  %v4589_v17 = vcombine.high %v4583_v46, %v4583_v46  ;;  %v7818_v30 = vld [vmem:[%s8942_s4 + $0xe0] sm:$0xff]   ;;  %v7972_v46 = vld [vmem:[%s8942_s4 + $0x178] sm:$0xff]  }
 0x67f   :  { %v5127_v24 = vpop.f32.mrf.mxu1  ;;  %9170 = vst [vmem:[#allocation25_spill] sm:$0xff] %v7972_v46 }
 0x680   :  { %v1931_v61 = vadd.f32 %v7523_v8, %v5126_v14  ;;  %v7824_v14 = vld [vmem:[%s8942_s4 + $0xa0] sm:$0xff]   ;;  %v7830_v24 = vld [vmem:[%s8942_s4 + $0xd8] sm:$0xff]  }
 0x681   :  { %v5128_v33 = vpop.f32.mrf.mxu1 }
 0x682   :  { %v7836_v33 = vld [vmem:[%s8942_s4 + $0x98] sm:$0xff]  }
 0x69b   :  { %v5146_v6 = vpop.f32.mrf.mxu1 }
 0x69d   :  { %v5147_v5 = vpop.f32.mrf.mxu1 }
 0x69e   :  { %v5148_v37 = vadd.f32 %v5147_v5, %v5146_v6  ;;  %v7842_v6 = vld [vmem:[%s8942_s4 + $0xd0] sm:$0xff]  }
 0x69f   :  { %v5149_v23 = vpop.f32.mrf.mxu1  ;;  %v7848_v5 = vld [vmem:[%s8942_s4 + $0x90] sm:$0xff]  }
 0x6a0   :  { %v1971_v12 = vadd.f32 %v5148_v37, %v1931_v61  ;;  %v7854_v61 = vld [vmem:[%s8942_s4 + $0xc8] sm:$0xff]   ;;  %v4585_v23 = vld [vmem:[%s8939_s1 + $0xd8] sm:$0xff] }
 0x6a1   :  { %v5150_v32 = vpop.f32.mrf.mxu1  ;;  %v7860_v37 = vld [vmem:[%s8942_s4 + $0x88] sm:$0xff]   ;;  %v4593_v62 = vcombine.high %v4585_v23, %v4585_v23 }
 0x6a2   :  { %v2011_v4 = vadd.f32 %v5170_v41, %v1971_v12  ;;  %v7875_v12 = vld [vmem:[%s8942_s4 + $0x80] sm:$0xff]   ;;  %v7885_v32 = vld [vmem:[%s8942_s4 + $0x1b0] sm:$0xff]  }
 0x6d7   :  { %v2050_v2 = vpop.f32.mrf.mxu1 }
 0x6d8   :  { %v2051_v41 = vadd.f32 %v2050_v2, %v2011_v4  ;;  %v7892_v4 = vld [vmem:[%s8942_s4 + $0x1a8] sm:$0xff]   ;;  %v7906_v2 = vld [vmem:[%s8942_s4 + $0x198] sm:$0xff]  }
 0x6d9   :  { %v2052_v18 = vpop.f32.mrf.mxu1  ;;  %9161 = vst [vmem:[#allocation12_spill] sm:$0xff] %v7906_v2 }
 0x6da   :  { %v2056_v22 = vmul.f32 0.01, %v2051_v41  ;;  %v7920_v18 = vld [vmem:[%s8942_s4 + $0x188] sm:$0xff]  }
 0x6db   :  { %v2053_v31 = vpop.f32.mrf.mxu1  ;;  %9163 = vst [vmem:[#allocation14_spill] sm:$0xff] %v7920_v18 }
 0x6dc   :  { %v2057_v40 = vmax.f32 %v2051_v41, %v2056_v22  ;;  %v7913_v41 = vld [vmem:[%s8942_s4 + $0x190] sm:$0xff]   ;;  %v7927_v22 = vld [vmem:[%s8942_s4 + $0x180] sm:$0xff]  }
 0x6dd   :  { %v2054_v42 = vpop.f32.mrf.mxu1  ;;  %9162 = vst [vmem:[#allocation13_spill] sm:$0xff] %v7913_v41  ;;  %9164 = vst [vmem:[#allocation15_spill] sm:$0xff] %v7927_v22  ;;  %v7943_v31 = vld [vmem:[%s8942_s4 + $0x1e0] sm:$0xff]  }
 0x6de   :  { %v2058_v48 = vpack.c.bf16 %v2057_v40, %v2057_v40  ;;  %9166 = vst [vmem:[#allocation17_spill] sm:$0xff] %v7943_v31  ;;  %v7950_v40 = vld [vmem:[%s8942_s4 + $0x1d8] sm:$0xff]   ;;  %v7957_v42 = vld [vmem:[%s8942_s4 + $0x1d0] sm:$0xff]  }
 0x6df   :  { %9167 = vst [vmem:[#allocation18_spill] sm:$0xff] %v7950_v40  ;;  %9168 = vst [vmem:[#allocation19_spill] sm:$0xff] %v7957_v42 }
 0x6e0   :  { %5640 = vmatmul.mubr.msk.bf16.vlgmr.msra.gmra.mxu0 %vm805_vm6, %v2058_v48  ;;  %v4592_v48 = vcombine.low %v4585_v23, %v4585_v23  ;;  %v7990_v23 = vld [vmem:[%s8942_s4 + $0x130] sm:$0xff]  }
 0x6e1   :  { %5181 = vmatpush3.bf16.msra.mxu0 %v7569_v16  ;;  %2177 = vmatprep.mubr.bf16.mxu0 %v4587_v47  ;;  %v7964_v47 = vld [vmem:[%s8942_s4 + $0x1c8] sm:$0xff]   ;;  %9173 = vst [vmem:[#allocation28_spill] sm:$0xff] %v7990_v23 }
 0x6e2   :  { %5182 = vmatprep.subr.bf16.mxu0 %v7575_v43  ;;  %9169 = vst [vmem:[#allocation11_spill] sm:$0xff] %v7964_v47 }
 0x6e5   :  { %5183 = vmatpush3.bf16.msra.mxu0 %v7581_v55 }
 0x6e6   :  { %5184 = vmatprep.subr.bf16.mxu0 %v7587_v52 }
 0x6e9   :  { %5185 = vmatpush3.bf16.msra.mxu0 %v7593_v21 }
 0x6ea   :  { %5186 = vmatprep.subr.bf16.mxu0 %v7599_v20 }
 0x6ed   :  { %5187 = vmatpush3.bf16.msra.mxu0 %v7605_v11 }
 0x6ee   :  { %5188 = vmatprep.subr.bf16.mxu0 %v7611_v13 }
 0x6f1   :  { %5189 = vmatpush3.bf16.msra.mxu0 %v9158_v50 }
 0x6f2   :  { %5190 = vmatprep.subr.bf16.mxu0 %v9159_v51 }
 0x6f5   :  { %5191 = vmatpush3.bf16.msra.mxu0 %v7629_v3 }
 0x6f6   :  { %5192 = vmatprep.subr.bf16.mxu0 %v7785_v53 }
 0x6f9   :  { %5193 = vmatpush3.bf16.msra.mxu0 %v7791_v54 }
 0x6fa   :  { %5194 = vmatprep.subr.bf16.mxu0 %v7797_v19 }
 0x6fd   :  { %5195 = vmatpush3.bf16.msra.mxu0 %v7806_v35 }
 0x6fe   :  { %5202 = vmatprep.subr.bf16.mxu0 %v7642_v34 }
 0x700   :  { %2178 = vmatmul.mubr.bf16.vlgmr.msra.gmra.mxu0 %v4586_v7  ;;  %v7978_v7 = vld [vmem:[%s8942_s4 + $0x138] sm:$0xff]  }
 0x701   :  { %5203 = vmatpush3.bf16.msra.mxu0 %v7648_v39  ;;  %2217 = vmatprep.mubr.bf16.mxu0 %v4589_v17  ;;  %9171 = vst [vmem:[#allocation26_spill] sm:$0xff] %v7978_v7  ;;  %v7984_v17 = vld [vmem:[%s8942_s4 + $0x170] sm:$0xff]  }
 0x702   :  { %5204 = vmatprep.subr.bf16.mxu0 %v7654_v45  ;;  %9172 = vst [vmem:[#allocation27_spill] sm:$0xff] %v7984_v17 }
 0x705   :  { %5205 = vmatpush3.bf16.msra.mxu0 %v7660_v58 }
 0x706   :  { %5206 = vmatprep.subr.bf16.mxu0 %v7666_v9 }
 0x709   :  { %5207 = vmatpush3.bf16.msra.mxu0 %v7672_v1 }
 0x70a   :  { %5208 = vmatprep.subr.bf16.mxu0 %v7818_v30 }
 0x70d   :  { %5209 = vmatpush3.bf16.msra.mxu0 %v7824_v14 }
 0x70e   :  { %5210 = vmatprep.subr.bf16.mxu0 %v7830_v24 }
 0x711   :  { %5211 = vmatpush3.bf16.msra.mxu0 %v7836_v33 }
 0x712   :  { %5212 = vmatprep.subr.bf16.mxu0 %v7842_v6 }
 0x715   :  { %5213 = vmatpush3.bf16.msra.mxu0 %v7848_v5 }
 0x716   :  { %5214 = vmatprep.subr.bf16.mxu0 %v7854_v61 }
 0x719   :  { %5215 = vmatpush3.bf16.msra.mxu0 %v7860_v37 }
 0x71a   :  { %5216 = vmatprep.subr.bf16.mxu0 %v7866_v26 }
 0x71d   :  { %5217 = vmatpush3.bf16.msra.mxu0 %v7875_v12 }
 0x71e   :  { %2265 = vmatprep.subr.bf16.mxu0 %v9135_v15 }
 0x720   :  { %2218 = vmatmul.mubr.bf16.vlgmr.msra.gmra.mxu0 %v4588_v44  ;;  %v5240_v44 = vpop.f32.mrf.mxu1 }
 0x721   :  { %2266 = vmatpush1.bf16.msra.mxu0 %v7692_v0  ;;  %4594 = vmatprep.mubr.msk.bf16.mxu0 %vm599_vm1, %v4593_v62  ;;  %v7996_v62 = vld [vmem:[%s8942_s4 + $0x168] sm:$0xff]  }
 0x722   :  { %2267 = vmatprep.subr.bf16.mxu0 %v9135_v15  ;;  %9174 = vst [vmem:[#allocation29_spill] sm:$0xff] %v7996_v62 }
 0x725   :  { %2268 = vmatpush1.bf16.msra.mxu0 %v7885_v32 }
 0x726   :  { %2269 = vmatprep.subr.bf16.mxu0 %v9135_v15 }
 0x729   :  { %2270 = vmatpush1.bf16.msra.mxu0 %v7892_v4 }
 0x72a   :  { %2271 = vmatprep.subr.bf16.mxu0 %v9135_v15 }
 0x72d   :  { %2272 = vmatpush1.bf16.msra.mxu0 %v7899_v60 }
 0x72e   :  { %2273 = vmatprep.subr.bf16.mxu0 %v9135_v15 }
 0x731   :  { %2274 = vmatpush1.bf16.msra.mxu0 %v7906_v2 }
 0x732   :  { %2275 = vmatprep.subr.bf16.mxu0 %v9135_v15 }
 0x735   :  { %2276 = vmatpush1.bf16.msra.mxu0 %v7913_v41 }
 0x736   :  { %2277 = vmatprep.subr.bf16.mxu0 %v9135_v15 }
 0x739   :  { %2278 = vmatpush1.bf16.msra.mxu0 %v7920_v18 }
 0x73a   :  { %2279 = vmatprep.subr.bf16.mxu0 %v9135_v15 }
 0x73d   :  { %2280 = vmatpush1.bf16.msra.mxu0 %v7927_v22 }
 0x73e   :  { %2283 = vmatprep.subr.bf16.mxu0 %v9135_v15 }
 0x741   :  { %2284 = vmatpush2.bf16.msra.mxu0 %v9144_v36 }
 0x742   :  { %2285 = vmatprep.subr.bf16.mxu0 %v9135_v15 }
 0x745   :  { %2286 = vmatpush2.bf16.msra.mxu0 %v7936_v29 }
 0x746   :  { %2287 = vmatprep.subr.bf16.mxu0 %v9135_v15 }
 0x749   :  { %2288 = vmatpush2.bf16.msra.mxu0 %v7943_v31 }
 0x74a   :  { %2289 = vmatprep.subr.bf16.mxu0 %v9135_v15 }
 0x74d   :  { %2290 = vmatpush2.bf16.msra.mxu0 %v7950_v40 }
 0x74e   :  { %2291 = vmatprep.subr.bf16.mxu0 %v9135_v15 }
 0x751   :  { %2292 = vmatpush2.bf16.msra.mxu0 %v7957_v42 }
 0x752   :  { %2293 = vmatprep.subr.bf16.mxu0 %v9135_v15 }
 0x755   :  { %2294 = vmatpush2.bf16.msra.mxu0 %v7964_v47 }
 0x756   :  { %2295 = vmatprep.subr.bf16.mxu0 %v9135_v15 }
 0x759   :  { %2296 = vmatpush2.bf16.msra.mxu0 %v7496_v38 }
 0x75a   :  { %5296 = vmatprep.subr.bf16.mxu0 %v7972_v46 }
 0x75c   :  { %2298 = vmatmul.mubr.bf16.vlgmr.msra.gmra.mxu0 %v4592_v48  ;;  %v5241_v48 = vpop.f32.mrf.mxu1 }
 0x75d   :  { %5297 = vmatpush3.bf16.msra.mxu0 %v7978_v7  ;;  %v5242_v7 = vadd.f32 %v5241_v48, %v5240_v44  ;;  %v8014_v44 = vld [vmem:[%s8942_s4 + $0x120] sm:$0xff]   ;;  %v8020_v48 = vld [vmem:[%s8942_s4 + $0x158] sm:$0xff]  }
 0x75e   :  { %5298 = vmatprep.subr.bf16.mxu0 %v7984_v17  ;;  %v8002_v17 = vld [vmem:[%s8942_s4 + $0x128] sm:$0xff]   ;;  %v5243_v46 = vpop.f32.mrf.mxu1  ;;  %9177 = vst [vmem:[#allocation32_spill] sm:$0xff] %v8014_v44  ;;  %9178 = vst [vmem:[#allocation34_spill] sm:$0xff] %v8020_v48 }
 0x75f   :  { %9175 = vst [vmem:[#allocation30_spill] sm:$0xff] %v8002_v17  ;;  %v8026_v46 = vld [vmem:[%s8942_s4 + $0x118] sm:$0xff]  }
 0x760   :  { %v5244_v38 = vpop.f32.mrf.mxu1  ;;  %9179 = vst [vmem:[#allocation35_spill] sm:$0xff] %v8026_v46 }
 0x761   :  { %5299 = vmatpush3.bf16.msra.mxu0 %v7990_v23  ;;  %v8008_v23 = vld [vmem:[%s8942_s4 + $0x160] sm:$0xff]   ;;  %v8032_v38 = vld [vmem:[%s8942_s4 + $0x150] sm:$0xff]  }
 0x762   :  { %5300 = vmatprep.subr.bf16.mxu0 %v7996_v62  ;;  %9176 = vst [vmem:[#allocation31_spill] sm:$0xff] %v8008_v23  ;;  %9180 = vst [vmem:[#allocation36_spill] sm:$0xff] %v8032_v38 }
 0x765   :  { %5301 = vmatpush3.bf16.msra.mxu0 %v8002_v17  ;;  %v2106_v17 = vpop.permute.xlu1 %2105 }
 0x766   :  { %5302 = vmatprep.subr.bf16.mxu0 %v8008_v23  ;;  %vm2107_vm12 = vcmp.eq.s32.totalorder %v2106_v17, 1 }
 0x769   :  { %5303 = vmatpush3.bf16.msra.mxu0 %v8014_v44  ;;  %v8038_v44 = vld [vmem:[%s8942_s4 + $0x110] sm:$0xff]  }
 0x76a   :  { %5304 = vmatprep.subr.bf16.mxu0 %v8020_v48  ;;  %9181 = vst [vmem:[#allocation37_spill] sm:$0xff] %v8038_v44  ;;  %v8044_v48 = vld [vmem:[%s8942_s4 + $0x148] sm:$0xff]  }
 0x76b   :  { %9182 = vst [vmem:[#allocation20_spill] sm:$0xff] %v8044_v48 }
 0x76d   :  { %5305 = vmatpush3.bf16.msra.mxu0 %v8026_v46  ;;  %v8050_v46 = vld [vmem:[%s8942_s4 + $0x108] sm:$0xff]  }
 0x76e   :  { %5306 = vmatprep.subr.bf16.mxu0 %v8032_v38  ;;  %9183 = vst [vmem:[#allocation21_spill] sm:$0xff] %v8050_v46  ;;  %v8056_v38 = vld [vmem:[%s8942_s4 + $0x140] sm:$0xff]  }
 0x76f   :  { %9184 = vst [vmem:[#allocation22_spill] sm:$0xff] %v8056_v38 }
 0x771   :  { %5307 = vmatpush3.bf16.msra.mxu0 %v8038_v44  ;;  %v8062_v44 = vld [vmem:[%s8942_s4 + $0x100] sm:$0xff]  }
 0x772   :  { %5308 = vmatprep.subr.bf16.mxu0 %v8044_v48  ;;  %9185 = vst [vmem:[#allocation23_spill] sm:$0xff] %v8062_v44 }
 0x775   :  { %5309 = vmatpush3.bf16.msra.mxu0 %v8050_v46  ;;  %v8069_v46 = vld [vmem:[%s8945_s7] ss:$0 sm:$0xff] }
 0x776   :  { %5310 = vmatprep.subr.bf16.mxu0 %v8056_v38  ;;  %9186 = vst [vmem:[#allocation24_spill] sm:$0xff] %v8069_v46 }
 0x779   :  { %5311 = vmatpush3.bf16.msra.mxu0 %v8062_v44 }
 0x77a   :  { %5657 = vmatprep.subr.bf16.mxu0 %v9089_v27 }
 0x7a0   :  { %v2096_v48 = vpop.f32.mrf.mxu0 }
 0x7a1   :  { %v2097_v23 = vadd.f32 %v8069_v46, %v2096_v48 }
 0x7a2   :  { %v5641_v62 = vpop.f32.mrf.mxu0 }
 0x7a3   :  { %v2102_v38 = vmul.f32 0.01, %v2097_v23 }
 0x7a4   :  { %v2099_v47 = vpop.f32.mrf.mxu0 }
 0x7a5   :  { %v2103_v42 = vmax.f32 %v2097_v23, %v2102_v38  ;;  %v4598_v47 = vld [vmem:[%s8939_s1 + $0xf0] sm:$0xff] }
 0x7a6   :  { %v5642_v40 = vpop.f32.mrf.mxu0  ;;  %v4604_v23 = vcombine.low %v4598_v47, %v4598_v47 }
 0x7a7   :  { %v2108_v31 = vsel %vm2107_vm12, %v2103_v42, 0.0  ;;  %v4605_v40 = vcombine.high %v4598_v47, %v4598_v47 }
 0x7a8   :  { %v8073_v44 = vadd.f32 %v2108_v31, %v7743_v56 }
 0x7a9   :  { %2506 = vmatprep.mubr.bf16.mxu0 %v4605_v40  ;;  %v4599_v40 = vld [vmem:[%s8939_s1 + $0xf8] sm:$0xff] }
 0x7aa   :  { %2507 = vmatmul.mubr.bf16.vlgmr.msra.gmra.mxu0 %v4604_v23  ;;  %v4607_v23 = vcombine.high %v4599_v40, %v4599_v40 }
 0x7ab   :  { %5658 = vmatpush3.bf16.msra.mxu0 %v6703_v10  ;;  %5667 = vmatprep.mubr.msk.bf16.mxu0 %vm6218_vm3, %v9089_v27 }
 0x7ac   :  { %5659 = vmatprep.subr.bf16.mxu0 %v9089_v27 }
 0x7af   :  { %5660 = vmatpush3.bf16.msra.mxu0 %v7536_v49 }
 0x7b0   :  { %5661 = vmatprep.subr.bf16.mxu0 %v9089_v27 }
 0x7b3   :  { %5662 = vmatpush3.bf16.msra.mxu0 %v7544_v57 }
 0x7b4   :  { %5663 = vmatprep.subr.bf16.mxu0 %v9089_v27 }
 0x7b7   :  { %5664 = vmatpush3.bf16.msra.mxu0 %v7551_v28 }
 0x7b8   :  { %5665 = vmatprep.subr.bf16.mxu0 %v9089_v27 }
 0x7bb   :  { %5666 = vmatpush3.bf16.msra.mxu0 %v7558_v25 }
 0x7bc   :  { %5324 = vmatprep.subr.bf16.mxu0 %v7764_v63 }
 0x7c0   :  { %v5196_v29 = vpop.f32.mrf.mxu0 }
 0x7c2   :  { %v5197_v36 = vpop.f32.mrf.mxu0 }
 0x7c3   :  { %v5198_v22 = vadd.f32 %v5197_v36, %v5196_v29  ;;  %v6224_v36 = vmov 6  }
 0x7c4   :  { %v5199_v18 = vpop.f32.mrf.mxu0  ;;  %5774 = vset.pattern.permute.xlu1 %v6224_v36  ;;  %v9189_v36 = vld [vmem:[#allocation13_spill] sm:$0xff] }
 0x7c5   :  { %v2180_v48 = vadd.f32 %v7523_v8, %v5198_v22  ;;  %2354 = vperm.xlu1 %5774, %v6808_v59   ;;  %v4596_v22 = vld [vmem:[%s8939_s1 + $0xe0] sm:$0xff] }
 0x7c6   :  { %v5200_v41 = vpop.f32.mrf.mxu0  ;;  %v4600_v47 = vcombine.low %v4596_v22, %v4596_v22 }
 0x7e0   :  { %v5218_v2 = vpop.f32.mrf.mxu0 }
 0x7e2   :  { %v5219_v60 = vpop.f32.mrf.mxu0 }
 0x7e3   :  { %v5220_v46 = vadd.f32 %v5219_v60, %v5218_v2 }
 0x7e4   :  { %v5221_v17 = vpop.f32.mrf.mxu0 }
 0x7e5   :  { %v2220_v42 = vadd.f32 %v5220_v46, %v2180_v48  ;;  %v4601_v46 = vcombine.high %v4596_v22, %v4596_v22  ;;  %v4597_v48 = vld [vmem:[%s8939_s1 + $0xe8] sm:$0xff]  ;;  %v9194_v22 = vld [vmem:[#allocation17_spill] sm:$0xff] }
 0x7e6   :  { %v5222_v56 = vpop.f32.mrf.mxu0  ;;  %v4603_v17 = vcombine.high %v4597_v48, %v4597_v48 }
 0x7e7   :  { %v2260_v31 = vadd.f32 %v5242_v7, %v2220_v42  ;;  %v4602_v42 = vcombine.low %v4597_v48, %v4597_v48  ;;  %v9187_v56 = vld [vmem:[#allocation8_spill] sm:$0xff]  ;;  %v9199_v48 = vld [vmem:[#allocation25_spill] sm:$0xff] }
 0x81c   :  { %v2299_v60 = vpop.f32.mrf.mxu0 }
 0x81d   :  { %v2300_v2 = vadd.f32 %v2299_v60, %v2260_v31  ;;  %v9188_v31 = vld [vmem:[#allocation12_spill] sm:$0xff]  ;;  %v9190_v60 = vld [vmem:[#allocation14_spill] sm:$0xff] }
 0x81e   :  { %v2301_v41 = vpop.f32.mrf.mxu0 }
 0x81f   :  { %v2305_v18 = vmul.f32 0.01, %v2300_v2  ;;  %v9192_v41 = vld [vmem:[#allocation5_spill] sm:$0xff] }
 0x820   :  { %v2302_v29 = vpop.f32.mrf.mxu0 }
 0x821   :  { %v2306_v7 = vmax.f32 %v2300_v2, %v2305_v18  ;;  %v9191_v2 = vld [vmem:[#allocation15_spill] sm:$0xff]  ;;  %v9193_v18 = vld [vmem:[#allocation16_spill] sm:$0xff]  ;;  %v9195_v29 = vld [vmem:[#allocation18_spill] sm:$0xff] }
 0x822   :  { %v2303_v62 = vpop.f32.mrf.mxu0 }
 0x823   :  { %v2307_v38 = vpack.c.bf16 %v2306_v7, %v2306_v7  ;;  %v9196_v7 = vld [vmem:[#allocation19_spill] sm:$0xff] }
 0x824   :  { %v9197_v62 = vld [vmem:[#allocation11_spill] sm:$0xff] }
 0x825   :  { %5654 = vmatmul.mubr.msk.bf16.vlgmr.msra.gmra.mxu1 %vm805_vm6, %v2307_v38  ;;  %v9198_v38 = vld [vmem:[#allocation9_spill] sm:$0xff] }
 0x826   :  { %5253 = vmatpush3.bf16.msra.mxu1 %v7569_v16  ;;  %2426 = vmatprep.mubr.bf16.mxu1 %v4601_v46  ;;  %v4606_v46 = vcombine.low %v4599_v40, %v4599_v40  ;;  %v9205_v40 = vld [vmem:[#allocation31_spill] sm:$0xff] }
 0x827   :  { %5254 = vmatprep.subr.bf16.mxu1 %v7575_v43 }
 0x82a   :  { %5255 = vmatpush3.bf16.msra.mxu1 %v7581_v55 }
 0x82b   :  { %5256 = vmatprep.subr.bf16.mxu1 %v7587_v52 }
 0x82e   :  { %5257 = vmatpush3.bf16.msra.mxu1 %v7593_v21 }
 0x82f   :  { %5258 = vmatprep.subr.bf16.mxu1 %v7599_v20 }
 0x832   :  { %5259 = vmatpush3.bf16.msra.mxu1 %v7605_v11 }
 0x833   :  { %5260 = vmatprep.subr.bf16.mxu1 %v7611_v13 }
 0x836   :  { %5261 = vmatpush3.bf16.msra.mxu1 %v9158_v50 }
 0x837   :  { %5262 = vmatprep.subr.bf16.mxu1 %v9159_v51 }
 0x83a   :  { %5263 = vmatpush3.bf16.msra.mxu1 %v7629_v3 }
 0x83b   :  { %5264 = vmatprep.subr.bf16.mxu1 %v7785_v53 }
 0x83e   :  { %5265 = vmatpush3.bf16.msra.mxu1 %v7791_v54 }
 0x83f   :  { %5266 = vmatprep.subr.bf16.mxu1 %v7797_v19 }
 0x842   :  { %5267 = vmatpush3.bf16.msra.mxu1 %v7806_v35 }
 0x843   :  { %5274 = vmatprep.subr.bf16.mxu1 %v7642_v34 }
 0x845   :  { %2427 = vmatmul.mubr.bf16.vlgmr.msra.gmra.mxu1 %v4600_v47  ;;  %v9200_v47 = vld [vmem:[#allocation26_spill] sm:$0xff] }
 0x846   :  { %5275 = vmatpush3.bf16.msra.mxu1 %v7648_v39  ;;  %2466 = vmatprep.mubr.bf16.mxu1 %v4603_v17  ;;  %v9201_v17 = vld [vmem:[#allocation27_spill] sm:$0xff] }
 0x847   :  { %5276 = vmatprep.subr.bf16.mxu1 %v7654_v45 }
 0x84a   :  { %5277 = vmatpush3.bf16.msra.mxu1 %v7660_v58 }
 0x84b   :  { %5278 = vmatprep.subr.bf16.mxu1 %v7666_v9 }
 0x84e   :  { %5279 = vmatpush3.bf16.msra.mxu1 %v7672_v1 }
 0x84f   :  { %5280 = vmatprep.subr.bf16.mxu1 %v7818_v30 }
 0x852   :  { %5281 = vmatpush3.bf16.msra.mxu1 %v7824_v14 }
 0x853   :  { %5282 = vmatprep.subr.bf16.mxu1 %v7830_v24 }
 0x856   :  { %5283 = vmatpush3.bf16.msra.mxu1 %v7836_v33 }
 0x857   :  { %5284 = vmatprep.subr.bf16.mxu1 %v7842_v6 }
 0x85a   :  { %5285 = vmatpush3.bf16.msra.mxu1 %v7848_v5 }
 0x85b   :  { %5286 = vmatprep.subr.bf16.mxu1 %v7854_v61 }
 0x85e   :  { %5287 = vmatpush3.bf16.msra.mxu1 %v7860_v37 }
 0x85f   :  { %5288 = vmatprep.subr.bf16.mxu1 %v7866_v26 }
 0x862   :  { %5289 = vmatpush3.bf16.msra.mxu1 %v7875_v12 }
 0x863   :  { %2514 = vmatprep.subr.bf16.mxu1 %v9135_v15 }
 0x865   :  { %2467 = vmatmul.mubr.bf16.vlgmr.msra.gmra.mxu1 %v4602_v42  ;;  %v9202_v42 = vld [vmem:[#allocation28_spill] sm:$0xff] }
 0x866   :  { %2515 = vmatpush1.bf16.msra.mxu1 %v7692_v0  ;;  %4608 = vmatprep.mubr.msk.bf16.mxu1 %vm599_vm1, %v4607_v23 }
 0x867   :  { %2516 = vmatprep.subr.bf16.mxu1 %v9135_v15 }
 0x86a   :  { %2517 = vmatpush1.bf16.msra.mxu1 %v7885_v32  ;;  %v5312_v23 = vpop.f32.mrf.mxu0 }
 0x86b   :  { %2518 = vmatprep.subr.bf16.mxu1 %v9135_v15 }
 0x86e   :  { %2519 = vmatpush1.bf16.msra.mxu1 %v7892_v4 }
 0x86f   :  { %2520 = vmatprep.subr.bf16.mxu1 %v9135_v15 }
 0x872   :  { %2521 = vmatpush1.bf16.msra.mxu1 %v9187_v56 }
 0x873   :  { %2522 = vmatprep.subr.bf16.mxu1 %v9135_v15 }
 0x876   :  { %2523 = vmatpush1.bf16.msra.mxu1 %v9188_v31 }
 0x877   :  { %2524 = vmatprep.subr.bf16.mxu1 %v9135_v15 }
 0x87a   :  { %2525 = vmatpush1.bf16.msra.mxu1 %v9189_v36 }
 0x87b   :  { %2526 = vmatprep.subr.bf16.mxu1 %v9135_v15 }
 0x87e   :  { %2527 = vmatpush1.bf16.msra.mxu1 %v9190_v60 }
 0x87f   :  { %2528 = vmatprep.subr.bf16.mxu1 %v9135_v15 }
 0x882   :  { %2529 = vmatpush1.bf16.msra.mxu1 %v9191_v2 }
 0x883   :  { %2532 = vmatprep.subr.bf16.mxu1 %v9135_v15 }
 0x886   :  { %2533 = vmatpush2.bf16.msra.mxu1 %v9192_v41  ;;  %v9206_v41 = vld [vmem:[#allocation32_spill] sm:$0xff] }
 0x887   :  { %2534 = vmatprep.subr.bf16.mxu1 %v9135_v15 }
 0x88a   :  { %2535 = vmatpush2.bf16.msra.mxu1 %v9193_v18 }
 0x88b   :  { %2536 = vmatprep.subr.bf16.mxu1 %v9135_v15 }
 0x88e   :  { %2537 = vmatpush2.bf16.msra.mxu1 %v9194_v22 }
 0x88f   :  { %2538 = vmatprep.subr.bf16.mxu1 %v9135_v15 }
 0x892   :  { %2539 = vmatpush2.bf16.msra.mxu1 %v9195_v29  ;;  %v5313_v29 = vpop.f32.mrf.mxu0 }
 0x893   :  { %2540 = vmatprep.subr.bf16.mxu1 %v9135_v15  ;;  %v5314_v22 = vadd.f32 %v5313_v29, %v5312_v23  ;;  %v9213_v29 = vld [vmem:[#allocation22_spill] sm:$0xff] }
 0x894   :  { %v5315_v18 = vpop.f32.mrf.mxu0 }
 0x895   :  { %v9214_v18 = vld [vmem:[#allocation23_spill] sm:$0xff] }
 0x896   :  { %2541 = vmatpush2.bf16.msra.mxu1 %v9196_v7  ;;  %v9203_v7 = vld [vmem:[#allocation29_spill] sm:$0xff] }
 0x897   :  { %2542 = vmatprep.subr.bf16.mxu1 %v9135_v15 }
 0x89a   :  { %2543 = vmatpush2.bf16.msra.mxu1 %v9197_v62  ;;  %v9204_v62 = vld [vmem:[#allocation30_spill] sm:$0xff] }
 0x89b   :  { %2544 = vmatprep.subr.bf16.mxu1 %v9135_v15 }
 0x89e   :  { %2545 = vmatpush2.bf16.msra.mxu1 %v9198_v38  ;;  %v5316_v38 = vpop.f32.mrf.mxu0 }
 0x89f   :  { %5368 = vmatprep.subr.bf16.mxu1 %v9199_v48  ;;  %v9211_v48 = vld [vmem:[#allocation20_spill] sm:$0xff] }
 0x8a0   :  { %v9215_v38 = vld [vmem:[#allocation24_spill] sm:$0xff] }
 0x8a1   :  { %2547 = vmatmul.mubr.bf16.vlgmr.msra.gmra.mxu1 %v4606_v46  ;;  %v9207_v46 = vld [vmem:[#allocation34_spill] sm:$0xff] }
 0x8a2   :  { %5369 = vmatpush3.bf16.msra.mxu1 %v9200_v47  ;;  %v9208_v47 = vld [vmem:[#allocation35_spill] sm:$0xff] }
 0x8a3   :  { %5370 = vmatprep.subr.bf16.mxu1 %v9201_v17  ;;  %v9209_v17 = vld [vmem:[#allocation36_spill] sm:$0xff] }
 0x8a6   :  { %5371 = vmatpush3.bf16.msra.mxu1 %v9202_v42  ;;  %v9210_v42 = vld [vmem:[#allocation37_spill] sm:$0xff] }
 0x8a7   :  { %5372 = vmatprep.subr.bf16.mxu1 %v9203_v7  ;;  %v9212_v7 = vld [vmem:[#allocation21_spill] sm:$0xff] }
 0x8aa   :  { %5373 = vmatpush3.bf16.msra.mxu1 %v9204_v62 }
 0x8ab   :  { %5374 = vmatprep.subr.bf16.mxu1 %v9205_v40 }
 0x8ae   :  { %5375 = vmatpush3.bf16.msra.mxu1 %v9206_v41 }
 0x8af   :  { %5376 = vmatprep.subr.bf16.mxu1 %v9207_v46  ;;  %v2355_v46 = vpop.permute.xlu1 %2354 }
 0x8b0   :  { %vm2356_vm13 = vcmp.eq.s32.totalorder %v2355_v46, 1  ;;  %v9228_v46 = vld [vmem:[#allocation26_spill] sm:$0xff] }
 0x8b2   :  { %5377 = vmatpush3.bf16.msra.mxu1 %v9208_v47 }
 0x8b3   :  { %5378 = vmatprep.subr.bf16.mxu1 %v9209_v17 }
 0x8b6   :  { %5379 = vmatpush3.bf16.msra.mxu1 %v9210_v42 }
 0x8b7   :  { %5380 = vmatprep.subr.bf16.mxu1 %v9211_v48 }
 0x8ba   :  { %5381 = vmatpush3.bf16.msra.mxu1 %v9212_v7 }
 0x8bb   :  { %5382 = vmatprep.subr.bf16.mxu1 %v9213_v29 }
 0x8be   :  { %5383 = vmatpush3.bf16.msra.mxu1 %v9214_v18 }
 0x8bf   :  { %5671 = vmatprep.subr.bf16.mxu1 %v9089_v27 }
 0x8e5   :  { %v2345_v23 = vpop.f32.mrf.mxu1 }
 0x8e6   :  { %v2346_v41 = vadd.f32 %v9215_v38, %v2345_v23 }
 0x8e7   :  { %v5655_v40 = vpop.f32.mrf.mxu1 }
 0x8e8   :  { %v2351_v47 = vmul.f32 0.01, %v2346_v41 }
 0x8e9   :  { %v2348_v62 = vpop.f32.mrf.mxu1 }
 0x8ea   :  { %v2352_v17 = vmax.f32 %v2346_v41, %v2351_v47  ;;  %v4612_v62 = vld [vmem:[%s8939_s1 + $0x110] sm:$0xff] }
 0x8eb   :  { %v5656_v42 = vpop.f32.mrf.mxu1  ;;  %v4619_v47 = vcombine.high %v4612_v62, %v4612_v62 }
 0x8ec   :  { %v2357_v2 = vsel %vm2356_vm13, %v2352_v17, 0.0  ;;  %v4618_v42 = vcombine.low %v4612_v62, %v4612_v62 }
 0x8ed   :  { %v8183_v48 = vadd.f32 %v2357_v2, %v8073_v44  ;;  %2755 = vmatprep.mubr.bf16.mxu1 %v4619_v47  ;;  %v9232_v47 = vld [vmem:[#allocation30_spill] sm:$0xff] }
 0x8ee   :  { %2756 = vmatmul.mubr.bf16.vlgmr.msra.gmra.mxu1 %v4618_v42  ;;  %v9233_v42 = vld [vmem:[#allocation31_spill] sm:$0xff] }
 0x8ef   :  { %5672 = vmatpush3.bf16.msra.mxu1 %v6703_v10  ;;  %5681 = vmatprep.mubr.msk.bf16.mxu1 %vm6218_vm3, %v9089_v27 }
 0x8f0   :  { %5673 = vmatprep.subr.bf16.mxu1 %v9089_v27 }
 0x8f3   :  { %5674 = vmatpush3.bf16.msra.mxu1 %v7536_v49 }
 0x8f4   :  { %5675 = vmatprep.subr.bf16.mxu1 %v9089_v27 }
 0x8f7   :  { %5676 = vmatpush3.bf16.msra.mxu1 %v7544_v57  ;;  %v4610_v57 = vld [vmem:[%s8939_s1 + $0x100] sm:$0xff] }
 0x8f8   :  { %5677 = vmatprep.subr.bf16.mxu1 %v9089_v27 }
 0x8fb   :  { %5678 = vmatpush3.bf16.msra.mxu1 %v7551_v28  ;;  %v4615_v28 = vcombine.high %v4610_v57, %v4610_v57 }
 0x8fc   :  { %5679 = vmatprep.subr.bf16.mxu1 %v9089_v27 }
 0x8ff   :  { %5680 = vmatpush3.bf16.msra.mxu1 %v7558_v25  ;;  %v4611_v25 = vld [vmem:[%s8939_s1 + $0x108] sm:$0xff] }
 0x900   :  { %5396 = vmatprep.subr.bf16.mxu1 %v7764_v63 }
 0x905   :  { %v5268_v7 = vpop.f32.mrf.mxu1 }
 0x907   :  { %v5269_v29 = vpop.f32.mrf.mxu1 }
 0x908   :  { %v5270_v60 = vadd.f32 %v5269_v29, %v5268_v7  ;;  %v9229_v29 = vld [vmem:[#allocation27_spill] sm:$0xff] }
 0x909   :  { %v5271_v18 = vpop.f32.mrf.mxu1 }
 0x90a   :  { %v2429_v23 = vadd.f32 %v7523_v8, %v5270_v60  ;;  %v6225_v8 = vmov 7   ;;  %v9230_v18 = vld [vmem:[#allocation28_spill] sm:$0xff] }
 0x90b   :  { %v5272_v36 = vpop.f32.mrf.mxu1  ;;  %5775 = vset.pattern.permute.xlu1 %v6225_v8  ;;  %v9235_v8 = vld [vmem:[#allocation34_spill] sm:$0xff] }
 0x90c   :  { %2603 = vperm.xlu1 %5775, %v6808_v59  }
 0x910   :  { %5776 = vset.pattern.permute.xlu1 %v9135_v15 }
 0x925   :  { %v5290_v31 = vpop.f32.mrf.mxu1 }
 0x927   :  { %v5291_v56 = vpop.f32.mrf.mxu1 }
 0x928   :  { %v5292_v38 = vadd.f32 %v5291_v56, %v5290_v31 }
 0x929   :  { %v5293_v41 = vpop.f32.mrf.mxu1 }
 0x92a   :  { %v2469_v17 = vadd.f32 %v5292_v38, %v2429_v23  ;;  %v9231_v23 = vld [vmem:[#allocation29_spill] sm:$0xff] }
 0x92b   :  { %v5294_v44 = vpop.f32.mrf.mxu1 }
 0x92c   :  { %v2509_v2 = vadd.f32 %v5314_v22, %v2469_v17 }
 0x961   :  { %v2548_v49 = vpop.f32.mrf.mxu1 }
 0x962   :  { %v2549_v56 = vadd.f32 %v2548_v49, %v2509_v2  ;;  %v9234_v2 = vld [vmem:[#allocation32_spill] sm:$0xff]  ;;  %v9236_v49 = vld [vmem:[#allocation35_spill] sm:$0xff] }
 0x963   :  { %v2550_v31 = vpop.f32.mrf.mxu1 }
 0x964   :  { %v2554_v36 = vmul.f32 0.01, %v2549_v56  ;;  %v9238_v31 = vld [vmem:[#allocation37_spill] sm:$0xff] }
 0x965   :  { %v2551_v60 = vpop.f32.mrf.mxu1 }
 0x966   :  { %v2555_v22 = vmax.f32 %v2549_v56, %v2554_v36  ;;  %v9237_v56 = vld [vmem:[#allocation36_spill] sm:$0xff]  ;;  %v9241_v60 = vld [vmem:[#allocation22_spill] sm:$0xff] }
 0x967   :  { %v2552_v7 = vpop.f32.mrf.mxu1  ;;  %v9239_v36 = vld [vmem:[#allocation20_spill] sm:$0xff] }
 0x968   :  { %v2556_v40 = vpack.c.bf16 %v2555_v22, %v2555_v22  ;;  %v9242_v22 = vld [vmem:[#allocation23_spill] sm:$0xff] }
 0x96a   :  { %5668 = vmatmul.mubr.msk.bf16.vlgmr.msra.gmra.mxu0 %vm805_vm6, %v2556_v40 }
 0x96b   :  { %5325 = vmatpush3.bf16.msra.mxu0 %v7569_v16  ;;  %2675 = vmatprep.mubr.bf16.mxu0 %v4615_v28  ;;  %v4614_v16 = vcombine.low %v4610_v57, %v4610_v57  ;;  %v9240_v57 = vld [vmem:[#allocation21_spill] sm:$0xff]  ;;  %v9243_v28 = vld [vmem:[#allocation24_spill] sm:$0xff] }
 0x96c   :  { %5326 = vmatprep.subr.bf16.mxu0 %v7575_v43  ;;  %v4617_v43 = vcombine.high %v4611_v25, %v4611_v25 }
 0x96f   :  { %5327 = vmatpush3.bf16.msra.mxu0 %v7581_v55  ;;  %v4613_v55 = vld [vmem:[%s8939_s1 + $0x118] sm:$0xff] }
 0x970   :  { %5328 = vmatprep.subr.bf16.mxu0 %v7587_v52  ;;  %v4616_v52 = vcombine.low %v4611_v25, %v4611_v25  ;;  %v4620_v63 = vcombine.low %v4613_v55, %v4613_v55 }
 0x973   :  { %5329 = vmatpush3.bf16.msra.mxu0 %v7593_v21  ;;  %v4621_v21 = vcombine.high %v4613_v55, %v4613_v55 }
 0x974   :  { %5330 = vmatprep.subr.bf16.mxu0 %v7599_v20  ;;  %v9216_v20 = vld [vmem:[#allocation8_spill] sm:$0xff] }
 0x977   :  { %5331 = vmatpush3.bf16.msra.mxu0 %v7605_v11  ;;  %v9217_v11 = vld [vmem:[#allocation12_spill] sm:$0xff] }
 0x978   :  { %5332 = vmatprep.subr.bf16.mxu0 %v7611_v13  ;;  %v9218_v13 = vld [vmem:[#allocation13_spill] sm:$0xff] }
 0x97b   :  { %5333 = vmatpush3.bf16.msra.mxu0 %v9158_v50  ;;  %v8277_v50 = vld [vmem:[%s8942_s4 + $0x1c0] sm:$0xff]  }
 0x97c   :  { %5334 = vmatprep.subr.bf16.mxu0 %v9159_v51  ;;  %v9227_v51 = vld [vmem:[#allocation25_spill] sm:$0xff] }
 0x97f   :  { %5335 = vmatpush3.bf16.msra.mxu0 %v7629_v3  ;;  %v9220_v3 = vld [vmem:[#allocation15_spill] sm:$0xff] }
 0x980   :  { %5336 = vmatprep.subr.bf16.mxu0 %v7785_v53 }
 0x983   :  { %5337 = vmatpush3.bf16.msra.mxu0 %v7791_v54 }
 0x984   :  { %5338 = vmatprep.subr.bf16.mxu0 %v7797_v19 }
 0x987   :  { %5339 = vmatpush3.bf16.msra.mxu0 %v7806_v35  ;;  %v2604_v25 = vpop.permute.xlu1 %2603 }
 0x988   :  { %5346 = vmatprep.subr.bf16.mxu0 %v7642_v34  ;;  %v9219_v34 = vld [vmem:[#allocation14_spill] sm:$0xff]  ;;  %vm2605_vm14 = vcmp.eq.s32.totalorder %v2604_v25, 1 }
 0x989   :  { %v6173_v25 = vld [vmem:[%s8944_s6] sm:$0xff]  }
 0x98a   :  { %2676 = vmatmul.mubr.bf16.vlgmr.msra.gmra.mxu0 %v4614_v16 }
 0x98b   :  { %5347 = vmatpush3.bf16.msra.mxu0 %v7648_v39  ;;  %2715 = vmatprep.mubr.bf16.mxu0 %v4617_v43  ;;  %v9221_v39 = vld [vmem:[#allocation5_spill] sm:$0xff] }
 0x98c   :  { %5348 = vmatprep.subr.bf16.mxu0 %v7654_v45  ;;  %v9222_v45 = vld [vmem:[#allocation16_spill] sm:$0xff] }
 0x98f   :  { %5349 = vmatpush3.bf16.msra.mxu0 %v7660_v58  ;;  %v9223_v58 = vld [vmem:[#allocation17_spill] sm:$0xff] }
 0x990   :  { %5350 = vmatprep.subr.bf16.mxu0 %v7666_v9  ;;  %v9224_v9 = vld [vmem:[#allocation18_spill] sm:$0xff] }
 0x993   :  { %5351 = vmatpush3.bf16.msra.mxu0 %v7672_v1  ;;  %v9225_v1 = vld [vmem:[#allocation19_spill] sm:$0xff] }
 0x994   :  { %5352 = vmatprep.subr.bf16.mxu0 %v7818_v30 }
 0x997   :  { %5353 = vmatpush3.bf16.msra.mxu0 %v7824_v14 }
 0x998   :  { %5354 = vmatprep.subr.bf16.mxu0 %v7830_v24 }
 0x99b   :  { %5355 = vmatpush3.bf16.msra.mxu0 %v7836_v33 }
 0x99c   :  { %5356 = vmatprep.subr.bf16.mxu0 %v7842_v6 }
 0x99f   :  { %5357 = vmatpush3.bf16.msra.mxu0 %v7848_v5 }
 0x9a0   :  { %5358 = vmatprep.subr.bf16.mxu0 %v7854_v61 }
 0x9a3   :  { %5359 = vmatpush3.bf16.msra.mxu0 %v7860_v37 }
 0x9a4   :  { %5360 = vmatprep.subr.bf16.mxu0 %v7866_v26 }
 0x9a7   :  { %5361 = vmatpush3.bf16.msra.mxu0 %v7875_v12 }
 0x9a8   :  { %2763 = vmatprep.subr.bf16.mxu0 %v9135_v15 }
 0x9aa   :  { %2716 = vmatmul.mubr.bf16.vlgmr.msra.gmra.mxu0 %v4616_v52 }
 0x9ab   :  { %2764 = vmatpush1.bf16.msra.mxu0 %v7692_v0  ;;  %4622 = vmatprep.mubr.msk.bf16.mxu0 %vm599_vm1, %v4621_v21  ;;  %v9226_v0 = vld [vmem:[#allocation11_spill] sm:$0xff] }
 0x9ac   :  { %2765 = vmatprep.subr.bf16.mxu0 %v9135_v15 }
 0x9ae   :  { %v5384_v38 = vpop.f32.mrf.mxu1 }
 0x9af   :  { %2766 = vmatpush1.bf16.msra.mxu0 %v7885_v32 }
 0x9b0   :  { %2767 = vmatprep.subr.bf16.mxu0 %v9135_v15  ;;  %v5385_v62 = vpop.f32.mrf.mxu1 }
 0x9b1   :  { %v5386_v41 = vadd.f32 %v5385_v62, %v5384_v38  ;;  %v3114_v62 = vld [vmem:[%s8938_s0] sm:$0xff] }
 0x9b2   :  { %v5387_v17 = vpop.f32.mrf.mxu1  ;;  %3116 = vperm.xlu1 %5776, %v3114_v62  }
 0x9b3   :  { %2768 = vmatpush1.bf16.msra.mxu0 %v7892_v4 }
 0x9b4   :  { %2769 = vmatprep.subr.bf16.mxu0 %v9135_v15  ;;  %v5388_v44 = vpop.f32.mrf.mxu1 }
 0x9b7   :  { %2770 = vmatpush1.bf16.msra.mxu0 %v9216_v20 }
 0x9b8   :  { %2771 = vmatprep.subr.bf16.mxu0 %v9135_v15 }
 0x9bb   :  { %2772 = vmatpush1.bf16.msra.mxu0 %v9217_v11 }
 0x9bc   :  { %2773 = vmatprep.subr.bf16.mxu0 %v9135_v15 }
 0x9bf   :  { %2774 = vmatpush1.bf16.msra.mxu0 %v9218_v13 }
 0x9c0   :  { %2775 = vmatprep.subr.bf16.mxu0 %v9135_v15 }
 0x9c3   :  { %2776 = vmatpush1.bf16.msra.mxu0 %v9219_v34 }
 0x9c4   :  { %2777 = vmatprep.subr.bf16.mxu0 %v9135_v15 }
 0x9c7   :  { %2778 = vmatpush1.bf16.msra.mxu0 %v9220_v3 }
 0x9c8   :  { %2781 = vmatprep.subr.bf16.mxu0 %v9135_v15 }
 0x9cb   :  { %2782 = vmatpush2.bf16.msra.mxu0 %v9221_v39 }
 0x9cc   :  { %2783 = vmatprep.subr.bf16.mxu0 %v9135_v15 }
 0x9cf   :  { %2784 = vmatpush2.bf16.msra.mxu0 %v9222_v45 }
 0x9d0   :  { %2785 = vmatprep.subr.bf16.mxu0 %v9135_v15 }
 0x9d3   :  { %2786 = vmatpush2.bf16.msra.mxu0 %v9223_v58 }
 0x9d4   :  { %2787 = vmatprep.subr.bf16.mxu0 %v9135_v15 }
 0x9d7   :  { %2788 = vmatpush2.bf16.msra.mxu0 %v9224_v9 }
 0x9d8   :  { %2789 = vmatprep.subr.bf16.mxu0 %v9135_v15 }
 0x9db   :  { %2790 = vmatpush2.bf16.msra.mxu0 %v9225_v1 }
 0x9dc   :  { %2791 = vmatprep.subr.bf16.mxu0 %v9135_v15 }
 0x9df   :  { %2792 = vmatpush2.bf16.msra.mxu0 %v9226_v0 }
 0x9e0   :  { %2793 = vmatprep.subr.bf16.mxu0 %v9135_v15 }
 0x9e3   :  { %2794 = vmatpush2.bf16.msra.mxu0 %v8277_v50 }
 0x9e4   :  { %5440 = vmatprep.subr.bf16.mxu0 %v9227_v51 }
 0x9e6   :  { %2796 = vmatmul.mubr.bf16.vlgmr.msra.gmra.mxu0 %v4620_v63 }
 0x9e7   :  { %5441 = vmatpush3.bf16.msra.mxu0 %v9228_v46 }
 0x9e8   :  { %5442 = vmatprep.subr.bf16.mxu0 %v9229_v29 }
 0x9eb   :  { %5443 = vmatpush3.bf16.msra.mxu0 %v9230_v18 }
 0x9ec   :  { %5444 = vmatprep.subr.bf16.mxu0 %v9231_v23 }
 0x9ef   :  { %5445 = vmatpush3.bf16.msra.mxu0 %v9232_v47 }
 0x9f0   :  { %5446 = vmatprep.subr.bf16.mxu0 %v9233_v42  ;;  %v8307_v42 = vld [vmem:[%s8943_s5] ss:$0 sm:$0xff] }
 0x9f3   :  { %5447 = vmatpush3.bf16.msra.mxu0 %v9234_v2  ;;  %v4626_v2 = vld [vmem:[%s8939_s1 + $0x130] sm:$0xff] }
 0x9f4   :  { %5448 = vmatprep.subr.bf16.mxu0 %v9235_v8 }
 0x9f7   :  { %5449 = vmatpush3.bf16.msra.mxu0 %v9236_v49  ;;  %v9244_v49 = vmov 1  }
 0x9f8   :  { %5450 = vmatprep.subr.bf16.mxu0 %v9237_v56  ;;  %5777 = vset.pattern.permute.xlu1 %v9244_v49  ;;  %v4633_v56 = vcombine.high %v4626_v2, %v4626_v2  ;;  %v6182_v49 = vld [vmem:[%s8942_s4 + $0x18] sm:$0xff]  }
 0x9f9   :  { %3120 = vperm.xlu1 %5777, %v3114_v62  }
 0x9fa   :  { %3004 = vmatprep.mubr.bf16.mxu0 %v4633_v56  ;;  %v6183_v56 = vld [vmem:[%s8942_s4 + $0x50] sm:$0xff]  }
 0x9fb   :  { %5451 = vmatpush3.bf16.msra.mxu0 %v9238_v31 }
 0x9fc   :  { %5452 = vmatprep.subr.bf16.mxu0 %v9239_v36  ;;  %v4632_v36 = vcombine.low %v4626_v2, %v4626_v2  ;;  %v6180_v2 = vld [vmem:[%s8942_s4 + $0x20] sm:$0xff]  }
 0x9ff   :  { %5453 = vmatpush3.bf16.msra.mxu0 %v9240_v57 }
 0xa00   :  { %5454 = vmatprep.subr.bf16.mxu0 %v9241_v60 }
 0xa03   :  { %5455 = vmatpush3.bf16.msra.mxu0 %v9242_v22  ;;  %v9245_v22 = vmov 2  }
 0xa04   :  { %5685 = vmatprep.subr.bf16.mxu0 %v9089_v27  ;;  %5778 = vset.pattern.permute.xlu1 %v9245_v22  ;;  %v6185_v22 = vld [vmem:[%s8942_s4 + $0xf8] sm:$0xff]  }
 0xa05   :  { %3125 = vperm.xlu1 %5778, %v3114_v62   ;;  %v6175_v62 = vld [vmem:[%s8942_s4 + $0x70] sm:$0xff]  }
 0xa06   :  { %3005 = vmatmul.mubr.bf16.vlgmr.msra.gmra.mxu0 %v4632_v36  ;;  %v4625_v36 = vld [vmem:[%s8939_s1 + $0x128] sm:$0xff] }
 0xa07   :  { %5686 = vmatpush3.bf16.msra.mxu0 %v6703_v10  ;;  %5695 = vmatprep.mubr.msk.bf16.mxu0 %vm6218_vm3, %v9089_v27  ;;  %v6171_v10 = vld [vmem:[%s8944_s6 + $0x10] sm:$0xff]  }
 0xa08   :  { %5687 = vmatprep.subr.bf16.mxu0 %v9089_v27 }
 0xa2a   :  { %v2594_v7 = vpop.f32.mrf.mxu0 }
 0xa2b   :  { %v2595_v40 = vadd.f32 %v9243_v28, %v2594_v7  ;;  %v6170_v7 = vld [vmem:[%s8944_s6 + $0x18] sm:$0xff]  }
 0xa2c   :  { %v5669_v16 = vpop.f32.mrf.mxu0  ;;  %5688 = vmatpush3.bf16.msra.mxu0 %v6170_v7  ;;  %v6190_v7 = vld [vmem:[%s8942_s4 + $0xa8] sm:$0xff]  }
 0xa2d   :  { %v2600_v43 = vmul.f32 0.01, %v2595_v40  ;;  %5689 = vmatprep.subr.bf16.mxu0 %v9089_v27 }
 0xa2e   :  { %v2597_v55 = vpop.f32.mrf.mxu0 }
 0xa2f   :  { %v2601_v52 = vmax.f32 %v2595_v40, %v2600_v43  ;;  %v6226_v40 = vmov 8  }
 0xa30   :  { %v5670_v21 = vpop.f32.mrf.mxu0  ;;  %5779 = vset.pattern.permute.xlu1 %v6226_v40  ;;  %5690 = vmatpush3.bf16.msra.mxu0 %v6171_v10  ;;  %v3112_v40 = vlaneseq }
 0xa31   :  { %v2606_v63 = vsel %vm2605_vm14, %v2601_v52, 0.0  ;;  %2852 = vperm.xlu1 %5779, %v6808_v59   ;;  %5691 = vmatprep.subr.bf16.mxu0 %v9089_v27  ;;  %v4624_v21 = vld [vmem:[%s8939_s1 + $0x120] sm:$0xff] }
 0xa32   :  { %v8299_v51 = vadd.f32 %v2606_v63, %v8183_v48  ;;  %v3113_v10 = vand.u32 127, %v3112_v40 }
 0xa4a   :  { %v5340_v46 = vpop.f32.mrf.mxu0 }
 0xa4c   :  { %v5341_v29 = vpop.f32.mrf.mxu0 }
 0xa4d   :  { %v5342_v18 = vadd.f32 %v5341_v29, %v5340_v46 }
 0xa4e   :  { %v5343_v38 = vpop.f32.mrf.mxu0 }
 0xa4f   :  { %v2678_v48 = vadd.f32 %v8307_v42, %v5342_v18  ;;  %v4629_v18 = vcombine.high %v4624_v21, %v4624_v21 }
 0xa50   :  { %v5344_v23 = vpop.f32.mrf.mxu0 }
 0xa51   :  { %v6174_v23 = vld [vmem:[%s8942_s4 + $0x38] sm:$0xff]  }
 0xa6a   :  { %v5362_v47 = vpop.f32.mrf.mxu0 }
 0xa6c   :  { %v5363_v17 = vpop.f32.mrf.mxu0 }
 0xa6d   :  { %v5364_v44 = vadd.f32 %v5363_v17, %v5362_v47  ;;  %v6176_v47 = vld [vmem:[%s8942_s4 + $0x30] sm:$0xff]   ;;  %v6177_v17 = vld [vmem:[%s8942_s4 + $0x68] sm:$0xff]  }
 0xa6e   :  { %v5365_v8 = vpop.f32.mrf.mxu0 }
 0xa6f   :  { %v2718_v31 = vadd.f32 %v5364_v44, %v2678_v48  ;;  %v6178_v48 = vld [vmem:[%s8942_s4 + $0x28] sm:$0xff]   ;;  %v6179_v44 = vld [vmem:[%s8942_s4 + $0x60] sm:$0xff]   ;;  %v6181_v8 = vld [vmem:[%s8942_s4 + $0x58] sm:$0xff]  }
 0xa70   :  { %v5366_v57 = vpop.f32.mrf.mxu0 }
 0xa71   :  { %v2758_v60 = vadd.f32 %v5386_v41, %v2718_v31  ;;  %v6172_v41 = vld [vmem:[%s8944_s6 + $0x8] sm:$0xff]   ;;  %v6184_v31 = vld [vmem:[%s8942_s4 + $0x10] sm:$0xff]   ;;  %v4628_v57 = vcombine.low %v4624_v21, %v4624_v21  ;;  %v5951_v21 = vld [vmem:[%s8946_s8 + $0x138] sm:$0xff]  }
 0xa72   :  { %5692 = vmatpush3.bf16.msra.mxu0 %v6172_v41  ;;  %v3117_v41 = vpop.permute.xlu1 %3116 }
 0xa73   :  { %5693 = vmatprep.subr.bf16.mxu0 %v9089_v27  ;;  %vm3118_vm15 = vcmp.eq.s32.totalorder %v3113_v10, %v3117_v41 }
 0xa76   :  { %5694 = vmatpush3.bf16.msra.mxu0 %v6173_v25 }
 0xaa6   :  { %v2797_v16 = vpop.f32.mrf.mxu0 }
 0xaa7   :  { %v2798_v43 = vadd.f32 %v2797_v16, %v2758_v60  ;;  %v4631_v60 = vcombine.high %v4625_v36, %v4625_v36 }
 0xaa8   :  { %v2799_v55 = vpop.f32.mrf.mxu0 }
 0xaa9   :  { %v2803_v52 = vmul.f32 0.01, %v2798_v43  ;;  %v5950_v55 = vld [vmem:[%s8946_s8 + $0x178] sm:$0xff]  }
 0xaaa   :  { %v2800_v63 = vpop.f32.mrf.mxu0 }
 0xaab   :  { %v2804_v46 = vmax.f32 %v2798_v43, %v2803_v52  ;;  %v5955_v63 = vld [vmem:[%s8946_s8 + $0x130] sm:$0xff]  }
 0xaac   :  { %v2801_v29 = vpop.f32.mrf.mxu0 }
 0xaad   :  { %v2805_v38 = vpack.c.bf16 %v2804_v46, %v2804_v46  ;;  %v5958_v46 = vld [vmem:[%s8946_s8 + $0x168] sm:$0xff]  }
 0xaae   :  { %v5959_v29 = vld [vmem:[%s8946_s8 + $0x128] sm:$0xff]  }
 0xaaf   :  { %5682 = vmatmul.mubr.msk.bf16.vlgmr.msra.gmra.mxu1 %vm805_vm6, %v2805_v38  ;;  %v5963_v38 = vld [vmem:[%s8946_s8 + $0x120] sm:$0xff]  }
 0xab0   :  { %5397 = vmatpush3.bf16.msra.mxu1 %v6174_v23  ;;  %2924 = vmatprep.mubr.bf16.mxu1 %v4629_v18  ;;  %v5962_v18 = vld [vmem:[%s8946_s8 + $0x160] sm:$0xff]   ;;  %v5966_v23 = vld [vmem:[%s8946_s8 + $0x158] sm:$0xff]  }
 0xab1   :  { %5398 = vmatprep.subr.bf16.mxu1 %v6175_v62  ;;  %v5967_v62 = vld [vmem:[%s8946_s8 + $0x118] sm:$0xff]  }
 0xab4   :  { %5399 = vmatpush3.bf16.msra.mxu1 %v6176_v47  ;;  %v5970_v47 = vld [vmem:[%s8946_s8 + $0x150] sm:$0xff]  }
 0xab5   :  { %5400 = vmatprep.subr.bf16.mxu1 %v6177_v17  ;;  %v5971_v17 = vld [vmem:[%s8946_s8 + $0x110] sm:$0xff]  }
 0xab8   :  { %5401 = vmatpush3.bf16.msra.mxu1 %v6178_v48  ;;  %v5974_v48 = vld [vmem:[%s8946_s8 + $0x148] sm:$0xff]  }
 0xab9   :  { %5402 = vmatprep.subr.bf16.mxu1 %v6179_v44  ;;  %v5975_v44 = vld [vmem:[%s8946_s8 + $0x108] sm:$0xff]  }
 0xabc   :  { %5403 = vmatpush3.bf16.msra.mxu1 %v6180_v2 }
 0xabd   :  { %5404 = vmatprep.subr.bf16.mxu1 %v6181_v8  ;;  %v5978_v8 = vld [vmem:[%s8946_s8 + $0x140] sm:$0xff]  }
 0xac0   :  { %5405 = vmatpush3.bf16.msra.mxu1 %v6182_v49 }
 0xac1   :  { %5406 = vmatprep.subr.bf16.mxu1 %v6183_v56  ;;  %v5981_v56 = vld [vmem:[%s8946_s8 + $0x100] sm:$0xff]  }
 0xac4   :  { %5407 = vmatpush3.bf16.msra.mxu1 %v6184_v31 }
 0xac5   :  { %5408 = vmatprep.subr.bf16.mxu1 %v7785_v53  ;;  %v6186_v53 = vld [vmem:[%s8942_s4 + $0xb8] sm:$0xff]  }
 0xac8   :  { %5409 = vmatpush3.bf16.msra.mxu1 %v7791_v54  ;;  %v6187_v54 = vld [vmem:[%s8942_s4 + $0xf0] sm:$0xff]  }
 0xac9   :  { %5410 = vmatprep.subr.bf16.mxu1 %v7797_v19  ;;  %v6188_v19 = vld [vmem:[%s8942_s4 + $0xb0] sm:$0xff]  }
 0xacc   :  { %5411 = vmatpush3.bf16.msra.mxu1 %v7806_v35  ;;  %v6189_v35 = vld [vmem:[%s8942_s4 + $0xe8] sm:$0xff]  }
 0xacd   :  { %5418 = vmatprep.subr.bf16.mxu1 %v6185_v22 }
 0xacf   :  { %2925 = vmatmul.mubr.bf16.vlgmr.msra.gmra.mxu1 %v4628_v57  ;;  %v3172_v57 = vld [vmem:[%s8941_s3 + $0x10] sm:$0xff] }
 0xad0   :  { %5419 = vmatpush3.bf16.msra.mxu1 %v6186_v53  ;;  %2964 = vmatprep.mubr.bf16.mxu1 %v4631_v60  ;;  %v4645_v22 = vcombine.high %v3172_v57, %v3172_v57 }
 0xad1   :  { %5420 = vmatprep.subr.bf16.mxu1 %v6187_v54  ;;  %v4644_v54 = vcombine.low %v3172_v57, %v3172_v57  ;;  %v5988_v57 = vld [vmem:[%s8946_s8 + $0x198] sm:$0xff]  }
 0xad4   :  { %5421 = vmatpush3.bf16.msra.mxu1 %v6188_v19 }
 0xad5   :  { %5422 = vmatprep.subr.bf16.mxu1 %v6189_v35 }
 0xad8   :  { %5423 = vmatpush3.bf16.msra.mxu1 %v6190_v7  ;;  %v6227_v7 = vmov 9  }
 0xad9   :  { %5424 = vmatprep.subr.bf16.mxu1 %v7818_v30  ;;  %v4627_v30 = vld [vmem:[%s8939_s1 + $0x138] sm:$0xff]  ;;  %5780 = vset.pattern.permute.xlu1 %v6227_v7  ;;  %v5994_v7 = vld [vmem:[%s8946_s8 + $0x1e0] sm:$0xff]  }
 0xada   :  { %3101 = vperm.xlu1 %5780, %v6808_v59   ;;  %v5932_v59 = vld [vmem:[%s8946_s8 + $0x70] sm:$0xff]  }
 0xadc   :  { %5425 = vmatpush3.bf16.msra.mxu1 %v7824_v14  ;;  %v3121_v14 = vpop.permute.xlu1 %3120 }
 0xadd   :  { %5426 = vmatprep.subr.bf16.mxu1 %v7830_v24  ;;  %v4630_v24 = vcombine.low %v4625_v36, %v4625_v36  ;;  %vm3122_vm2 = vcmp.eq.s32.totalorder %v3113_v10, %v3121_v14  ;;  %v3170_v14 = vld [vmem:[%s8941_s3] sm:$0xff] }
 0xade   :  { %vm3123_vm4 = vmor %vm3118_vm15, %vm3122_vm2 }
 0xae0   :  { %5427 = vmatpush3.bf16.msra.mxu1 %v7836_v33  ;;  %v4635_v33 = vcombine.high %v4627_v30, %v4627_v30 }
 0xae1   :  { %5428 = vmatprep.subr.bf16.mxu1 %v7842_v6  ;;  %v6191_v6 = vld [vmem:[%s8942_s4 + $0x1b8] sm:$0xff]  }
 0xae4   :  { %5429 = vmatpush3.bf16.msra.mxu1 %v7848_v5  ;;  %v3126_v5 = vpop.permute.xlu1 %3125 }
 0xae5   :  { %5430 = vmatprep.subr.bf16.mxu1 %v7854_v61  ;;  %vm3127_vm5 = vcmp.eq.s32.totalorder %v3113_v10, %v3126_v5  ;;  %v5931_v5 = vld [vmem:[%s8946_s8 + $0x38] sm:$0xff]   ;;  %v3163_v61 = vld [vmem:[%s8948_s10 + $0x100] sm:$0xff] }
 0xae6   :  { %vm8419_vm7 = vmor %vm3123_vm4, %vm3127_vm5 }
 0xae8   :  { %5431 = vmatpush3.bf16.msra.mxu1 %v7860_v37  ;;  %v4634_v37 = vcombine.low %v4627_v30, %v4627_v30 }
 0xae9   :  { %5432 = vmatprep.subr.bf16.mxu1 %v7866_v26  ;;  %v5456_v26 = vpop.f32.mrf.mxu0 }
 0xaec   :  { %5433 = vmatpush3.bf16.msra.mxu1 %v7875_v12  ;;  %v5457_v12 = vpop.f32.mrf.mxu0 }
 0xaed   :  { %3012 = vmatprep.subr.bf16.mxu1 %v9135_v15 }
 0xaef   :  { %2965 = vmatmul.mubr.bf16.vlgmr.msra.gmra.mxu1 %v4630_v24 }
 0xaf0   :  { %3013 = vmatpush1.bf16.msra.mxu1 %v6191_v6  ;;  %4636 = vmatprep.mubr.msk.bf16.mxu1 %vm599_vm1, %v4635_v33 }
 0xaf1   :  { %3014 = vmatprep.subr.bf16.mxu1 %v9135_v15 }
 0xaf4   :  { %3015 = vmatpush1.bf16.msra.mxu1 %v7885_v32  ;;  %v8448_v32 = vadd.f32 %v5457_v12, %v5456_v26  ;;  %v5933_v12 = vld [vmem:[%s8946_s8 + $0x30] sm:$0xff]  }
 0xaf5   :  { %3016 = vmatprep.subr.bf16.mxu1 %v9135_v15 }
 0xaf8   :  { %3017 = vmatpush1.bf16.msra.mxu1 %v7892_v4  ;;  %v5459_v4 = vpop.f32.mrf.mxu0 }
 0xaf9   :  { %3018 = vmatprep.subr.bf16.mxu1 %v9135_v15  ;;  %v5935_v4 = vld [vmem:[%s8946_s8 + $0x28] sm:$0xff]  }
 0xafc   :  { %3019 = vmatpush1.bf16.msra.mxu1 %v9216_v20  ;;  %v5460_v20 = vpop.f32.mrf.mxu0 }
 0xafd   :  { %3020 = vmatprep.subr.bf16.mxu1 %v9135_v15  ;;  %v5936_v20 = vld [vmem:[%s8946_s8 + $0x60] sm:$0xff]  }
 0xb00   :  { %3021 = vmatpush1.bf16.msra.mxu1 %v9217_v11 }
 0xb01   :  { %3022 = vmatprep.subr.bf16.mxu1 %v9135_v15 }
 0xb04   :  { %3023 = vmatpush1.bf16.msra.mxu1 %v9218_v13 }
 0xb05   :  { %3024 = vmatprep.subr.bf16.mxu1 %v9135_v15 }
 0xb08   :  { %3025 = vmatpush1.bf16.msra.mxu1 %v9219_v34  ;;  %v2853_v34 = vpop.permute.xlu1 %2852 }
 0xb09   :  { %3026 = vmatprep.subr.bf16.mxu1 %v9135_v15  ;;  %vm2854_vm8 = vcmp.eq.s32.totalorder %v2853_v34, 1  ;;  %v5939_v34 = vld [vmem:[%s8946_s8 + $0x18] sm:$0xff]  }
 0xb0c   :  { %3027 = vmatpush1.bf16.msra.mxu1 %v9220_v3 }
 0xb0d   :  { %3030 = vmatprep.subr.bf16.mxu1 %v9135_v15 }
 0xb10   :  { %3031 = vmatpush2.bf16.msra.mxu1 %v9221_v39  ;;  %v5930_v39 = vld [vmem:[%s8946_s8 + $0x78] sm:$0xff]  }
 0xb11   :  { %3032 = vmatprep.subr.bf16.mxu1 %v9135_v15  ;;  %5468 = vmatprep.subr.bf16.mxu0 %v5930_v39  ;;  %v5941_v39 = vld [vmem:[%s8946_s8 + $0x10] sm:$0xff]  }
 0xb14   :  { %3033 = vmatpush2.bf16.msra.mxu1 %v9222_v45 }
 0xb15   :  { %3034 = vmatprep.subr.bf16.mxu1 %v9135_v15 }
 0xb18   :  { %3035 = vmatpush2.bf16.msra.mxu1 %v9223_v58 }
 0xb19   :  { %3036 = vmatprep.subr.bf16.mxu1 %v9135_v15 }
 0xb1c   :  { %3037 = vmatpush2.bf16.msra.mxu1 %v9224_v9 }
 0xb1d   :  { %3038 = vmatprep.subr.bf16.mxu1 %v9135_v15 }
 0xb20   :  { %3039 = vmatpush2.bf16.msra.mxu1 %v9225_v1 }
 0xb21   :  { %3040 = vmatprep.subr.bf16.mxu1 %v9135_v15 }
 0xb24   :  { %3041 = vmatpush2.bf16.msra.mxu1 %v9226_v0 }
 0xb25   :  { %3042 = vmatprep.subr.bf16.mxu1 %v9135_v15 }
 0xb28   :  { %3043 = vmatpush2.bf16.msra.mxu1 %v8277_v50 }
 0xb29   :  { %5512 = vmatprep.subr.bf16.mxu1 %v5950_v55  ;;  %v5952_v55 = vld [vmem:[%s8946_s8 + $0xf0] sm:$0xff]  }
 0xb2b   :  { %3045 = vmatmul.mubr.bf16.vlgmr.msra.gmra.mxu1 %v4634_v37  ;;  %v4641_v37 = vcombine.high %v3170_v14, %v3170_v14 }
 0xb2c   :  { %5513 = vmatpush3.bf16.msra.mxu1 %v5951_v21  ;;  %3826 = vmatprep.mubr.bf16.mxu1 %v4645_v22  ;;  %v5956_v21 = vld [vmem:[%s8946_s8 + $0xe8] sm:$0xff]  }
 0xb2d   :  { %v5990_v22 = vld [vmem:[%s8946_s8 + $0x188] sm:$0xff]  }
 0xb6f   :  { %v2843_v11 = vpop.f32.mrf.mxu1 }
 0xb70   :  { %v2844_v13 = vadd.f32 %v9243_v28, %v2843_v11  ;;  %v5937_v11 = vld [vmem:[%s8946_s8 + $0x20] sm:$0xff]  }
 0xb71   :  { %v5683_v3 = vpop.f32.mrf.mxu1 }
 0xb72   :  { %v2849_v45 = vmul.f32 0.01, %v2844_v13  ;;  %v5940_v3 = vld [vmem:[%s8946_s8 + $0x50] sm:$0xff]  }
 0xb73   :  { %v2846_v58 = vpop.f32.mrf.mxu1 }
 0xb74   :  { %v2850_v9 = vmax.f32 %v2844_v13, %v2849_v45  ;;  %v5938_v13 = vld [vmem:[%s8946_s8 + $0x58] sm:$0xff]   ;;  %v5942_v45 = vld [vmem:[%s8946_s8 + $0x48] sm:$0xff]  }
 0xb75   :  { %v5684_v1 = vpop.f32.mrf.mxu1  ;;  %v5943_v58 = vld [vmem:[%s8946_s8 + $0x8] sm:$0xff]  }
 0xb76   :  { %v2855_v0 = vsel %vm2854_vm8, %v2850_v9, 0.0  ;;  %v5944_v9 = vld [vmem:[%s8946_s8 + $0x40] sm:$0xff]  }
 0xb77   :  { %v8455_v50 = vadd.f32 %v2855_v0, %v8299_v51  ;;  %v5954_v51 = vld [vmem:[%s8946_s8 + $0x170] sm:$0xff]   ;;  %v5945_v1 = vld [vmem:[%s8946_s8] sm:$0xff]   ;;  %v5948_v0 = vld [vmem:[%s8946_s8 + $0xf8] sm:$0xff]  }
 0xb78   :  { %5514 = vmatprep.subr.bf16.mxu1 %v5954_v51  ;;  %v5957_v51 = vld [vmem:[%s8946_s8 + $0xa8] sm:$0xff]  }
 0xb79   :  { %5515 = vmatpush3.bf16.msra.mxu1 %v5955_v63  ;;  %v5960_v63 = vld [vmem:[%s8946_s8 + $0xe0] sm:$0xff]  }
 0xb7a   :  { %5516 = vmatprep.subr.bf16.mxu1 %v5958_v46  ;;  %v5961_v46 = vld [vmem:[%s8946_s8 + $0xa0] sm:$0xff]  }
 0xb7d   :  { %5517 = vmatpush3.bf16.msra.mxu1 %v5959_v29  ;;  %v5964_v29 = vld [vmem:[%s8946_s8 + $0xd8] sm:$0xff]  }
 0xb7e   :  { %5518 = vmatprep.subr.bf16.mxu1 %v5962_v18  ;;  %v5965_v18 = vld [vmem:[%s8946_s8 + $0x98] sm:$0xff]  }
 0xb81   :  { %5519 = vmatpush3.bf16.msra.mxu1 %v5963_v38  ;;  %v5968_v38 = vld [vmem:[%s8946_s8 + $0xd0] sm:$0xff]  }
 0xb82   :  { %5520 = vmatprep.subr.bf16.mxu1 %v5966_v23  ;;  %v5969_v23 = vld [vmem:[%s8946_s8 + $0x90] sm:$0xff]  }
 0xb85   :  { %5521 = vmatpush3.bf16.msra.mxu1 %v5967_v62  ;;  %v5972_v62 = vld [vmem:[%s8946_s8 + $0xc8] sm:$0xff]  }
 0xb86   :  { %5522 = vmatprep.subr.bf16.mxu1 %v5970_v47  ;;  %v5973_v47 = vld [vmem:[%s8946_s8 + $0x88] sm:$0xff]  }
 0xb89   :  { %5523 = vmatpush3.bf16.msra.mxu1 %v5971_v17  ;;  %v5976_v17 = vld [vmem:[%s8946_s8 + $0xc0] sm:$0xff]  }
 0xb8a   :  { %5524 = vmatprep.subr.bf16.mxu1 %v5974_v48  ;;  %v5977_v48 = vld [vmem:[%s8946_s8 + $0x80] sm:$0xff]  }
 0xb8d   :  { %5525 = vmatpush3.bf16.msra.mxu1 %v5975_v44  ;;  %v3173_v44 = vld [vmem:[%s8941_s3 + $0x18] sm:$0xff] }
 0xb8e   :  { %5526 = vmatprep.subr.bf16.mxu1 %v5978_v8  ;;  %v5984_v8 = vld [vmem:[%s8946_s8 + $0x1b8] sm:$0xff]  }
 0xb8f   :  { %v5412_v25 = vpop.f32.mrf.mxu1 }
 0xb91   :  { %v5413_v16 = vpop.f32.mrf.mxu1  ;;  %5527 = vmatpush3.bf16.msra.mxu1 %v5981_v56  ;;  %v5985_v56 = vld [vmem:[%s8946_s8 + $0x1b0] sm:$0xff]  }
 0xb92   :  { %v5414_v43 = vadd.f32 %v5413_v16, %v5412_v25  ;;  %v3171_v25 = vld [vmem:[%s8941_s3 + $0x8] sm:$0xff]  ;;  %v4640_v16 = vcombine.low %v3170_v14, %v3170_v14  ;;  %v5998_v14 = vld [vmem:[%s8946_s8 + $0x1c0] sm:$0xff]  }
 0xb93   :  { %v5415_v28 = vpop.f32.mrf.mxu1 }
 0xb94   :  { %v2927_v31 = vadd.f32 %v8307_v42, %v5414_v43  ;;  %3827 = vmatmul.mubr.bf16.vlgmr.msra.gmra.mxu1 %v4644_v54  ;;  %v5949_v43 = vld [vmem:[%s8946_s8 + $0xb8] sm:$0xff]   ;;  %v4643_v28 = vcombine.high %v3171_v25, %v3171_v25  ;;  %v5992_v54 = vld [vmem:[%s8946_s8 + $0x1f0] ss:$0 sps:$4 sm:$0xff]  }
 0xb95   :  { %v5416_v52 = vpop.f32.mrf.mxu1  ;;  %3991 = vmatprep.mubr.bf16.mxu1 %v9135_v15 }
 0xb96   :  { %v5953_v52 = vld [vmem:[%s8946_s8 + $0xb0] sm:$0xff]  }
 0xbaf   :  { %v5434_v2 = vpop.f32.mrf.mxu1 }
 0xbb1   :  { %v5435_v49 = vpop.f32.mrf.mxu1 }
 0xbb2   :  { %v5436_v36 = vadd.f32 %v5435_v49, %v5434_v2  ;;  %v4642_v2 = vcombine.low %v3171_v25, %v3171_v25  ;;  %v4647_v49 = vcombine.high %v3173_v44, %v3173_v44  ;;  %v6029_v25 = vld [vmem:[%s8950_s12 + $0x1c] ss:$12 sps:$4 sm:$0xff]  }
 0xbb3   :  { %v5437_v60 = vpop.f32.mrf.mxu1 }
 0xbb4   :  { %v2967_v53 = vadd.f32 %v5436_v36, %v2927_v31  ;;  %v5986_v31 = vld [vmem:[%s8946_s8 + $0x1a8] sm:$0xff]   ;;  %v5987_v36 = vld [vmem:[%s8946_s8 + $0x1a0] sm:$0xff]   ;;  %v5989_v60 = vld [vmem:[%s8946_s8 + $0x190] sm:$0xff]  }
 0xbb5   :  { %v5438_v19 = vpop.f32.mrf.mxu1 }
 0xbb6   :  { %v3007_v35 = vadd.f32 %v8448_v32, %v2967_v53  ;;  %v5934_v32 = vld [vmem:[%s8946_s8 + $0x68] sm:$0xff]   ;;  %v5991_v53 = vld [vmem:[%s8946_s8 + $0x180] sm:$0xff]   ;;  %v3712_v19 = vsel %vm603_vm0, %v5992_v54, 0 }
 0xbb7   :  { %v4639_v54 = vld [vmem:[%s8947_s9] ss:$0 sm:$0xff] }
 0xbeb   :  { %v3046_v42 = vpop.f32.mrf.mxu1 }
 0xbec   :  { %v3047_v10 = vadd.f32 %v3046_v42, %v3007_v35  ;;  %v5993_v35 = vld [vmem:[%s8946_s8 + $0x1e8] sm:$0xff]   ;;  %v5995_v42 = vld [vmem:[%s8946_s8 + $0x1d8] sm:$0xff]  }
 0xbed   :  { %v3048_v41 = vpop.f32.mrf.mxu1 }
 0xbee   :  { %v3052_v30 = vmul.f32 0.01, %v3047_v10  ;;  %v5997_v41 = vld [vmem:[%s8946_s8 + $0x1c8] sm:$0xff]  }
 0xbef   :  { %v3049_v24 = vpop.f32.mrf.mxu1 }
 0xbf0   :  { %v3053_v33 = vmax.f32 %v3047_v10, %v3052_v30  ;;  %v5996_v10 = vld [vmem:[%s8946_s8 + $0x1d0] sm:$0xff]   ;;  %v6001_v24 = vld [vmem:[%s8949_s11 + $0x60] ss:$12 sps:$4 sm:$0x1f]  }
 0xbf1   :  { %v3050_v6 = vpop.f32.mrf.mxu1  ;;  %v6003_v30 = vld [vmem:[%s8949_s11 + $0x64] ss:$12 sps:$4 sm:$0x1f]  }
 0xbf2   :  { %v3054_v26 = vpack.c.bf16 %v3053_v33, %v3053_v33  ;;  %v9248_v33 = vld [vmem:[#allocation6_spill] sm:$0xff] }
 0xbf3   :  { %v4299_v6 = vand.u32 %v6003_v30, %v9248_v33 }
 0xbf4   :  { %5696 = vmatmul.mubr.msk.bf16.vlgmr.msra.gmra.mxu0 %vm805_vm6, %v3054_v26  ;;  %v6006_v26 = vld [vmem:[%s8949_s11 + $0x4c] ss:$12 sps:$4 sm:$0xff]  }
 0xbf5   :  { %5469 = vmatpush3.bf16.msra.mxu0 %v5931_v5  ;;  %3746 = vmatprep.mubr.bf16.mxu0 %v4641_v37  ;;  %v4646_v5 = vcombine.low %v3173_v44, %v3173_v44  ;;  %v4296_v37 = vand.u32 %v6001_v24, %v9248_v33 }
 0xbf6   :  { %5470 = vmatprep.subr.bf16.mxu0 %v5932_v59  ;;  %v6004_v59 = vld [vmem:[%s8949_s11 + $0x48] ss:$12 sps:$4 sm:$0xff]  }
 0xbf9   :  { %5471 = vmatpush3.bf16.msra.mxu0 %v5933_v12  ;;  %v6009_v12 = vld [vmem:[%s8949_s11 + $0x34] ss:$12 sps:$4 sm:$0xff]  }
 0xbfa   :  { %5472 = vmatprep.subr.bf16.mxu0 %v5934_v32  ;;  %v6007_v32 = vld [vmem:[%s8949_s11 + $0x30] ss:$12 sps:$4 sm:$0xff]  }
 0xbfd   :  { %5473 = vmatpush3.bf16.msra.mxu0 %v5935_v4  ;;  %v6012_v4 = vld [vmem:[%s8949_s11 + $0x1c] ss:$12 sps:$4 sm:$0xff]  }
 0xbfe   :  { %5474 = vmatprep.subr.bf16.mxu0 %v5936_v20 }
 0xc01   :  { %5475 = vmatpush3.bf16.msra.mxu0 %v5937_v11 }
 0xc02   :  { %5476 = vmatprep.subr.bf16.mxu0 %v5938_v13 }
 0xc05   :  { %5477 = vmatpush3.bf16.msra.mxu0 %v5939_v34  ;;  %v6015_v34 = vld [vmem:[%s8949_s11 + $0x4] ss:$12 sps:$4 sm:$0xff]  }
 0xc06   :  { %5478 = vmatprep.subr.bf16.mxu0 %v5940_v3  ;;  %v6021_v3 = vld [vmem:[%s8950_s12 + $0x48] ss:$12 sps:$4 sm:$0xff]  }
 0xc09   :  { %5479 = vmatpush3.bf16.msra.mxu0 %v5941_v39  ;;  %v6023_v39 = vld [vmem:[%s8950_s12 + $0x4c] ss:$12 sps:$4 sm:$0xff]  }
 0xc0a   :  { %5480 = vmatprep.subr.bf16.mxu0 %v5942_v45  ;;  %3967 = vmatprep.subr.bf16.mxu1 %v6023_v39  ;;  %v3159_v39 = vld [vmem:[%s8948_s10 + $0xe0] sm:$0xff] }
 0xc0b   :  { %3968 = vmatpush1.bf16.msra.mxu1 %v6021_v3  ;;  %v3161_v3 = vld [vmem:[%s8948_s10 + $0xf0] sm:$0xff] }
 0xc0d   :  { %5481 = vmatpush3.bf16.msra.mxu0 %v5943_v58  ;;  %v6026_v58 = vld [vmem:[%s8950_s12 + $0x34] ss:$12 sps:$4 sm:$0xff]  }
 0xc0e   :  { %5482 = vmatprep.subr.bf16.mxu0 %v5944_v9  ;;  %3969 = vmatprep.subr.bf16.mxu1 %v6026_v58  ;;  %v3156_v58 = vld [vmem:[%s8948_s10 + $0xc8] sm:$0xff] }
 0xc11   :  { %5483 = vmatpush3.bf16.msra.mxu0 %v5945_v1  ;;  %v6013_v1 = vld [vmem:[%s8949_s11] ss:$12 sps:$4 sm:$0xff]  }
 0xc12   :  { %5490 = vmatprep.subr.bf16.mxu0 %v5948_v0  ;;  %v6024_v0 = vld [vmem:[%s8950_s12 + $0x30] ss:$12 sps:$4 sm:$0xff]  }
 0xc13   :  { %3970 = vmatpush1.bf16.msra.mxu1 %v6024_v0  ;;  %v3152_v0 = vld [vmem:[%s8948_s10 + $0xa8] sm:$0xff] }
 0xc14   :  { %3747 = vmatmul.mubr.bf16.vlgmr.msra.gmra.mxu0 %v4640_v16  ;;  %v6027_v16 = vld [vmem:[%s8950_s12 + $0x18] ss:$12 sps:$4 sm:$0xff]   ;;  %3971 = vmatprep.subr.bf16.mxu1 %v6029_v25 }
 0xc15   :  { %5491 = vmatpush3.bf16.msra.mxu0 %v5949_v43  ;;  %3786 = vmatprep.mubr.bf16.mxu0 %v4643_v28  ;;  %v9249_v43 = vld [vmem:[#allocation33_spill] sm:$0xff]  ;;  %v6032_v28 = vld [vmem:[%s8950_s12 + $0x4] ss:$12 sps:$4 sm:$0xff]  }
 0xc16   :  { %5492 = vmatprep.subr.bf16.mxu0 %v5952_v55  ;;  %6037 = vrcp.f32 %v9249_v43  ;;  %v6030_v55 = vld [vmem:[%s8950_s12] ss:$12 sps:$4 sm:$0xff]   ;;  %v3150_v25 = vld [vmem:[%s8948_s10 + $0x98] sm:$0xff] }
 0xc17   :  { %3972 = vmatpush1.bf16.msra.mxu1 %v6027_v16  ;;  %v3149_v16 = vld [vmem:[%s8948_s10 + $0x90] sm:$0xff]  ;;  %v3147_v43 = vld [vmem:[%s8948_s10 + $0x80] sm:$0xff] }
 0xc18   :  { %3973 = vmatprep.subr.bf16.mxu1 %v6032_v28  ;;  %v3146_v28 = vld [vmem:[%s8948_s10 + $0x78] sm:$0xff] }
 0xc19   :  { %5493 = vmatpush3.bf16.msra.mxu0 %v5953_v52 }
 0xc1a   :  { %5494 = vmatprep.subr.bf16.mxu0 %v5956_v21  ;;  %v6192_v21 = vld [vmem:[%s8945_s7] ss:$0 sm:$0xff] }
 0xc1b   :  { %3974 = vmatpush1.bf16.msra.mxu1 %v6030_v55  ;;  %v3144_v55 = vld [vmem:[%s8948_s10 + $0x68] sm:$0xff] }
 0xc1c   :  { %5699 = vmatprep.subr.bf16.mxu1 %v9089_v27 }
 0xc1d   :  { %5495 = vmatpush3.bf16.msra.mxu0 %v5957_v51 }
 0xc1e   :  { %5496 = vmatprep.subr.bf16.mxu0 %v5960_v63  ;;  %v3102_v63 = vpop.permute.xlu1 %3101 }
 0xc21   :  { %5497 = vmatpush3.bf16.msra.mxu0 %v5961_v46 }
 0xc22   :  { %5498 = vmatprep.subr.bf16.mxu0 %v5964_v29 }
 0xc25   :  { %5499 = vmatpush3.bf16.msra.mxu0 %v5965_v18 }
 0xc26   :  { %5500 = vmatprep.subr.bf16.mxu0 %v5968_v38 }
 0xc29   :  { %5501 = vmatpush3.bf16.msra.mxu0 %v5969_v23 }
 0xc2a   :  { %5502 = vmatprep.subr.bf16.mxu0 %v5972_v62  ;;  %v6038_v62 = vpop.eup %6037 }
 0xc2d   :  { %5503 = vmatpush3.bf16.msra.mxu0 %v5973_v47 }
 0xc2e   :  { %5504 = vmatprep.subr.bf16.mxu0 %v5976_v17  ;;  %v6016_v17 = vld [vmem:[%s8949_s11 + $0x68] ss:$12 sps:$4 sm:$0x1f]  }
 0xc31   :  { %5505 = vmatpush3.bf16.msra.mxu0 %v5977_v48 }
 0xc32   :  { %3834 = vmatprep.subr.bf16.mxu0 %v9135_v15 }
 0xc34   :  { %3787 = vmatmul.mubr.bf16.vlgmr.msra.gmra.mxu0 %v4642_v2  ;;  %v4302_v2 = vand.u32 %v6016_v17, %v9248_v33  ;;  %v3166_v17 = vld [vmem:[%s8948_s10 + $0x118] sm:$0xff] }
 0xc35   :  { %3835 = vmatpush1.bf16.msra.mxu0 %v5984_v8  ;;  %4711 = vmatprep.mubr.msk.bf16.mxu0 %vm599_vm1, %v4647_v49  ;;  %vm3103_vm1 = vcmp.eq.s32.totalorder %v3102_v63, 1  ;;  %v6017_v49 = vld [vmem:[%s8949_s11 + $0x50] ss:$12 sps:$4 sm:$0xff]  }
 0xc36   :  { %3836 = vmatprep.subr.bf16.mxu0 %v9135_v15  ;;  %v3138_v63 = vld [vmem:[%s8948_s10 + $0x38] sm:$0xff] }
 0xc39   :  { %3837 = vmatpush1.bf16.msra.mxu0 %v5985_v56  ;;  %v6019_v56 = vld [vmem:[%s8949_s11 + $0x20] ss:$12 sps:$4 sm:$0xff]  }
 0xc3a   :  { %3838 = vmatprep.subr.bf16.mxu0 %v9135_v15 }
 0xc3d   :  { %3839 = vmatpush1.bf16.msra.mxu0 %v5986_v31  ;;  %v6020_v31 = vld [vmem:[%s8949_s11 + $0x8] ss:$12 sps:$4 sm:$0xff]  }
 0xc3e   :  { %3840 = vmatprep.subr.bf16.mxu0 %v9135_v15 }
 0xc41   :  { %3841 = vmatpush1.bf16.msra.mxu0 %v5987_v36 }
 0xc42   :  { %3842 = vmatprep.subr.bf16.mxu0 %v9135_v15 }
 0xc45   :  { %3843 = vmatpush1.bf16.msra.mxu0 %v5988_v57 }
 0xc46   :  { %3844 = vmatprep.subr.bf16.mxu0 %v9135_v15 }
 0xc49   :  { %3845 = vmatpush1.bf16.msra.mxu0 %v5989_v60 }
 0xc4a   :  { %3846 = vmatprep.subr.bf16.mxu0 %v9135_v15 }
 0xc4d   :  { %3847 = vmatpush1.bf16.msra.mxu0 %v5990_v22 }
 0xc4e   :  { %3848 = vmatprep.subr.bf16.mxu0 %v9135_v15 }
 0xc51   :  { %3849 = vmatpush1.bf16.msra.mxu0 %v5991_v53 }
 0xc52   :  { %3852 = vmatprep.subr.bf16.mxu0 %v9135_v15 }
 0xc54   :  { %v5528_v20 = vpop.f32.mrf.mxu1 }
 0xc55   :  { %3853 = vmatpush2.bf16.msra.mxu0 %v3712_v19 }
 0xc56   :  { %3854 = vmatprep.subr.bf16.mxu0 %v9135_v15  ;;  %v5529_v11 = vpop.f32.mrf.mxu1 }
 0xc57   :  { %v8704_v13 = vadd.f32 %v5529_v11, %v5528_v20  ;;  %v3168_v20 = vld [vmem:[%s8948_s10 + $0x128] sm:$0xf]  ;;  %v3167_v11 = vld [vmem:[%s8948_s10 + $0x120] sm:$0xf] }
 0xc58   :  { %v5531_v45 = vpop.f32.mrf.mxu1 }
 0xc59   :  { %3855 = vmatpush2.bf16.msra.mxu0 %v5993_v35  ;;  %v3158_v45 = vld [vmem:[%s8948_s10 + $0xd8] sm:$0xff] }
 0xc5a   :  { %3856 = vmatprep.subr.bf16.mxu0 %v9135_v15  ;;  %v5532_v9 = vpop.f32.mrf.mxu1 }
 0xc5b   :  { %v3155_v9 = vld [vmem:[%s8948_s10 + $0xc0] sm:$0xff] }
 0xc5d   :  { %3857 = vmatpush2.bf16.msra.mxu0 %v5994_v7 }
 0xc5e   :  { %3858 = vmatprep.subr.bf16.mxu0 %v9135_v15 }
 0xc61   :  { %3859 = vmatpush2.bf16.msra.mxu0 %v5995_v42 }
 0xc62   :  { %3860 = vmatprep.subr.bf16.mxu0 %v9135_v15 }
 0xc65   :  { %3861 = vmatpush2.bf16.msra.mxu0 %v5996_v10 }
 0xc66   :  { %3862 = vmatprep.subr.bf16.mxu0 %v9135_v15 }
 0xc69   :  { %3863 = vmatpush2.bf16.msra.mxu0 %v5997_v41 }
 0xc6a   :  { %3864 = vmatprep.subr.bf16.mxu0 %v9135_v15 }
 0xc6d   :  { %3865 = vmatpush2.bf16.msra.mxu0 %v5998_v14 }
 0xc6e   :  { %4310 = vmatprep.subr.bf16.mxu0 %v4299_v6 }
 0xc70   :  { %3867 = vmatmul.mubr.bf16.vlgmr.msra.gmra.mxu0 %v4646_v5  ;;  %v6033_v5 = vld [vmem:[%s8950_s12 + $0x50] ss:$12 sps:$4 sm:$0xff]  }
 0xc71   :  { %4311 = vmatpush1.bf16.msra.mxu0 %v4296_v37  ;;  %4336 = vmatprep.mubr.bf16.mxu0 %v9135_v15  ;;  %v6010_v15 = vld [vmem:[%s8949_s11 + $0x18] ss:$12 sps:$4 sm:$0xff]  }
 0xc72   :  { %4312 = vmatprep.subr.bf16.mxu0 %v6006_v26 }
 0xc75   :  { %4313 = vmatpush1.bf16.msra.mxu0 %v6004_v59 }
 0xc76   :  { %4314 = vmatprep.subr.bf16.mxu0 %v6009_v12  ;;  %v6034_v12 = vld [vmem:[%s8950_s12 + $0x38] ss:$12 sps:$4 sm:$0xff]  }
 0xc79   :  { %4315 = vmatpush1.bf16.msra.mxu0 %v6007_v32  ;;  %v6035_v32 = vld [vmem:[%s8950_s12 + $0x20] ss:$12 sps:$4 sm:$0xff]  }
 0xc7a   :  { %4316 = vmatprep.subr.bf16.mxu0 %v6012_v4  ;;  %v6036_v4 = vld [vmem:[%s8950_s12 + $0x8] ss:$12 sps:$4 sm:$0xff]  }
 0xc7d   :  { %4317 = vmatpush1.bf16.msra.mxu0 %v6010_v15  ;;  %v3165_v15 = vld [vmem:[%s8948_s10 + $0x110] sm:$0xff] }
 0xc7e   :  { %4318 = vmatprep.subr.bf16.mxu0 %v6015_v34  ;;  %v3162_v34 = vld [vmem:[%s8948_s10 + $0xf8] sm:$0xff] }
 0xc81   :  { %4319 = vmatpush1.bf16.msra.mxu0 %v6013_v1  ;;  %v3153_v1 = vld [vmem:[%s8948_s10 + $0xb0] sm:$0xff] }
 0xc82   :  { %5740 = vmatprep.subr.bf16.mxu0 %v9089_v27 }
 0xcb4   :  { %v3092_v52 = vpop.f32.mrf.mxu0 }
 0xcb5   :  { %v3093_v51 = vadd.f32 %v6192_v21, %v3092_v52  ;;  %v3143_v52 = vld [vmem:[%s8948_s10 + $0x60] sm:$0xff]  ;;  %v3141_v21 = vld [vmem:[%s8948_s10 + $0x50] sm:$0xff] }
 0xcb6   :  { %v5697_v46 = vpop.f32.mrf.mxu0 }
 0xcb7   :  { %v3098_v29 = vmul.f32 0.01, %v3093_v51  ;;  %v3137_v46 = vld [vmem:[%s8948_s10 + $0x30] sm:$0xff] }
 0xcb8   :  { %v3095_v18 = vpop.f32.mrf.mxu0 }
 0xcb9   :  { %v3099_v38 = vmax.f32 %v3093_v51, %v3098_v29  ;;  %v3140_v51 = vld [vmem:[%s8948_s10 + $0x48] sm:$0xff]  ;;  %v3135_v29 = vld [vmem:[%s8948_s10 + $0x20] sm:$0xff]  ;;  %v3134_v18 = vld [vmem:[%s8948_s10 + $0x18] sm:$0xff] }
 0xcba   :  { %v5698_v23 = vpop.f32.mrf.mxu0 }
 0xcbb   :  { %v3104_v47 = vsel %vm3103_vm1, %v3099_v38, 0.0  ;;  %v3132_v38 = vld [vmem:[%s8948_s10 + $0x8] sm:$0xff]  ;;  %v3131_v23 = vld [vmem:[%s8948_s10] sm:$0xff] }
 0xcbc   :  { %v3105_v48 = vadd.f32 %v3104_v47, %v8455_v50  ;;  %v6018_v50 = vld [vmem:[%s8949_s11 + $0x38] ss:$12 sps:$4 sm:$0xff]   ;;  %v4638_v47 = vsel %vm8419_vm7, 1.0, %v9089_v27 }
 0xcbe   :  { %v3111_v44 = vmul.f32 %v6038_v62, %v3105_v48  ;;  %v3169_v62 = vld [vmem:[%s8948_s10 + $0x130] sm:$0xf]  ;;  %v3160_v48 = vld [vmem:[%s8948_s10 + $0xe8] sm:$0xff] }
 0xcc0   :  { %v4194_v8 = vpack.c.bf16 %v3111_v44, %v3111_v44  ;;  %v3157_v44 = vld [vmem:[%s8948_s10 + $0xd0] sm:$0xff] }
 0xcc2   :  { %4746 = vmatmul.mubr.msk.bf16.vlgmr.msra.gmra.mxu0 %vm805_vm6, %v4194_v8 }
 0xcc3   :  { %5741 = vmatpush3.bf16.msra.mxu0 %v4302_v2  ;;  %5750 = vmatprep.mubr.msk.bf16.mxu0 %vm6218_vm3, %v9089_v27  ;;  %v3154_v2 = vld [vmem:[%s8948_s10 + $0xb8] sm:$0xff] }
 0xcc4   :  { %5742 = vmatprep.subr.bf16.mxu0 %v9089_v27 }
 0xcc7   :  { %5743 = vmatpush3.bf16.msra.mxu0 %v6017_v49  ;;  %v3148_v49 = vld [vmem:[%s8948_s10 + $0x88] sm:$0xff] }
 0xcc8   :  { %5744 = vmatprep.subr.bf16.mxu0 %v9089_v27 }
 0xccb   :  { %5745 = vmatpush3.bf16.msra.mxu0 %v6018_v50  ;;  %v3145_v50 = vld [vmem:[%s8948_s10 + $0x70] sm:$0xff] }
 0xccc   :  { %5746 = vmatprep.subr.bf16.mxu0 %v9089_v27 }
 0xccf   :  { %5747 = vmatpush3.bf16.msra.mxu0 %v6019_v56  ;;  %v3142_v56 = vld [vmem:[%s8948_s10 + $0x58] sm:$0xff] }
 0xcd0   :  { %5748 = vmatprep.subr.bf16.mxu0 %v9089_v27 }
 0xcd3   :  { %5749 = vmatpush3.bf16.msra.mxu0 %v6020_v31  ;;  %v3139_v31 = vld [vmem:[%s8948_s10 + $0x40] sm:$0xff] }
 0xcd4   :  { %v5484_v36 = vpop.f32.mrf.mxu0 }
 0xcd6   :  { %v5485_v57 = vpop.f32.mrf.mxu0  ;;  %5751 = vmatmul.mubr.msk.bf16.vlgmr.msra.gmra.mxu0 %vm805_vm6, %v4194_v8  ;;  %vm3955_vm6 = vcmask 523264   ;;  %v3151_v8 = vld [vmem:[%s8948_s10 + $0xa0] sm:$0xff] }
 0xcd7   :  { %v5486_v60 = vadd.f32 %v5485_v57, %v5484_v36  ;;  %v3136_v36 = vld [vmem:[%s8948_s10 + $0x28] sm:$0xff]  ;;  %v3133_v57 = vld [vmem:[%s8948_s10 + $0x10] sm:$0xff] }
 0xcd8   :  { %v5487_v22 = vpop.f32.mrf.mxu0 }
 0xcd9   :  { %v3749_v7 = vadd.f32 %v5486_v60, %v4639_v54 }
 0xcda   :  { %v5488_v53 = vpop.f32.mrf.mxu0 }
 0xcf4   :  { %v5506_v19 = vpop.f32.mrf.mxu0 }
 0xcf6   :  { %v5507_v35 = vpop.f32.mrf.mxu0 }
 0xcf7   :  { %v5508_v42 = vadd.f32 %v5507_v35, %v5506_v19 }
 0xcf8   :  { %v5509_v10 = vpop.f32.mrf.mxu0 }
 0xcf9   :  { %v3789_v41 = vadd.f32 %v5508_v42, %v3749_v7 }
 0xcfa   :  { %v5510_v30 = vpop.f32.mrf.mxu0 }
 0xcfb   :  { %v3829_v14 = vadd.f32 %v8704_v13, %v3789_v41  ;;  %v3164_v13 = vld [vmem:[%s8948_s10 + $0x108] sm:$0xff] }
 0xd30   :  { %v3868_v24 = vpop.f32.mrf.mxu0 }
 0xd31   :  { %v3869_v33 = vadd.f32 %v3868_v24, %v3829_v14 }
 0xd32   :  { %v3870_v6 = vpop.f32.mrf.mxu0 }
 0xd33   :  { %v3874_v37 = vpack.c.bf16 %v3869_v33, %v3869_v33 }
 0xd34   :  { %v3871_v26 = vpop.f32.mrf.mxu0 }
 0xd35   :  { %4724 = vmatmul.mubr.msk.bf16.vlgmr.msra.gmra.mxu1 %vm3955_vm6, %v3874_v37  ;;  %v4388_v26 = vld [vmem:[%s8951_s13] sm:$0x7]  ;;  %s6228_s13 = smov [#allocation2]  }
 0xd36   :  { %5700 = vmatpush3.bf16.msra.mxu1 %v6033_v5  ;;  %v3872_v59 = vpop.f32.mrf.mxu0  ;;  %5707 = vmatprep.mubr.msk.bf16.mxu1 %vm6218_vm3, %v9089_v27  ;;  %s4424_s17 = sshll.u32 %s6228_s13, 4  ;;  %s4425_s17 = int_to_ptr.vmem [resolvable:$true] %s4424_s17 }
 0xd37   :  { %5701 = vmatprep.subr.bf16.mxu1 %v9089_v27  ;;  %s6193_s18 = scalar_lea.vmem %s4425_s17, 384  ;;  %p6198_p1 = scmp.lt.s32.totalorder %s4425_s17, %s4425_s17 }
 0xd38   :  { %p6194_p0 = scmp.ne.s32.totalorder %s4425_s17, %s6193_s18  ;;  %p6199_p2 = scmp.lt.s32.totalorder %s6193_s18, %s6193_s18 }
 0xd3a   :  { %5702 = vmatpush3.bf16.msra.mxu1 %v6034_v12  ;;  %p6200_p3 = por %p6199_p2, %p6198_p1 }
 0xd3b   :  { %5703 = vmatprep.subr.bf16.mxu1 %v9089_v27 }
 0xd3c   :  { %p6201_p4 = pnand %p6200_p3, %p6194_p0 }
 0xd3e   :  { %5704 = vmatpush3.bf16.msra.mxu1 %v6035_v32 }
 0xd3f   :  { %5705 = vmatprep.subr.bf16.mxu1 %v9089_v27 }
 0xd42   :  { %5706 = vmatpush3.bf16.msra.mxu1 %v6036_v4 }
 0xd43   :  { %4726 = vmatprep.subr.msk.mxu1 %vm603_vm0, %v3168_v20 }
 0xd45   :  { %5708 = vmatmul.mubr.msk.bf16.vlgmr.msra.gmra.mxu1 %vm3955_vm6, %v3874_v37 }
 0xd46   :  { %4727 = vmatpush1.msk.msra.mxu1 %vm603_vm0, %v3167_v11  ;;  %4117 = vmatprep.mubr.f32.mxu1 %v9089_v27 }
 0xd47   :  { %4061 = vmatprep.subr.mxu1 %v3165_v15 }
 0xd48   :  { %4062 = vmatpush1.msra.mxu1 %v3164_v13 }
 0xd49   :  { %4063 = vmatprep.subr.mxu1 %v3162_v34 }
 0xd4a   :  { %4064 = vmatpush1.msra.mxu1 %v3161_v3 }
 0xd4b   :  { %4065 = vmatprep.subr.mxu1 %v3159_v39 }
 0xd4c   :  { %4066 = vmatpush1.msra.mxu1 %v3158_v45 }
 0xd4d   :  { %4067 = vmatprep.subr.mxu1 %v3156_v58 }
 0xd4e   :  { %4068 = vmatpush1.msra.mxu1 %v3155_v9 }
 0xd4f   :  { %4069 = vmatprep.subr.mxu1 %v3153_v1 }
 0xd50   :  { %4070 = vmatpush1.msra.mxu1 %v3152_v0 }
 0xd51   :  { %4071 = vmatprep.subr.mxu1 %v3150_v25 }
 0xd52   :  { %4072 = vmatpush1.msra.mxu1 %v3149_v16 }
 0xd53   :  { %4073 = vmatprep.subr.mxu1 %v3147_v43 }
 0xd54   :  { %4074 = vmatpush1.msra.mxu1 %v3146_v28 }
 0xd55   :  { %4075 = vmatprep.subr.mxu1 %v3144_v55 }
 0xd56   :  { %4076 = vmatpush1.msra.mxu1 %v3143_v52 }
 0xd57   :  { %4077 = vmatprep.subr.mxu1 %v3141_v21 }
 0xd58   :  { %4078 = vmatpush1.msra.mxu1 %v3140_v51 }
 0xd59   :  { %4079 = vmatprep.subr.mxu1 %v3138_v63 }
 0xd5a   :  { %4080 = vmatpush1.msra.mxu1 %v3137_v46 }
 0xd5b   :  { %4081 = vmatprep.subr.mxu1 %v3135_v29 }
 0xd5c   :  { %4082 = vmatpush1.msra.mxu1 %v3134_v18 }
 0xd5d   :  { %4083 = vmatprep.subr.mxu1 %v3132_v38 }
 0xd5e   :  { %4084 = vmatpush1.msra.mxu1 %v3131_v23 }
 0xd5f   :  { %4728 = vmatmul.mubr.msk.f32.vlgmr.msra.gmra.mxu1 %vm4040_vm9, %v4638_v47  ;;  %5711 = vmatprep.subr.mxu1 %v9089_v27 }
 0xd60   :  { %5712 = vmatpush3.msk.msra.mxu1 %vm603_vm0, %v3169_v62  ;;  %5737 = vmatprep.mubr.msk.f32.mxu1 %vm6218_vm3, %v9089_v27  ;;  %vm4416_vm0 = vcmask 72704  }
 0xd61   :  { %5713 = vmatprep.subr.mxu1 %v9089_v27 }
 0xd62   :  { %5714 = vmatpush3.msra.mxu1 %v3166_v17 }
 0xd63   :  { %5715 = vmatprep.subr.mxu1 %v9089_v27 }
 0xd64   :  { %5716 = vmatpush3.msra.mxu1 %v3163_v61 }
 0xd65   :  { %5717 = vmatprep.subr.mxu1 %v9089_v27 }
 0xd66   :  { %5718 = vmatpush3.msra.mxu1 %v3160_v48 }
 0xd67   :  { %5719 = vmatprep.subr.mxu1 %v9089_v27 }
 0xd68   :  { %5720 = vmatpush3.msra.mxu1 %v3157_v44 }
 0xd69   :  { %5721 = vmatprep.subr.mxu1 %v9089_v27 }
 0xd6a   :  { %5722 = vmatpush3.msra.mxu1 %v3154_v2 }
 0xd6b   :  { %5723 = vmatprep.subr.mxu1 %v9089_v27 }
 0xd6c   :  { %5724 = vmatpush3.msra.mxu1 %v3151_v8 }
 0xd6d   :  { %5725 = vmatprep.subr.mxu1 %v9089_v27 }
 0xd6e   :  { %5726 = vmatpush3.msra.mxu1 %v3148_v49 }
 0xd6f   :  { %5727 = vmatprep.subr.mxu1 %v9089_v27 }
 0xd70   :  { %5728 = vmatpush3.msra.mxu1 %v3145_v50 }
 0xd71   :  { %5729 = vmatprep.subr.mxu1 %v9089_v27 }
 0xd72   :  { %5730 = vmatpush3.msra.mxu1 %v3142_v56 }
 0xd73   :  { %5731 = vmatprep.subr.mxu1 %v9089_v27 }
 0xd74   :  { %5732 = vmatpush3.msra.mxu1 %v3139_v31 }
 0xd75   :  { %5733 = vmatprep.subr.mxu1 %v9089_v27 }
 0xd76   :  { %5734 = vmatpush3.msra.mxu1 %v3136_v36 }
 0xd77   :  { %5735 = vmatprep.subr.mxu1 %v9089_v27  ;;  %v4391_v27 = vshrl.u32 %v3112_v40, 7 }
 0xd78   :  { %5736 = vmatpush3.msra.mxu1 %v3133_v57 }
 0xd79   :  { %5738 = vmatmul.mubr.msk.f32.vlgmr.msra.gmra.mxu1 %vm4040_vm9, %v4638_v47  ;;  %v4392_v37 = vsub.s32 0, %v4391_v27  ;;  %v4396_v59 = vsub.s32 1, %v4391_v27  ;;  %v4400_v1 = vsub.s32 2, %v4391_v27 }
 0xd7b   :  { %v4393_v4 = vrot.slane %v4388_v26, %v4392_v37  ;;  %v4397_v13 = vrot.slane %v4388_v26, %v4396_v59  ;;  %v4401_v16 = vrot.slane %v4388_v26, %v4400_v1 }
 0xd82   :  { %v4338_v60 = vpop.f32.mrf.mxu0 }
 0xd84   :  { %v4340_v22 = vpop.f32.mrf.mxu0 }
 0xd86   :  { %v4342_v53 = vpop.f32.mrf.mxu0 }
 0xd88   :  { %v4343_v54 = vpop.f32.mrf.mxu0 }
 0xd96   :  { %v4379_v19 = vpop.f32.mrf.mxu0 }
 0xd98   :  { %v5752_v35 = vpop.f32.mrf.mxu0 }
 0xd9a   :  { %v4382_v7 = vpop.f32.mrf.mxu0 }
 0xd9c   :  { %v5753_v42 = vpop.f32.mrf.mxu0 }
 0xdf5   :  { %v3993_v10 = vpop.f32.mrf.mxu1 }
 0xdf7   :  { %v3995_v41 = vpop.f32.mrf.mxu1 }
 0xdf9   :  { %v3997_v30 = vpop.f32.mrf.mxu1 }
 0xdfb   :  { %v3998_v14 = vpop.f32.mrf.mxu1 }
 0xe05   :  { %v4034_v24 = vpop.f32.mrf.mxu1 }
 0xe07   :  { %v5709_v33 = vpop.f32.mrf.mxu1 }
 0xe09   :  { %v4037_v6 = vpop.f32.mrf.mxu1 }
 0xe0b   :  { %v5710_v5 = vpop.f32.mrf.mxu1 }
 0xe1f   :  { %v4119_v12 = vpop.f32.mrf.mxu1 }
 0xe20   :  { %v4120_v32 = vadd.f32 %v4119_v12, %v3993_v10 }
 0xe21   :  { %v4121_v20 = vpop.f32.mrf.mxu1 }
 0xe22   :  { %v4385_v11 = vadd.f32 %v4338_v60, %v4120_v32  ;;  %v4122_v15 = vadd.f32 %v4121_v20, %v3995_v41 }
 0xe24   :  { %v4405_v34 = vadd.f32 %v4393_v4, %v4385_v11  ;;  %v4386_v3 = vadd.f32 %v4340_v22, %v4122_v15 }
 0xe26   :  { %v4408_v39 = vmul.f32 0.01, %v4405_v34  ;;  %v4406_v45 = vadd.f32 %v4397_v13, %v4386_v3 }
 0xe28   :  { %v4409_v58 = vmul.f32 0.01, %v4406_v45  ;;  %v4411_v9 = vmax.f32 %v4405_v34, %v4408_v39 }
 0xe2a   :  { %v4412_v40 = vmax.f32 %v4406_v45, %v4409_v58  ;;  %4414 = vst [vmem:[#allocation2] sm:$0xff] %v4411_v9 }
 0xe2c   :  { %4415 = vst [vmem:[#allocation2 + $0x8] sm:$0xff] %v4412_v40 }
 0xe39   :  { %v4190_v0 = vpop.f32.mrf.mxu1 }
 0xe3a   :  { %v4191_v25 = vadd.f32 %v4190_v0, %v4034_v24 }
 0xe3b   :  { %v5739_v43 = vpop.f32.mrf.mxu1 }
 0xe3c   :  { %v4387_v28 = vadd.f32 %v4379_v19, %v4191_v25 }
 0xe3e   :  { %v4407_v55 = vadd.f32 %v4401_v16, %v4387_v28 }
 0xe40   :  { %v4410_v52 = vmul.f32 0.01, %v4407_v55 }
 0xe42   :  { %v4413_v21 = vmax.f32 %v4407_v55, %v4410_v52 }
 0xe44   :  { %4417 = vst.msk [vmem:[#allocation2 + $0x10] sm:$0xff] %vm4416_vm0, %v4413_v21 }
 0xe45   :  { %6204 = shalt.err (!%p6201_p4)
}
 0xe46   :  { %4427 = dma.vmem_to_hbm [thread:$0]  %s4425_s17, 384, %s8952_s14, [#allocation3]  }
 0xe47   :  { %6213 = dma.done.wait [#allocation3], 384  }
 0xe48   :  { %6214 = vsyncadd [#allocation3], 4294966912 }
 0xe49   :  { %4431 = vsyncpa [#allocation3], 1 }

</bundles_post_ra>
